<compile_context>
chip_gen: v7x
topology: tpu7x:2x2x1
jax: 0.10.0
libtpu: 0.0.40
codegen_flags: <defaults>
</compile_context>

<pallas_src>
import functools
import numpy as np
import jax
import jax.numpy as jnp
from jax.experimental import pallas as pl
from jax.experimental.pallas import tpu as pltpu

EPS = 1e-5


# ----------------------------- in-kernel helpers ---------------------------- #

def _elu_k(x):
    # ELU(alpha=1); min() keeps the unselected exp branch finite.
    # TODO(synk): switch to jnp.expm1 once its Mosaic lowering is verified.
    return jnp.where(x > 0.0, x, jnp.exp(jnp.minimum(x, 0.0)) - 1.0)


def _small_matmul_cm(wT, x):
    """(Nout, K) @ (K, M) with tiny static K as an exact-f32 VPU FMA chain.

    Channel-major layout: per k, the activation row x[k:k+1, :] is a sublane
    splat and the weight column wT[:, k:k+1] a lane splat, so the chain is pure
    VALU work with no MXU pass and no bf16 rounding (these results feed later
    BatchNorms, which would amplify matmul rounding error)."""
    k_dim = wT.shape[1]
    acc = wT[:, 0:1] * x[0:1, :]
    for k in range(1, k_dim):
        acc = acc + wT[:, k:k + 1] * x[k:k + 1, :]
    return acc


# ------------------------------ Pallas kernels ------------------------------ #

def _stats_kernel(x_ref, s_ref, q_ref):
    """Per-channel (sublane) sum / sum-of-squares over the lane (M) axis.
    Single full-array block -> no accumulation / masking needed."""
    x = x_ref[...]
    s_ref[...] = jnp.sum(x, axis=1, keepdims=True)
    q_ref[...] = jnp.sum(x * x, axis=1, keepdims=True)


def _stage1_kernel(x_ref, sc_ref, sh_ref, wt_ref, ws_ref,
                   taps_ref, d1_ref, s_ref, q_ref):
    """One read of the input image feeds: (a) BN+ELU + conv1 3x3-tap matmul,
    (b) the raw 1x1 skip conv, (c) the skip path's BN statistics."""
    x = x_ref[...]
    xn = _elu_k(x * sc_ref[...] + sh_ref[...])
    taps_ref[...] = _small_matmul_cm(wt_ref[...], xn)
    d1 = _small_matmul_cm(ws_ref[...], x)
    d1_ref[...] = d1
    s_ref[...] = jnp.sum(d1, axis=1, keepdims=True)
    q_ref[...] = jnp.sum(d1 * d1, axis=1, keepdims=True)


def _bnelu_mm_kernel(x_ref, sc_ref, sh_ref, wt_ref, o_ref):
    """Fused BatchNorm(normalize) + ELU + matmul (MXU).  Used for the conv2 taps:
    that output only feeds `0.1 * x` (no later BN), so MXU rounding is harmless."""
    xn = _elu_k(x_ref[...] * sc_ref[...] + sh_ref[...])
    o_ref[...] = jnp.dot(wt_ref[...], xn, preferred_element_type=jnp.float32)


def _bnelu_mm_stats_kernel(x_ref, sc_ref, sh_ref, wt_ref, o_ref, s_ref, q_ref):
    """Fused BN+ELU+1x1 conv for the skip path, emitting the next BN's stats."""
    xn = _elu_k(x_ref[...] * sc_ref[...] + sh_ref[...])
    o = _small_matmul_cm(wt_ref[...], xn)
    o_ref[...] = o
    s_ref[...] = jnp.sum(o, axis=1, keepdims=True)
    q_ref[...] = jnp.sum(o * o, axis=1, keepdims=True)


def _resize_add_kernel(h_ref, rh_ref, rwT_ref, corr_ref, x_ref, o_ref):
    """Bilinear resize of the skip path (all channels in one program), plus the
    precomputed zero-interleave correction, plus skip + 0.1*x; writes a 128-lane
    padded NCHW slab so every store of the final output is a dense vst."""
    rh = rh_ref[...]
    rwT = rwT_ref[...]
    c = h_ref.shape[1]
    for ch in range(c):                       # static unroll, C <= 8
        u = jnp.dot(h_ref[0, ch], rwT, preferred_element_type=jnp.float32)
        r = jnp.dot(rh, u, preferred_element_type=jnp.float32)
        o_ref[0, ch] = r + corr_ref[ch] + 0.1 * x_ref[0, ch]


# ------------------------------ kernel wrappers ------------------------------ #

def pallas_column_stats(x):
    c, m = x.shape
    return pl.pallas_call(
        _stats_kernel,
        out_shape=(jax.ShapeDtypeStruct((c, 1), jnp.float32),
                   jax.ShapeDtypeStruct((c, 1), jnp.float32)),
        grid=(1,),
        in_specs=[pl.BlockSpec((c, m), lambda i: (0, 0))],
        out_specs=(pl.BlockSpec((c, 1), lambda i: (0, 0)),
                   pl.BlockSpec((c, 1), lambda i: (0, 0))),
    )(x.astype(jnp.float32))


def pallas_stage1(x, scale, shift, wT_taps, wT_skip):
    c, m = x.shape
    n1, n2 = wT_taps.shape[0], wT_skip.shape[0]
    return pl.pallas_call(
        _stage1_kernel,
        out_shape=(jax.ShapeDtypeStruct((n1, m), jnp.float32),
                   jax.ShapeDtypeStruct((n2, m), jnp.float32),
                   jax.ShapeDtypeStruct((n2, 1), jnp.float32),
                   jax.ShapeDtypeStruct((n2, 1), jnp.float32)),
        grid=(1,),
        in_specs=[pl.BlockSpec((c, m), lambda i: (0, 0)),
                  pl.BlockSpec((c, 1), lambda i: (0, 0)),
                  pl.BlockSpec((c, 1), lambda i: (0, 0)),
                  pl.BlockSpec((n1, c), lambda i: (0, 0)),
                  pl.BlockSpec((n2, c), lambda i: (0, 0))],
        out_specs=(pl.BlockSpec((n1, m), lambda i: (0, 0)),
                   pl.BlockSpec((n2, m), lambda i: (0, 0)),
                   pl.BlockSpec((n2, 1), lambda i: (0, 0)),
                   pl.BlockSpec((n2, 1), lambda i: (0, 0))),
    )(x.astype(jnp.float32), scale, shift,
      wT_taps.astype(jnp.float32), wT_skip.astype(jnp.float32))


def pallas_bnelu_matmul(x, scale, shift, wT):
    c, m = x.shape
    nout = wT.shape[0]
    if m >= 512:
        # Exactly two lane-tiles -> both v7x TensorCores get a "parallel" step;
        # blocks stay ~0.4 MB, far below every generation's VMEM limit.
        tm = ((m + 1) // 2 + 127) // 128 * 128
    else:
        tm = m
    return pl.pallas_call(
        _bnelu_mm_kernel,
        out_shape=jax.ShapeDtypeStruct((nout, m), jnp.float32),
        grid=(pl.cdiv(m, tm),),
        in_specs=[pl.BlockSpec((c, tm), lambda i: (0, i)),
                  pl.BlockSpec((c, 1), lambda i: (0, 0)),
                  pl.BlockSpec((c, 1), lambda i: (0, 0)),
                  pl.BlockSpec((nout, c), lambda i: (0, 0))],
        out_specs=pl.BlockSpec((nout, tm), lambda i: (0, i)),
        compiler_params=pltpu.CompilerParams(dimension_semantics=("parallel",)),
    )(x.astype(jnp.float32), scale, shift, wT.astype(jnp.float32))


def pallas_bnelu_matmul_stats(x, scale, shift, wT):
    c, m = x.shape
    nout = wT.shape[0]
    return pl.pallas_call(
        _bnelu_mm_stats_kernel,
        out_shape=(jax.ShapeDtypeStruct((nout, m), jnp.float32),
                   jax.ShapeDtypeStruct((nout, 1), jnp.float32),
                   jax.ShapeDtypeStruct((nout, 1), jnp.float32)),
        grid=(1,),
        in_specs=[pl.BlockSpec((c, m), lambda i: (0, 0)),
                  pl.BlockSpec((c, 1), lambda i: (0, 0)),
                  pl.BlockSpec((c, 1), lambda i: (0, 0)),
                  pl.BlockSpec((nout, c), lambda i: (0, 0))],
        out_specs=(pl.BlockSpec((nout, m), lambda i: (0, 0)),
                   pl.BlockSpec((nout, 1), lambda i: (0, 0)),
                   pl.BlockSpec((nout, 1), lambda i: (0, 0))),
    )(x.astype(jnp.float32), scale, shift, wT.astype(jnp.float32))


def pallas_resize_add(h, rh, rwT, corr_c, xpad):
    n, c, hs, ws = h.shape
    hf, wp = xpad.shape[2], xpad.shape[3]
    return pl.pallas_call(
        _resize_add_kernel,
        out_shape=jax.ShapeDtypeStruct((n, c, hf, wp), jnp.float32),
        grid=(n,),
        in_specs=[pl.BlockSpec((1, c, hs, ws), lambda i: (i, 0, 0, 0)),
                  pl.BlockSpec((hf, hs), lambda i: (0, 0)),
                  pl.BlockSpec((ws, wp), lambda i: (0, 0)),
                  pl.BlockSpec((c, hf, wp), lambda i: (0, 0, 0)),
                  pl.BlockSpec((1, c, hf, wp), lambda i: (i, 0, 0, 0))],
        out_specs=pl.BlockSpec((1, c, hf, wp), lambda i: (i, 0, 0, 0)),
        compiler_params=pltpu.CompilerParams(dimension_semantics=("parallel",)),
    )(h.astype(jnp.float32), rh, rwT, corr_c, xpad.astype(jnp.float32))


# ------------------------------- cheap XLA glue ------------------------------ #

def _elu(x):
    return jnp.where(x > 0, x, jnp.expm1(x))


def _scale_shift(col_sum, col_sumsq, count, gamma, beta):
    """Fold batch-stat BN into per-channel (scale, shift) columns, each (C, 1)."""
    mean = col_sum / count
    var = jnp.maximum(col_sumsq / count - mean * mean, 0.0)
    scale = gamma.reshape(-1, 1) * jax.lax.rsqrt(var + EPS)
    shift = beta.reshape(-1, 1) - mean * scale
    return scale.astype(jnp.float32), shift.astype(jnp.float32)


def interleave_zeros_2x_cm(y):
    """(C,N,H,W) -> (C,N,2H-1,2W-1) with y at even positions (no scatter ops)."""
    c, n, h, w = y.shape
    z = jnp.zeros_like(y)
    yw = jnp.stack([y, z], axis=4).reshape(c, n, h, 2 * w)
    yh = jnp.stack([yw, jnp.zeros_like(yw)], axis=3).reshape(c, n, 2 * h, 2 * w)
    return yh[:, :, :2 * h - 1, :2 * w - 1]


def combine_taps_3x3_s2_cm(taps_cm, bias, n, h, w, cout):
    """Phase-decomposed ConvTranspose2d(3, stride=2) recombination.

    taps_cm: (9*Cout, N*H*W) channel-major per-tap matmul results
    -> dense (Cout, N, 2H+1, 2W+1) (static pads/stacks/one reshape, no scatters)."""
    t6 = taps_cm.reshape(3, 3, cout, n, h, w)

    def sh(t, dh, dw):   # place (C,N,H,W) at offset (dh,dw) on an (H+1,W+1) canvas
        return jnp.pad(t, ((0, 0), (0, 0), (dh, 1 - dh), (dw, 1 - dw)))

    t = lambda kh, kw: t6[kh, kw]
    p00 = sh(t(0, 0), 0, 0) + sh(t(2, 0), 1, 0) + sh(t(0, 2), 0, 1) + sh(t(2, 2), 1, 1)
    p01 = sh(t(0, 1), 0, 0) + sh(t(2, 1), 1, 0)
    p10 = sh(t(1, 0), 0, 0) + sh(t(1, 2), 0, 1)
    p11 = sh(t(1, 1), 0, 0)
    row0 = jnp.stack([p00, p01], axis=4)          # (C,N,H+1,W+1,2)  output-col parity
    row1 = jnp.stack([p10, p11], axis=4)
    big = jnp.stack([row0, row1], axis=3)         # (C,N,H+1,2,W+1,2) output-row parity
    big = big.reshape(cout, n, 2 * h + 2, 2 * w + 2)[:, :, :2 * h + 1, :2 * w + 1]
    return big + bias.reshape(cout, 1, 1, 1)


def _resize_matrix(out_size, in_size):
    # Bilinear, align_corners=False (torchvision Resize / F.interpolate).
    scale = in_size / out_size
    dst = np.arange(out_size, dtype=np.int64)
    src = np.maximum((dst.astype(np.float64) + 0.5) * scale - 0.5, 0.0)
    i0 = np.minimum(np.floor(src), in_size - 1).astype(np.int64)
    i1 = np.minimum(i0 + 1, in_size - 1)
    frac = (src - i0).astype(np.float32)
    r = np.zeros((out_size, in_size), np.float32)
    r[dst, i0] += (1.0 - frac)
    r[dst, i1] += frac
    return r


# -------------------------------- module logic ------------------------------- #

def init_params(key, inputs, depth):
    ks = jax.random.split(key, 6)

    def nrm(k, shape, s=0.1):
        return s * jax.random.normal(k, shape, jnp.float32)

    return {
        "res_w1": nrm(ks[0], (inputs, depth, 1, 1)),
        "res_bn1_g": jnp.ones((depth,), jnp.float32),
        "res_bn1_b": jnp.zeros((depth,), jnp.float32),
        "res_w2": nrm(ks[1], (depth, depth, 1, 1)),
        "res_bn2_g": jnp.ones((depth,), jnp.float32),
        "res_bn2_b": jnp.zeros((depth,), jnp.float32),
        "c1_bn_g": jnp.ones((inputs,), jnp.float32),
        "c1_bn_b": jnp.zeros((inputs,), jnp.float32),
        "c1_w": nrm(ks[2], (inputs, depth, 3, 3)),
        "c1_b": nrm(ks[3], (depth,)),
        "c2_bn_g": jnp.ones((depth,), jnp.float32),
        "c2_bn_b": jnp.zeros((depth,), jnp.float32),
        "c2_w": nrm(ks[4], (depth, depth, 3, 3)),
        "c2_b": nrm(ks[5], (depth,)),
    }


def basic_decoder_block_forward(image, params, depth):
    n, cin, h, w = image.shape
    cout = params["c1_b"].shape[0]
    imgf = image.astype(jnp.float32)

    # single entry-side layout change: NCHW -> channel-major flat (C, N*H*W)
    x_cm = jnp.transpose(imgf, (1, 0, 2, 3)).reshape(cin, n * h * w)

    run_skip = (image.shape[-1] != depth)   # reference literally compares *width*

    # --- conv1 = BN(inputs)+ELU+ConvT3x3 tap matmul; the raw 1x1 skip conv and
    #     the skip path's BN statistics share the same read of the image -------
    s0, q0 = pallas_column_stats(x_cm)
    sc0, sh0 = _scale_shift(s0, q0, n * h * w, params["c1_bn_g"], params["c1_bn_b"])
    w1T = jnp.transpose(params["c1_w"], (2, 3, 1, 0)).reshape(9 * cout, cin)
    if run_skip:
        wsT = jnp.transpose(params["res_w1"][:, :, 0, 0], (1, 0))        # (depth, cin)
        taps1, d1, ds1, dq1 = pallas_stage1(x_cm, sc0, sh0, w1T, wsT)
    else:
        taps1 = pallas_bnelu_matmul(x_cm, sc0, sh0, w1T)
    x2_cmaj = combine_taps_3x3_s2_cm(taps1, params["c1_b"], n, h, w, cout)
    h2d, w2d = 2 * h + 1, 2 * w + 1
    x2_cm = x2_cmaj.reshape(cout, n * h2d * w2d)

    # --- conv2 = BN(depth)+ELU+ConvT3x3 tap matmul (MXU, 2-step parallel grid) --
    s1, q1 = pallas_column_stats(x2_cm)
    sc1, sh1 = _scale_shift(s1, q1, n * h2d * w2d,
                            params["c2_bn_g"], params["c2_bn_b"])
    w2T = jnp.transpose(params["c2_w"], (2, 3, 1, 0)).reshape(9 * cout, cout)
    taps2 = pallas_bnelu_matmul(x2_cm, sc1, sh1, w2T)
    x4_cmaj = combine_taps_3x3_s2_cm(taps2, params["c2_b"], n, h2d, w2d, cout)
    hf, wf = 2 * h2d + 1, 2 * w2d + 1
    wp = ((wf + 127) // 128) * 128            # lane-dense padded width of the epilogue
    x4p = jnp.pad(jnp.transpose(x4_cmaj, (1, 0, 2, 3)),
                  ((0, 0), (0, 0), (0, 0), (0, wp - wf)))                # (N,C,Hf,WP)

    if run_skip:
        # --- skip: ConvT1x1(s2) -> BN+ELU -> ConvT1x1(s2) -> BN+ELU -> resize ---
        ha, wa = 2 * h - 1, 2 * w - 1
        # BN stats of the zero-inserted grid == stats of the dense values with the
        # full-grid count (zeros contribute nothing to sum / sumsq).
        sca, sha = _scale_shift(ds1, dq1, n * ha * wa,
                                params["res_bn1_g"], params["res_bn1_b"])
        s1g = interleave_zeros_2x_cm(d1.reshape(cout, n, h, w))          # (C,N,Ha,Wa)
        d2, ds2, dq2 = pallas_bnelu_matmul_stats(
            s1g.reshape(cout, n * ha * wa), sca, sha,
            jnp.transpose(params["res_w2"][:, :, 0, 0], (1, 0)))
        hb, wb = 2 * ha - 1, 2 * wa - 1                                  # virtual grid
        scb, shb = _scale_shift(ds2, dq2, n * hb * wb,
                                params["res_bn2_g"], params["res_bn2_b"])
        # BN+ELU of the *dense* grid only (tiny); the zero slots of the virtual
        # (Hb,Wb) grid become elu(shift) and fold into the precomputed corr term.
        h2 = jnp.transpose(_elu(d2 * scb + shb).reshape(cout, n, ha, wa),
                           (1, 0, 2, 3))                                  # (N,C,Ha,Wa)
        z2 = _elu(shb[:, 0])                                              # (C,)
        rh_np = _resize_matrix(hf, hb)
        rw_np = _resize_matrix(wf, wb)
        mask = np.zeros((hb, wb), np.float32)
        mask[::2, ::2] = 1.0
        corr = np.pad(rh_np @ (1.0 - mask) @ rw_np.T, ((0, 0), (0, wp - wf)))
        corr_c = z2[:, None, None] * jnp.asarray(corr)[None]              # (C,Hf,WP)
        rh_e = jnp.asarray(np.ascontiguousarray(rh_np[:, ::2]))           # (Hf,Ha)
        rwT_e = jnp.asarray(np.pad(np.ascontiguousarray(rw_np[:, ::2].T),
                                   ((0, 0), (0, wp - wf))))                # (Wa,WP)
        out_p = pallas_resize_add(h2, rh_e, rwT_e, corr_c, x4p)
    else:
        # skip == raw image (reference semantics; only coherent when cin == depth).
        rh_np = _resize_matrix(hf, h)
        rw_np = _resize_matrix(wf, w)
        rwT = jnp.asarray(np.pad(np.ascontiguousarray(rw_np.T),
                                 ((0, 0), (0, wp - wf))))
        corr_c = jnp.zeros((cin, hf, wp), jnp.float32)
        out_p = pallas_resize_add(imgf, jnp.asarray(rh_np), rwT, corr_c, x4p)

    return out_p[:, :, :, :wf]


# ---------------------------- pure-jnp reference ----------------------------- #

def _bn_train(x, g, b):
    mean = jnp.mean(x, axis=(0, 2, 3), keepdims=True)
    var = jnp.mean((x - mean) ** 2, axis=(0, 2, 3), keepdims=True)
    return (x - mean) * jax.lax.rsqrt(var + EPS) * g.reshape(1, -1, 1, 1) \
        + b.reshape(1, -1, 1, 1)


def _convT1x1_s2_ref(x, w):
    n, ci, h, ww = x.shape
    co = w.shape[1]
    y = jnp.einsum("nchw,cd->ndhw", x, w[:, :, 0, 0])
    out = jnp.zeros((n, co, 2 * h - 1, 2 * ww - 1), x.dtype)
    return out.at[:, :, ::2, ::2].set(y)


def _convT3x3_s2_ref(x, w, b):
    n, ci, h, ww = x.shape
    co = w.shape[1]
    out = jnp.zeros((n, co, 2 * h + 1, 2 * ww + 1), x.dtype)
    for kh in range(3):
        for kw in range(3):
            contrib = jnp.einsum("nchw,cd->ndhw", x, w[:, :, kh, kw])
            out = out.at[:, :, kh:kh + 2 * h:2, kw:kw + 2 * ww:2].add(contrib)
    return out + b.reshape(1, -1, 1, 1)


def reference_forward(image, params, depth):
    image = image.astype(jnp.float32)
    skip = image
    if image.shape[-1] != depth:
        s = _convT1x1_s2_ref(image, params["res_w1"])
        s = _elu(_bn_train(s, params["res_bn1_g"], params["res_bn1_b"]))
        s = _convT1x1_s2_ref(s, params["res_w2"])
        s = _elu(_bn_train(s, params["res_bn2_g"], params["res_bn2_b"]))
        skip = s
    x = _elu(_bn_train(image, params["c1_bn_g"], params["c1_bn_b"]))
    x = _convT3x3_s2_ref(x, params["c1_w"], params["c1_b"])
    x = _elu(_bn_train(x, params["c2_bn_g"], params["c2_bn_b"]))
    x = _convT3x3_s2_ref(x, params["c2_w"], params["c2_b"])
    rh = jnp.asarray(_resize_matrix(x.shape[2], skip.shape[2]))
    rw = jnp.asarray(_resize_matrix(x.shape[3], skip.shape[3]))
    skip = jnp.einsum("Hh,nchw,Ww->ncHW", rh, skip, rw)
    return skip + 0.1 * x


# ------------------------------------ main ----------------------------------- #

if __name__ == "__main__":
    N, inputs, depth, S = 2, 4, 8, 16
    key = jax.random.PRNGKey(0)
    k_img, k_par = jax.random.split(key)
    image = jax.random.normal(k_img, (N, inputs, S, S), jnp.float32)
    params = init_params(k_par, inputs, depth)

    fwd = jax.jit(functools.partial(basic_decoder_block_forward, depth=depth))
    out = jax.block_until_ready(fwd(image, params))

    assert out.shape == (N, depth, 4 * S + 3, 4 * S + 3), out.shape
    assert bool(jnp.all(jnp.isfinite(out)))

    ref = jax.block_until_ready(
        jax.jit(functools.partial(reference_forward, depth=depth))(image, params))
    err = float(jnp.max(jnp.abs(out - ref)))
    assert err < 5e-3, f"max abs err vs reference = {err}"

    print("KERNEL_OK")
</pallas_src>

<mosaic_0001>
module attributes {stable_mosaic.version = 11 : i64} {
  func.func @_stats_kernel(%arg0: i32, %arg1: memref<4x512xf32, #tpu.memory_space<vmem>>, %arg2: memref<4x1xf32, #tpu.memory_space<vmem>>, %arg3: memref<4x1xf32, #tpu.memory_space<vmem>>) attributes {dimension_semantics = [#tpu.dimension_semantics<arbitrary>], iteration_bounds = array<i64: 1>, scalar_prefetch = 0 : i64, scratch_operands = 0 : i64, tpu.core_type = #tpu.core_type<tc>, window_params = [{pipeline_mode = #tpu.pipeline_mode<synchronous>, transform_indices = @transform_0, window_bounds = array<i64: 4, 512>}, {pipeline_mode = #tpu.pipeline_mode<synchronous>, transform_indices = @transform_1, window_bounds = array<i64: 4, 1>}, {pipeline_mode = #tpu.pipeline_mode<synchronous>, transform_indices = @transform_2, window_bounds = array<i64: 4, 1>}]} {
    %c0 = arith.constant 0 : index
    %c0_0 = arith.constant 0 : index
    %0 = vector.load %arg1[%c0, %c0_0] : memref<4x512xf32, #tpu.memory_space<vmem>>, vector<4x512xf32>
    %cst = arith.constant dense<0.000000e+00> : vector<4xf32>
    %1 = vector.multi_reduction <add>, %0, %cst [1] : vector<4x512xf32> to vector<4xf32>
    %2 = vector.shape_cast %1 : vector<4xf32> to vector<4x1xf32>
    %c0_1 = arith.constant 0 : index
    %c0_2 = arith.constant 0 : index
    %3 = vector.load %arg2[%c0_1, %c0_2] : memref<4x1xf32, #tpu.memory_space<vmem>>, vector<4x1xf32>
    tpu.vector_store %arg2[%c0_1, %c0_2], %2 {strides = array<i32>} : memref<4x1xf32, #tpu.memory_space<vmem>>, vector<4x1xf32>,
    %4 = arith.mulf %0, %0 : vector<4x512xf32>
    %cst_3 = arith.constant dense<0.000000e+00> : vector<4xf32>
    %5 = vector.multi_reduction <add>, %4, %cst_3 [1] : vector<4x512xf32> to vector<4xf32>
    %6 = vector.shape_cast %5 : vector<4xf32> to vector<4x1xf32>
    %c0_4 = arith.constant 0 : index
    %c0_5 = arith.constant 0 : index
    %7 = vector.load %arg3[%c0_4, %c0_5] : memref<4x1xf32, #tpu.memory_space<vmem>>, vector<4x1xf32>
    tpu.vector_store %arg3[%c0_4, %c0_5], %6 {strides = array<i32>} : memref<4x1xf32, #tpu.memory_space<vmem>>, vector<4x1xf32>,
    return
  }
  func.func @transform_0(%arg0: i32) -> (i32, i32) {
    %c0_i32 = arith.constant 0 : i32
    %c0_i32_0 = arith.constant 0 : i32
    %c0_i32_1 = arith.constant 0 : i32
    return %c0_i32, %c0_i32_0 : i32, i32
  }
  func.func @transform_1(%arg0: i32) -> (i32, i32) {
    %c0_i32 = arith.constant 0 : i32
    %c0_i32_0 = arith.constant 0 : i32
    %c0_i32_1 = arith.constant 0 : i32
    return %c0_i32, %c0_i32_0 : i32, i32
  }
  func.func @transform_2(%arg0: i32) -> (i32, i32) {
    %c0_i32 = arith.constant 0 : i32
    %c0_i32_0 = arith.constant 0 : i32
    %c0_i32_1 = arith.constant 0 : i32
    return %c0_i32, %c0_i32_0 : i32, i32
  }
}

module attributes {stable_mosaic.version = 11 : i64} {
  func.func @_stage1_kernel(%arg0: i32, %arg1: memref<4x512xf32, #tpu.memory_space<vmem>>, %arg2: memref<4x1xf32, #tpu.memory_space<vmem>>, %arg3: memref<4x1xf32, #tpu.memory_space<vmem>>, %arg4: memref<72x4xf32, #tpu.memory_space<vmem>>, %arg5: memref<8x4xf32, #tpu.memory_space<vmem>>, %arg6: memref<72x512xf32, #tpu.memory_space<vmem>>, %arg7: memref<8x512xf32, #tpu.memory_space<vmem>>, %arg8: memref<8x1xf32, #tpu.memory_space<vmem>>, %arg9: memref<8x1xf32, #tpu.memory_space<vmem>>) attributes {dimension_semantics = [#tpu.dimension_semantics<arbitrary>], iteration_bounds = array<i64: 1>, scalar_prefetch = 0 : i64, scratch_operands = 0 : i64, tpu.core_type = #tpu.core_type<tc>, window_params = [{pipeline_mode = #tpu.pipeline_mode<synchronous>, transform_indices = @transform_0, window_bounds = array<i64: 4, 512>}, {pipeline_mode = #tpu.pipeline_mode<synchronous>, transform_indices = @transform_1, window_bounds = array<i64: 4, 1>}, {pipeline_mode = #tpu.pipeline_mode<synchronous>, transform_indices = @transform_2, window_bounds = array<i64: 4, 1>}, {pipeline_mode = #tpu.pipeline_mode<synchronous>, transform_indices = @transform_3, window_bounds = array<i64: 72, 4>}, {pipeline_mode = #tpu.pipeline_mode<synchronous>, transform_indices = @transform_4, window_bounds = array<i64: 8, 4>}, {pipeline_mode = #tpu.pipeline_mode<synchronous>, transform_indices = @transform_5, window_bounds = array<i64: 72, 512>}, {pipeline_mode = #tpu.pipeline_mode<synchronous>, transform_indices = @transform_6, window_bounds = array<i64: 8, 512>}, {pipeline_mode = #tpu.pipeline_mode<synchronous>, transform_indices = @transform_7, window_bounds = array<i64: 8, 1>}, {pipeline_mode = #tpu.pipeline_mode<synchronous>, transform_indices = @transform_8, window_bounds = array<i64: 8, 1>}]} {
    %c0 = arith.constant 0 : index
    %c0_0 = arith.constant 0 : index
    %0 = vector.load %arg1[%c0, %c0_0] : memref<4x512xf32, #tpu.memory_space<vmem>>, vector<4x512xf32>
    %c0_1 = arith.constant 0 : index
    %c0_2 = arith.constant 0 : index
    %1 = vector.load %arg2[%c0_1, %c0_2] : memref<4x1xf32, #tpu.memory_space<vmem>>, vector<4x1xf32>
    %2 = vector.broadcast %1 : vector<4x1xf32> to vector<4x512xf32>
    %3 = arith.mulf %0, %2 : vector<4x512xf32>
    %c0_3 = arith.constant 0 : index
    %c0_4 = arith.constant 0 : index
    %4 = vector.load %arg3[%c0_3, %c0_4] : memref<4x1xf32, #tpu.memory_space<vmem>>, vector<4x1xf32>
    %5 = vector.broadcast %4 : vector<4x1xf32> to vector<4x512xf32>
    %6 = arith.addf %3, %5 : vector<4x512xf32>
    %cst = arith.constant 0.000000e+00 : f32
    %7 = vector.broadcast %cst : f32 to vector<4x512xf32>
    %8 = arith.cmpf ogt, %6, %7 : vector<4x512xf32>
    %cst_5 = arith.constant 0.000000e+00 : f32
    %9 = vector.broadcast %cst_5 : f32 to vector<4x512xf32>
    %10 = arith.minimumf %6, %9 : vector<4x512xf32>
    %11 = math.exp %10 : vector<4x512xf32>
    %cst_6 = arith.constant 1.000000e+00 : f32
    %12 = vector.broadcast %cst_6 : f32 to vector<4x512xf32>
    %13 = arith.subf %11, %12 : vector<4x512xf32>
    %14 = arith.select %8, %6, %13 : vector<4x512xi1>, vector<4x512xf32>
    %c0_7 = arith.constant 0 : index
    %c0_8 = arith.constant 0 : index
    %15 = vector.load %arg4[%c0_7, %c0_8] : memref<72x4xf32, #tpu.memory_space<vmem>>, vector<72x4xf32>
    %16 = vector.extract_strided_slice %15 {offsets = [0, 0], sizes = [72, 1], strides = [1, 1]} : vector<72x4xf32> to vector<72x1xf32>
    %17 = vector.extract_strided_slice %14 {offsets = [0, 0], sizes = [1, 512], strides = [1, 1]} : vector<4x512xf32> to vector<1x512xf32>
    %18 = vector.broadcast %16 : vector<72x1xf32> to vector<72x512xf32>
    %19 = vector.broadcast %17 : vector<1x512xf32> to vector<72x512xf32>
    %20 = arith.mulf %18, %19 : vector<72x512xf32>
    %21 = vector.extract_strided_slice %15 {offsets = [0, 1], sizes = [72, 1], strides = [1, 1]} : vector<72x4xf32> to vector<72x1xf32>
    %22 = vector.extract_strided_slice %14 {offsets = [1, 0], sizes = [1, 512], strides = [1, 1]} : vector<4x512xf32> to vector<1x512xf32>
    %23 = vector.broadcast %21 : vector<72x1xf32> to vector<72x512xf32>
    %24 = vector.broadcast %22 : vector<1x512xf32> to vector<72x512xf32>
    %25 = arith.mulf %23, %24 : vector<72x512xf32>
    %26 = arith.addf %20, %25 : vector<72x512xf32>
    %27 = vector.extract_strided_slice %15 {offsets = [0, 2], sizes = [72, 1], strides = [1, 1]} : vector<72x4xf32> to vector<72x1xf32>
    %28 = vector.extract_strided_slice %14 {offsets = [2, 0], sizes = [1, 512], strides = [1, 1]} : vector<4x512xf32> to vector<1x512xf32>
    %29 = vector.broadcast %27 : vector<72x1xf32> to vector<72x512xf32>
    %30 = vector.broadcast %28 : vector<1x512xf32> to vector<72x512xf32>
    %31 = arith.mulf %29, %30 : vector<72x512xf32>
    %32 = arith.addf %26, %31 : vector<72x512xf32>
    %33 = vector.extract_strided_slice %15 {offsets = [0, 3], sizes = [72, 1], strides = [1, 1]} : vector<72x4xf32> to vector<72x1xf32>
    %34 = vector.extract_strided_slice %14 {offsets = [3, 0], sizes = [1, 512], strides = [1, 1]} : vector<4x512xf32> to vector<1x512xf32>
    %35 = vector.broadcast %33 : vector<72x1xf32> to vector<72x512xf32>
    %36 = vector.broadcast %34 : vector<1x512xf32> to vector<72x512xf32>
    %37 = arith.mulf %35, %36 : vector<72x512xf32>
    %38 = arith.addf %32, %37 : vector<72x512xf32>
    %c0_9 = arith.constant 0 : index
    %c0_10 = arith.constant 0 : index
    %39 = vector.load %arg6[%c0_9, %c0_10] : memref<72x512xf32, #tpu.memory_space<vmem>>, vector<72x512xf32>
    tpu.vector_store %arg6[%c0_9, %c0_10], %38 {strides = array<i32>} : memref<72x512xf32, #tpu.memory_space<vmem>>, vector<72x512xf32>,
    %c0_11 = arith.constant 0 : index
    %c0_12 = arith.constant 0 : index
    %40 = vector.load %arg5[%c0_11, %c0_12] : memref<8x4xf32, #tpu.memory_space<vmem>>, vector<8x4xf32>
    %41 = vector.extract_strided_slice %40 {offsets = [0, 0], sizes = [8, 1], strides = [1, 1]} : vector<8x4xf32> to vector<8x1xf32>
    %42 = vector.extract_strided_slice %0 {offsets = [0, 0], sizes = [1, 512], strides = [1, 1]} : vector<4x512xf32> to vector<1x512xf32>
    %43 = vector.broadcast %41 : vector<8x1xf32> to vector<8x512xf32>
    %44 = vector.broadcast %42 : vector<1x512xf32> to vector<8x512xf32>
    %45 = arith.mulf %43, %44 : vector<8x512xf32>
    %46 = vector.extract_strided_slice %40 {offsets = [0, 1], sizes = [8, 1], strides = [1, 1]} : vector<8x4xf32> to vector<8x1xf32>
    %47 = vector.extract_strided_slice %0 {offsets = [1, 0], sizes = [1, 512], strides = [1, 1]} : vector<4x512xf32> to vector<1x512xf32>
    %48 = vector.broadcast %46 : vector<8x1xf32> to vector<8x512xf32>
    %49 = vector.broadcast %47 : vector<1x512xf32> to vector<8x512xf32>
    %50 = arith.mulf %48, %49 : vector<8x512xf32>
    %51 = arith.addf %45, %50 : vector<8x512xf32>
    %52 = vector.extract_strided_slice %40 {offsets = [0, 2], sizes = [8, 1], strides = [1, 1]} : vector<8x4xf32> to vector<8x1xf32>
    %53 = vector.extract_strided_slice %0 {offsets = [2, 0], sizes = [1, 512], strides = [1, 1]} : vector<4x512xf32> to vector<1x512xf32>
    %54 = vector.broadcast %52 : vector<8x1xf32> to vector<8x512xf32>
    %55 = vector.broadcast %53 : vector<1x512xf32> to vector<8x512xf32>
    %56 = arith.mulf %54, %55 : vector<8x512xf32>
    %57 = arith.addf %51, %56 : vector<8x512xf32>
    %58 = vector.extract_strided_slice %40 {offsets = [0, 3], sizes = [8, 1], strides = [1, 1]} : vector<8x4xf32> to vector<8x1xf32>
    %59 = vector.extract_strided_slice %0 {offsets = [3, 0], sizes = [1, 512], strides = [1, 1]} : vector<4x512xf32> to vector<1x512xf32>
    %60 = vector.broadcast %58 : vector<8x1xf32> to vector<8x512xf32>
    %61 = vector.broadcast %59 : vector<1x512xf32> to vector<8x512xf32>
    %62 = arith.mulf %60, %61 : vector<8x512xf32>
    %63 = arith.addf %57, %62 : vector<8x512xf32>
    %c0_13 = arith.constant 0 : index
    %c0_14 = arith.constant 0 : index
    %64 = vector.load %arg7[%c0_13, %c0_14] : memref<8x512xf32, #tpu.memory_space<vmem>>, vector<8x512xf32>
    tpu.vector_store %arg7[%c0_13, %c0_14], %63 {strides = array<i32>} : memref<8x512xf32, #tpu.memory_space<vmem>>, vector<8x512xf32>,
    %cst_15 = arith.constant dense<0.000000e+00> : vector<8xf32>
    %65 = vector.multi_reduction <add>, %63, %cst_15 [1] : vector<8x512xf32> to vector<8xf32>
    %66 = vector.shape_cast %65 : vector<8xf32> to vector<8x1xf32>
    %c0_16 = arith.constant 0 : index
    %c0_17 = arith.constant 0 : index
    %67 = vector.load %arg8[%c0_16, %c0_17] : memref<8x1xf32, #tpu.memory_space<vmem>>, vector<8x1xf32>
    tpu.vector_store %arg8[%c0_16, %c0_17], %66 {strides = array<i32>} : memref<8x1xf32, #tpu.memory_space<vmem>>, vector<8x1xf32>,
    %68 = arith.mulf %63, %63 : vector<8x512xf32>
    %cst_18 = arith.constant dense<0.000000e+00> : vector<8xf32>
    %69 = vector.multi_reduction <add>, %68, %cst_18 [1] : vector<8x512xf32> to vector<8xf32>
    %70 = vector.shape_cast %69 : vector<8xf32> to vector<8x1xf32>
    %c0_19 = arith.constant 0 : index
    %c0_20 = arith.constant 0 : index
    %71 = vector.load %arg9[%c0_19, %c0_20] : memref<8x1xf32, #tpu.memory_space<vmem>>, vector<8x1xf32>
    tpu.vector_store %arg9[%c0_19, %c0_20], %70 {strides = array<i32>} : memref<8x1xf32, #tpu.memory_space<vmem>>, vector<8x1xf32>,
    return
  }
  func.func @transform_0(%arg0: i32) -> (i32, i32) {
    %c0_i32 = arith.constant 0 : i32
    %c0_i32_0 = arith.constant 0 : i32
    %c0_i32_1 = arith.constant 0 : i32
    return %c0_i32, %c0_i32_0 : i32, i32
  }
  func.func @transform_1(%arg0: i32) -> (i32, i32) {
    %c0_i32 = arith.constant 0 : i32
    %c0_i32_0 = arith.constant 0 : i32
    %c0_i32_1 = arith.constant 0 : i32
    return %c0_i32, %c0_i32_0 : i32, i32
  }
  func.func @transform_2(%arg0: i32) -> (i32, i32) {
    %c0_i32 = arith.constant 0 : i32
    %c0_i32_0 = arith.constant 0 : i32
    %c0_i32_1 = arith.constant 0 : i32
    return %c0_i32, %c0_i32_0 : i32, i32
  }
  func.func @transform_3(%arg0: i32) -> (i32, i32) {
    %c0_i32 = arith.constant 0 : i32
    %c0_i32_0 = arith.constant 0 : i32
    %c0_i32_1 = arith.constant 0 : i32
    return %c0_i32, %c0_i32_0 : i32, i32
  }
  func.func @transform_4(%arg0: i32) -> (i32, i32) {
    %c0_i32 = arith.constant 0 : i32
    %c0_i32_0 = arith.constant 0 : i32
    %c0_i32_1 = arith.constant 0 : i32
    return %c0_i32, %c0_i32_0 : i32, i32
  }
  func.func @transform_5(%arg0: i32) -> (i32, i32) {
    %c0_i32 = arith.constant 0 : i32
    %c0_i32_0 = arith.constant 0 : i32
    %c0_i32_1 = arith.constant 0 : i32
    return %c0_i32, %c0_i32_0 : i32, i32
  }
  func.func @transform_6(%arg0: i32) -> (i32, i32) {
    %c0_i32 = arith.constant 0 : i32
    %c0_i32_0 = arith.constant 0 : i32
    %c0_i32_1 = arith.constant 0 : i32
    return %c0_i32, %c0_i32_0 : i32, i32
  }
  func.func @transform_7(%arg0: i32) -> (i32, i32) {
    %c0_i32 = arith.constant 0 : i32
    %c0_i32_0 = arith.constant 0 : i32
    %c0_i32_1 = arith.constant 0 : i32
    return %c0_i32, %c0_i32_0 : i32, i32
  }
  func.func @transform_8(%arg0: i32) -> (i32, i32) {
    %c0_i32 = arith.constant 0 : i32
    %c0_i32_0 = arith.constant 0 : i32
    %c0_i32_1 = arith.constant 0 : i32
    return %c0_i32, %c0_i32_0 : i32, i32
  }
}

module attributes {stable_mosaic.version = 11 : i64} {
  func.func @_stats_kernel(%arg0: i32, %arg1: memref<8x2178xf32, #tpu.memory_space<vmem>>, %arg2: memref<8x1xf32, #tpu.memory_space<vmem>>, %arg3: memref<8x1xf32, #tpu.memory_space<vmem>>) attributes {dimension_semantics = [#tpu.dimension_semantics<arbitrary>], iteration_bounds = array<i64: 1>, scalar_prefetch = 0 : i64, scratch_operands = 0 : i64, tpu.core_type = #tpu.core_type<tc>, window_params = [{pipeline_mode = #tpu.pipeline_mode<synchronous>, transform_indices = @transform_0, window_bounds = array<i64: 8, 2178>}, {pipeline_mode = #tpu.pipeline_mode<synchronous>, transform_indices = @transform_1, window_bounds = array<i64: 8, 1>}, {pipeline_mode = #tpu.pipeline_mode<synchronous>, transform_indices = @transform_2, window_bounds = array<i64: 8, 1>}]} {
    %c0 = arith.constant 0 : index
    %c0_0 = arith.constant 0 : index
    %0 = vector.load %arg1[%c0, %c0_0] : memref<8x2178xf32, #tpu.memory_space<vmem>>, vector<8x2178xf32>
    %cst = arith.constant dense<0.000000e+00> : vector<8xf32>
    %1 = vector.multi_reduction <add>, %0, %cst [1] : vector<8x2178xf32> to vector<8xf32>
    %2 = vector.shape_cast %1 : vector<8xf32> to vector<8x1xf32>
    %c0_1 = arith.constant 0 : index
    %c0_2 = arith.constant 0 : index
    %3 = vector.load %arg2[%c0_1, %c0_2] : memref<8x1xf32, #tpu.memory_space<vmem>>, vector<8x1xf32>
    tpu.vector_store %arg2[%c0_1, %c0_2], %2 {strides = array<i32>} : memref<8x1xf32, #tpu.memory_space<vmem>>, vector<8x1xf32>,
    %4 = arith.mulf %0, %0 : vector<8x2178xf32>
    %cst_3 = arith.constant dense<0.000000e+00> : vector<8xf32>
    %5 = vector.multi_reduction <add>, %4, %cst_3 [1] : vector<8x2178xf32> to vector<8xf32>
    %6 = vector.shape_cast %5 : vector<8xf32> to vector<8x1xf32>
    %c0_4 = arith.constant 0 : index
    %c0_5 = arith.constant 0 : index
    %7 = vector.load %arg3[%c0_4, %c0_5] : memref<8x1xf32, #tpu.memory_space<vmem>>, vector<8x1xf32>
    tpu.vector_store %arg3[%c0_4, %c0_5], %6 {strides = array<i32>} : memref<8x1xf32, #tpu.memory_space<vmem>>, vector<8x1xf32>,
    return
  }
  func.func @transform_0(%arg0: i32) -> (i32, i32) {
    %c0_i32 = arith.constant 0 : i32
    %c0_i32_0 = arith.constant 0 : i32
    %c0_i32_1 = arith.constant 0 : i32
    return %c0_i32, %c0_i32_0 : i32, i32
  }
  func.func @transform_1(%arg0: i32) -> (i32, i32) {
    %c0_i32 = arith.constant 0 : i32
    %c0_i32_0 = arith.constant 0 : i32
    %c0_i32_1 = arith.constant 0 : i32
    return %c0_i32, %c0_i32_0 : i32, i32
  }
  func.func @transform_2(%arg0: i32) -> (i32, i32) {
    %c0_i32 = arith.constant 0 : i32
    %c0_i32_0 = arith.constant 0 : i32
    %c0_i32_1 = arith.constant 0 : i32
    return %c0_i32, %c0_i32_0 : i32, i32
  }
}

module attributes {stable_mosaic.version = 11 : i64} {
  func.func @_bnelu_mm_kernel(%arg0: i32, %arg1: memref<8x1152xf32, #tpu.memory_space<vmem>>, %arg2: memref<8x1xf32, #tpu.memory_space<vmem>>, %arg3: memref<8x1xf32, #tpu.memory_space<vmem>>, %arg4: memref<72x8xf32, #tpu.memory_space<vmem>>, %arg5: memref<72x1152xf32, #tpu.memory_space<vmem>>) attributes {dimension_semantics = [#tpu.dimension_semantics<parallel>], iteration_bounds = array<i64: 2>, scalar_prefetch = 0 : i64, scratch_operands = 0 : i64, tpu.core_type = #tpu.core_type<tc>, window_params = [{transform_indices = @transform_0, window_bounds = array<i64: 8, 1152>}, {pipeline_mode = #tpu.pipeline_mode<synchronous>, transform_indices = @transform_1, window_bounds = array<i64: 8, 1>}, {pipeline_mode = #tpu.pipeline_mode<synchronous>, transform_indices = @transform_2, window_bounds = array<i64: 8, 1>}, {pipeline_mode = #tpu.pipeline_mode<synchronous>, transform_indices = @transform_3, window_bounds = array<i64: 72, 8>}, {transform_indices = @transform_4, window_bounds = array<i64: 72, 1152>}]} {
    %c0 = arith.constant 0 : index
    %c0_0 = arith.constant 0 : index
    %0 = vector.load %arg1[%c0, %c0_0] : memref<8x1152xf32, #tpu.memory_space<vmem>>, vector<8x1152xf32>
    %c0_1 = arith.constant 0 : index
    %c0_2 = arith.constant 0 : index
    %1 = vector.load %arg2[%c0_1, %c0_2] : memref<8x1xf32, #tpu.memory_space<vmem>>, vector<8x1xf32>
    %2 = vector.broadcast %1 : vector<8x1xf32> to vector<8x1152xf32>
    %3 = arith.mulf %0, %2 : vector<8x1152xf32>
    %c0_3 = arith.constant 0 : index
    %c0_4 = arith.constant 0 : index
    %4 = vector.load %arg3[%c0_3, %c0_4] : memref<8x1xf32, #tpu.memory_space<vmem>>, vector<8x1xf32>
    %5 = vector.broadcast %4 : vector<8x1xf32> to vector<8x1152xf32>
    %6 = arith.addf %3, %5 : vector<8x1152xf32>
    %cst = arith.constant 0.000000e+00 : f32
    %7 = vector.broadcast %cst : f32 to vector<8x1152xf32>
    %8 = arith.cmpf ogt, %6, %7 : vector<8x1152xf32>
    %cst_5 = arith.constant 0.000000e+00 : f32
    %9 = vector.broadcast %cst_5 : f32 to vector<8x1152xf32>
    %10 = arith.minimumf %6, %9 : vector<8x1152xf32>
    %11 = math.exp %10 : vector<8x1152xf32>
    %cst_6 = arith.constant 1.000000e+00 : f32
    %12 = vector.broadcast %cst_6 : f32 to vector<8x1152xf32>
    %13 = arith.subf %11, %12 : vector<8x1152xf32>
    %14 = arith.select %8, %6, %13 : vector<8x1152xi1>, vector<8x1152xf32>
    %c0_7 = arith.constant 0 : index
    %c0_8 = arith.constant 0 : index
    %15 = vector.load %arg4[%c0_7, %c0_8] : memref<72x8xf32, #tpu.memory_space<vmem>>, vector<72x8xf32>
    %cst_9 = arith.constant dense<0.000000e+00> : vector<72x1152xf32>
    %16 = tpu.matmul %15, %14, %cst_9 {dimension_numbers = #tpu.dot_dimension_numbers<[1], [0], [0], [1], [0, 0, 1, 1], [], []>} : vector<72x8xf32>, vector<8x1152xf32>, vector<72x1152xf32> -> vector<72x1152xf32>
    %c0_10 = arith.constant 0 : index
    %c0_11 = arith.constant 0 : index
    %17 = vector.load %arg5[%c0_10, %c0_11] : memref<72x1152xf32, #tpu.memory_space<vmem>>, vector<72x1152xf32>
    tpu.vector_store %arg5[%c0_10, %c0_11], %16 {strides = array<i32>} : memref<72x1152xf32, #tpu.memory_space<vmem>>, vector<72x1152xf32>,
    return
  }
  func.func @transform_0(%arg0: i32) -> (i32, i32) {
    %c0_i32 = arith.constant 0 : i32
    %c0_i32_0 = arith.constant 0 : i32
    return %c0_i32, %arg0 : i32, i32
  }
  func.func @transform_1(%arg0: i32) -> (i32, i32) {
    %c0_i32 = arith.constant 0 : i32
    %c0_i32_0 = arith.constant 0 : i32
    %c0_i32_1 = arith.constant 0 : i32
    return %c0_i32, %c0_i32_0 : i32, i32
  }
  func.func @transform_2(%arg0: i32) -> (i32, i32) {
    %c0_i32 = arith.constant 0 : i32
    %c0_i32_0 = arith.constant 0 : i32
    %c0_i32_1 = arith.constant 0 : i32
    return %c0_i32, %c0_i32_0 : i32, i32
  }
  func.func @transform_3(%arg0: i32) -> (i32, i32) {
    %c0_i32 = arith.constant 0 : i32
    %c0_i32_0 = arith.constant 0 : i32
    %c0_i32_1 = arith.constant 0 : i32
    return %c0_i32, %c0_i32_0 : i32, i32
  }
  func.func @transform_4(%arg0: i32) -> (i32, i32) {
    %c0_i32 = arith.constant 0 : i32
    %c0_i32_0 = arith.constant 0 : i32
    return %c0_i32, %arg0 : i32, i32
  }
}

module attributes {stable_mosaic.version = 11 : i64} {
  func.func @_bnelu_mm_stats_kernel(%arg0: i32, %arg1: memref<8x1922xf32, #tpu.memory_space<vmem>>, %arg2: memref<8x1xf32, #tpu.memory_space<vmem>>, %arg3: memref<8x1xf32, #tpu.memory_space<vmem>>, %arg4: memref<8x8xf32, #tpu.memory_space<vmem>>, %arg5: memref<8x1922xf32, #tpu.memory_space<vmem>>, %arg6: memref<8x1xf32, #tpu.memory_space<vmem>>, %arg7: memref<8x1xf32, #tpu.memory_space<vmem>>) attributes {dimension_semantics = [#tpu.dimension_semantics<arbitrary>], iteration_bounds = array<i64: 1>, scalar_prefetch = 0 : i64, scratch_operands = 0 : i64, tpu.core_type = #tpu.core_type<tc>, window_params = [{pipeline_mode = #tpu.pipeline_mode<synchronous>, transform_indices = @transform_0, window_bounds = array<i64: 8, 1922>}, {pipeline_mode = #tpu.pipeline_mode<synchronous>, transform_indices = @transform_1, window_bounds = array<i64: 8, 1>}, {pipeline_mode = #tpu.pipeline_mode<synchronous>, transform_indices = @transform_2, window_bounds = array<i64: 8, 1>}, {pipeline_mode = #tpu.pipeline_mode<synchronous>, transform_indices = @transform_3, window_bounds = array<i64: 8, 8>}, {pipeline_mode = #tpu.pipeline_mode<synchronous>, transform_indices = @transform_4, window_bounds = array<i64: 8, 1922>}, {pipeline_mode = #tpu.pipeline_mode<synchronous>, transform_indices = @transform_5, window_bounds = array<i64: 8, 1>}, {pipeline_mode = #tpu.pipeline_mode<synchronous>, transform_indices = @transform_6, window_bounds = array<i64: 8, 1>}]} {
    %c0 = arith.constant 0 : index
    %c0_0 = arith.constant 0 : index
    %0 = vector.load %arg1[%c0, %c0_0] : memref<8x1922xf32, #tpu.memory_space<vmem>>, vector<8x1922xf32>
    %c0_1 = arith.constant 0 : index
    %c0_2 = arith.constant 0 : index
    %1 = vector.load %arg2[%c0_1, %c0_2] : memref<8x1xf32, #tpu.memory_space<vmem>>, vector<8x1xf32>
    %2 = vector.broadcast %1 : vector<8x1xf32> to vector<8x1922xf32>
    %3 = arith.mulf %0, %2 : vector<8x1922xf32>
    %c0_3 = arith.constant 0 : index
    %c0_4 = arith.constant 0 : index
    %4 = vector.load %arg3[%c0_3, %c0_4] : memref<8x1xf32, #tpu.memory_space<vmem>>, vector<8x1xf32>
    %5 = vector.broadcast %4 : vector<8x1xf32> to vector<8x1922xf32>
    %6 = arith.addf %3, %5 : vector<8x1922xf32>
    %cst = arith.constant 0.000000e+00 : f32
    %7 = vector.broadcast %cst : f32 to vector<8x1922xf32>
    %8 = arith.cmpf ogt, %6, %7 : vector<8x1922xf32>
    %cst_5 = arith.constant 0.000000e+00 : f32
    %9 = vector.broadcast %cst_5 : f32 to vector<8x1922xf32>
    %10 = arith.minimumf %6, %9 : vector<8x1922xf32>
    %11 = math.exp %10 : vector<8x1922xf32>
    %cst_6 = arith.constant 1.000000e+00 : f32
    %12 = vector.broadcast %cst_6 : f32 to vector<8x1922xf32>
    %13 = arith.subf %11, %12 : vector<8x1922xf32>
    %14 = arith.select %8, %6, %13 : vector<8x1922xi1>, vector<8x1922xf32>
    %c0_7 = arith.constant 0 : index
    %c0_8 = arith.constant 0 : index
    %15 = vector.load %arg4[%c0_7, %c0_8] : memref<8x8xf32, #tpu.memory_space<vmem>>, vector<8x8xf32>
    %16 = vector.extract_strided_slice %15 {offsets = [0, 0], sizes = [8, 1], strides = [1, 1]} : vector<8x8xf32> to vector<8x1xf32>
    %17 = vector.extract_strided_slice %14 {offsets = [0, 0], sizes = [1, 1922], strides = [1, 1]} : vector<8x1922xf32> to vector<1x1922xf32>
    %18 = vector.broadcast %16 : vector<8x1xf32> to vector<8x1922xf32>
    %19 = vector.broadcast %17 : vector<1x1922xf32> to vector<8x1922xf32>
    %20 = arith.mulf %18, %19 : vector<8x1922xf32>
    %21 = vector.extract_strided_slice %15 {offsets = [0, 1], sizes = [8, 1], strides = [1, 1]} : vector<8x8xf32> to vector<8x1xf32>
    %22 = vector.extract_strided_slice %14 {offsets = [1, 0], sizes = [1, 1922], strides = [1, 1]} : vector<8x1922xf32> to vector<1x1922xf32>
    %23 = vector.broadcast %21 : vector<8x1xf32> to vector<8x1922xf32>
    %24 = vector.broadcast %22 : vector<1x1922xf32> to vector<8x1922xf32>
    %25 = arith.mulf %23, %24 : vector<8x1922xf32>
    %26 = arith.addf %20, %25 : vector<8x1922xf32>
    %27 = vector.extract_strided_slice %15 {offsets = [0, 2], sizes = [8, 1], strides = [1, 1]} : vector<8x8xf32> to vector<8x1xf32>
    %28 = vector.extract_strided_slice %14 {offsets = [2, 0], sizes = [1, 1922], strides = [1, 1]} : vector<8x1922xf32> to vector<1x1922xf32>
    %29 = vector.broadcast %27 : vector<8x1xf32> to vector<8x1922xf32>
    %30 = vector.broadcast %28 : vector<1x1922xf32> to vector<8x1922xf32>
    %31 = arith.mulf %29, %30 : vector<8x1922xf32>
    %32 = arith.addf %26, %31 : vector<8x1922xf32>
    %33 = vector.extract_strided_slice %15 {offsets = [0, 3], sizes = [8, 1], strides = [1, 1]} : vector<8x8xf32> to vector<8x1xf32>
    %34 = vector.extract_strided_slice %14 {offsets = [3, 0], sizes = [1, 1922], strides = [1, 1]} : vector<8x1922xf32> to vector<1x1922xf32>
    %35 = vector.broadcast %33 : vector<8x1xf32> to vector<8x1922xf32>
    %36 = vector.broadcast %34 : vector<1x1922xf32> to vector<8x1922xf32>
    %37 = arith.mulf %35, %36 : vector<8x1922xf32>
    %38 = arith.addf %32, %37 : vector<8x1922xf32>
    %39 = vector.extract_strided_slice %15 {offsets = [0, 4], sizes = [8, 1], strides = [1, 1]} : vector<8x8xf32> to vector<8x1xf32>
    %40 = vector.extract_strided_slice %14 {offsets = [4, 0], sizes = [1, 1922], strides = [1, 1]} : vector<8x1922xf32> to vector<1x1922xf32>
    %41 = vector.broadcast %39 : vector<8x1xf32> to vector<8x1922xf32>
    %42 = vector.broadcast %40 : vector<1x1922xf32> to vector<8x1922xf32>
    %43 = arith.mulf %41, %42 : vector<8x1922xf32>
    %44 = arith.addf %38, %43 : vector<8x1922xf32>
    %45 = vector.extract_strided_slice %15 {offsets = [0, 5], sizes = [8, 1], strides = [1, 1]} : vector<8x8xf32> to vector<8x1xf32>
    %46 = vector.extract_strided_slice %14 {offsets = [5, 0], sizes = [1, 1922], strides = [1, 1]} : vector<8x1922xf32> to vector<1x1922xf32>
    %47 = vector.broadcast %45 : vector<8x1xf32> to vector<8x1922xf32>
    %48 = vector.broadcast %46 : vector<1x1922xf32> to vector<8x1922xf32>
    %49 = arith.mulf %47, %48 : vector<8x1922xf32>
    %50 = arith.addf %44, %49 : vector<8x1922xf32>
    %51 = vector.extract_strided_slice %15 {offsets = [0, 6], sizes = [8, 1], strides = [1, 1]} : vector<8x8xf32> to vector<8x1xf32>
    %52 = vector.extract_strided_slice %14 {offsets = [6, 0], sizes = [1, 1922], strides = [1, 1]} : vector<8x1922xf32> to vector<1x1922xf32>
    %53 = vector.broadcast %51 : vector<8x1xf32> to vector<8x1922xf32>
    %54 = vector.broadcast %52 : vector<1x1922xf32> to vector<8x1922xf32>
    %55 = arith.mulf %53, %54 : vector<8x1922xf32>
    %56 = arith.addf %50, %55 : vector<8x1922xf32>
    %57 = vector.extract_strided_slice %15 {offsets = [0, 7], sizes = [8, 1], strides = [1, 1]} : vector<8x8xf32> to vector<8x1xf32>
    %58 = vector.extract_strided_slice %14 {offsets = [7, 0], sizes = [1, 1922], strides = [1, 1]} : vector<8x1922xf32> to vector<1x1922xf32>
    %59 = vector.broadcast %57 : vector<8x1xf32> to vector<8x1922xf32>
    %60 = vector.broadcast %58 : vector<1x1922xf32> to vector<8x1922xf32>
    %61 = arith.mulf %59, %60 : vector<8x1922xf32>
    %62 = arith.addf %56, %61 : vector<8x1922xf32>
    %c0_9 = arith.constant 0 : index
    %c0_10 = arith.constant 0 : index
    %63 = vector.load %arg5[%c0_9, %c0_10] : memref<8x1922xf32, #tpu.memory_space<vmem>>, vector<8x1922xf32>
    tpu.vector_store %arg5[%c0_9, %c0_10], %62 {strides = array<i32>} : memref<8x1922xf32, #tpu.memory_space<vmem>>, vector<8x1922xf32>,
    %cst_11 = arith.constant dense<0.000000e+00> : vector<8xf32>
    %64 = vector.multi_reduction <add>, %62, %cst_11 [1] : vector<8x1922xf32> to vector<8xf32>
    %65 = vector.shape_cast %64 : vector<8xf32> to vector<8x1xf32>
    %c0_12 = arith.constant 0 : index
    %c0_13 = arith.constant 0 : index
    %66 = vector.load %arg6[%c0_12, %c0_13] : memref<8x1xf32, #tpu.memory_space<vmem>>, vector<8x1xf32>
    tpu.vector_store %arg6[%c0_12, %c0_13], %65 {strides = array<i32>} : memref<8x1xf32, #tpu.memory_space<vmem>>, vector<8x1xf32>,
    %67 = arith.mulf %62, %62 : vector<8x1922xf32>
    %cst_14 = arith.constant dense<0.000000e+00> : vector<8xf32>
    %68 = vector.multi_reduction <add>, %67, %cst_14 [1] : vector<8x1922xf32> to vector<8xf32>
    %69 = vector.shape_cast %68 : vector<8xf32> to vector<8x1xf32>
    %c0_15 = arith.constant 0 : index
    %c0_16 = arith.constant 0 : index
    %70 = vector.load %arg7[%c0_15, %c0_16] : memref<8x1xf32, #tpu.memory_space<vmem>>, vector<8x1xf32>
    tpu.vector_store %arg7[%c0_15, %c0_16], %69 {strides = array<i32>} : memref<8x1xf32, #tpu.memory_space<vmem>>, vector<8x1xf32>,
    return
  }
  func.func @transform_0(%arg0: i32) -> (i32, i32) {
    %c0_i32 = arith.constant 0 : i32
    %c0_i32_0 = arith.constant 0 : i32
    %c0_i32_1 = arith.constant 0 : i32
    return %c0_i32, %c0_i32_0 : i32, i32
  }
  func.func @transform_1(%arg0: i32) -> (i32, i32) {
    %c0_i32 = arith.constant 0 : i32
    %c0_i32_0 = arith.constant 0 : i32
    %c0_i32_1 = arith.constant 0 : i32
    return %c0_i32, %c0_i32_0 : i32, i32
  }
  func.func @transform_2(%arg0: i32) -> (i32, i32) {
    %c0_i32 = arith.constant 0 : i32
    %c0_i32_0 = arith.constant 0 : i32
    %c0_i32_1 = arith.constant 0 : i32
    return %c0_i32, %c0_i32_0 : i32, i32
  }
  func.func @transform_3(%arg0: i32) -> (i32, i32) {
    %c0_i32 = arith.constant 0 : i32
    %c0_i32_0 = arith.constant 0 : i32
    %c0_i32_1 = arith.constant 0 : i32
    return %c0_i32, %c0_i32_0 : i32, i32
  }
  func.func @transform_4(%arg0: i32) -> (i32, i32) {
    %c0_i32 = arith.constant 0 : i32
    %c0_i32_0 = arith.constant 0 : i32
    %c0_i32_1 = arith.constant 0 : i32
    return %c0_i32, %c0_i32_0 : i32, i32
  }
  func.func @transform_5(%arg0: i32) -> (i32, i32) {
    %c0_i32 = arith.constant 0 : i32
    %c0_i32_0 = arith.constant 0 : i32
    %c0_i32_1 = arith.constant 0 : i32
    return %c0_i32, %c0_i32_0 : i32, i32
  }
  func.func @transform_6(%arg0: i32) -> (i32, i32) {
    %c0_i32 = arith.constant 0 : i32
    %c0_i32_0 = arith.constant 0 : i32
    %c0_i32_1 = arith.constant 0 : i32
    return %c0_i32, %c0_i32_0 : i32, i32
  }
}

module attributes {stable_mosaic.version = 11 : i64} {
  func.func @_resize_add_kernel(%arg0: i32, %arg1: memref<1x8x31x31xf32, #tpu.memory_space<vmem>>, %arg2: memref<67x31xf32, #tpu.memory_space<vmem>>, %arg3: memref<31x128xf32, #tpu.memory_space<vmem>>, %arg4: memref<8x67x128xf32, #tpu.memory_space<vmem>>, %arg5: memref<1x8x67x128xf32, #tpu.memory_space<vmem>>, %arg6: memref<1x8x67x128xf32, #tpu.memory_space<vmem>>) attributes {dimension_semantics = [#tpu.dimension_semantics<parallel>], iteration_bounds = array<i64: 2>, scalar_prefetch = 0 : i64, scratch_operands = 0 : i64, tpu.core_type = #tpu.core_type<tc>, window_params = [{transform_indices = @transform_0, window_bounds = array<i64: 1, 8, 31, 31>}, {pipeline_mode = #tpu.pipeline_mode<synchronous>, transform_indices = @transform_1, window_bounds = array<i64: 67, 31>}, {pipeline_mode = #tpu.pipeline_mode<synchronous>, transform_indices = @transform_2, window_bounds = array<i64: 31, 128>}, {pipeline_mode = #tpu.pipeline_mode<synchronous>, transform_indices = @transform_3, window_bounds = array<i64: 8, 67, 128>}, {transform_indices = @transform_4, window_bounds = array<i64: 1, 8, 67, 128>}, {transform_indices = @transform_5, window_bounds = array<i64: 1, 8, 67, 128>}]} {
    %c0 = arith.constant 0 : index
    %c0_0 = arith.constant 0 : index
    %0 = vector.load %arg2[%c0, %c0_0] : memref<67x31xf32, #tpu.memory_space<vmem>>, vector<67x31xf32>
    %c0_1 = arith.constant 0 : index
    %c0_2 = arith.constant 0 : index
    %1 = vector.load %arg3[%c0_1, %c0_2] : memref<31x128xf32, #tpu.memory_space<vmem>>, vector<31x128xf32>
    %c0_3 = arith.constant 0 : index
    %c0_4 = arith.constant 0 : index
    %c0_5 = arith.constant 0 : index
    %c0_6 = arith.constant 0 : index
    %2 = vector.load %arg1[%c0_3, %c0_4, %c0_5, %c0_6] : memref<1x8x31x31xf32, #tpu.memory_space<vmem>>, vector<1x1x31x31xf32>
    %3 = vector.shape_cast %2 : vector<1x1x31x31xf32> to vector<31x31xf32>
    %cst = arith.constant dense<0.000000e+00> : vector<31x128xf32>
    %4 = tpu.matmul %3, %1, %cst {dimension_numbers = #tpu.dot_dimension_numbers<[1], [0], [0], [1], [0, 0, 1, 1], [], []>} : vector<31x31xf32>, vector<31x128xf32>, vector<31x128xf32> -> vector<31x128xf32>
    %cst_7 = arith.constant dense<0.000000e+00> : vector<67x128xf32>
    %5 = tpu.matmul %0, %4, %cst_7 {dimension_numbers = #tpu.dot_dimension_numbers<[1], [0], [0], [1], [0, 0, 1, 1], [], []>} : vector<67x31xf32>, vector<31x128xf32>, vector<67x128xf32> -> vector<67x128xf32>
    %c0_8 = arith.constant 0 : index
    %c0_9 = arith.constant 0 : index
    %c0_10 = arith.constant 0 : index
    %6 = vector.load %arg4[%c0_8, %c0_9, %c0_10] : memref<8x67x128xf32, #tpu.memory_space<vmem>>, vector<1x67x128xf32>
    %7 = vector.shape_cast %6 : vector<1x67x128xf32> to vector<67x128xf32>
    %8 = arith.addf %5, %7 : vector<67x128xf32>
    %c0_11 = arith.constant 0 : index
    %c0_12 = arith.constant 0 : index
    %c0_13 = arith.constant 0 : index
    %c0_14 = arith.constant 0 : index
    %9 = vector.load %arg5[%c0_11, %c0_12, %c0_13, %c0_14] : memref<1x8x67x128xf32, #tpu.memory_space<vmem>>, vector<1x1x67x128xf32>
    %10 = vector.shape_cast %9 : vector<1x1x67x128xf32> to vector<67x128xf32>
    %cst_15 = arith.constant 1.000000e-01 : f32
    %11 = vector.broadcast %cst_15 : f32 to vector<67x128xf32>
    %12 = arith.mulf %11, %10 : vector<67x128xf32>
    %13 = arith.addf %8, %12 : vector<67x128xf32>
    %c0_16 = arith.constant 0 : index
    %c0_17 = arith.constant 0 : index
    %c0_18 = arith.constant 0 : index
    %c0_19 = arith.constant 0 : index
    %14 = vector.load %arg6[%c0_16, %c0_17, %c0_18, %c0_19] : memref<1x8x67x128xf32, #tpu.memory_space<vmem>>, vector<1x1x67x128xf32>
    %15 = vector.shape_cast %14 : vector<1x1x67x128xf32> to vector<67x128xf32>
    %16 = vector.shape_cast %13 : vector<67x128xf32> to vector<1x1x67x128xf32>
    tpu.vector_store %arg6[%c0_16, %c0_17, %c0_18, %c0_19], %16 {strides = array<i32>} : memref<1x8x67x128xf32, #tpu.memory_space<vmem>>, vector<1x1x67x128xf32>,
    %c0_20 = arith.constant 0 : index
    %c1 = arith.constant 1 : index
    %c0_21 = arith.constant 0 : index
    %c0_22 = arith.constant 0 : index
    %17 = vector.load %arg1[%c0_20, %c1, %c0_21, %c0_22] : memref<1x8x31x31xf32, #tpu.memory_space<vmem>>, vector<1x1x31x31xf32>
    %18 = vector.shape_cast %17 : vector<1x1x31x31xf32> to vector<31x31xf32>
    %cst_23 = arith.constant dense<0.000000e+00> : vector<31x128xf32>
    %19 = tpu.matmul %18, %1, %cst_23 {dimension_numbers = #tpu.dot_dimension_numbers<[1], [0], [0], [1], [0, 0, 1, 1], [], []>} : vector<31x31xf32>, vector<31x128xf32>, vector<31x128xf32> -> vector<31x128xf32>
    %cst_24 = arith.constant dense<0.000000e+00> : vector<67x128xf32>
    %20 = tpu.matmul %0, %19, %cst_24 {dimension_numbers = #tpu.dot_dimension_numbers<[1], [0], [0], [1], [0, 0, 1, 1], [], []>} : vector<67x31xf32>, vector<31x128xf32>, vector<67x128xf32> -> vector<67x128xf32>
    %c1_25 = arith.constant 1 : index
    %c0_26 = arith.constant 0 : index
    %c0_27 = arith.constant 0 : index
    %21 = vector.load %arg4[%c1_25, %c0_26, %c0_27] : memref<8x67x128xf32, #tpu.memory_space<vmem>>, vector<1x67x128xf32>
    %22 = vector.shape_cast %21 : vector<1x67x128xf32> to vector<67x128xf32>
    %23 = arith.addf %20, %22 : vector<67x128xf32>
    %c0_28 = arith.constant 0 : index
    %c1_29 = arith.constant 1 : index
    %c0_30 = arith.constant 0 : index
    %c0_31 = arith.constant 0 : index
    %24 = vector.load %arg5[%c0_28, %c1_29, %c0_30, %c0_31] : memref<1x8x67x128xf32, #tpu.memory_space<vmem>>, vector<1x1x67x128xf32>
    %25 = vector.shape_cast %24 : vector<1x1x67x128xf32> to vector<67x128xf32>
    %cst_32 = arith.constant 1.000000e-01 : f32
    %26 = vector.broadcast %cst_32 : f32 to vector<67x128xf32>
    %27 = arith.mulf %26, %25 : vector<67x128xf32>
    %28 = arith.addf %23, %27 : vector<67x128xf32>
    %c0_33 = arith.constant 0 : index
    %c1_34 = arith.constant 1 : index
    %c0_35 = arith.constant 0 : index
    %c0_36 = arith.constant 0 : index
    %29 = vector.load %arg6[%c0_33, %c1_34, %c0_35, %c0_36] : memref<1x8x67x128xf32, #tpu.memory_space<vmem>>, vector<1x1x67x128xf32>
    %30 = vector.shape_cast %29 : vector<1x1x67x128xf32> to vector<67x128xf32>
    %31 = vector.shape_cast %28 : vector<67x128xf32> to vector<1x1x67x128xf32>
    tpu.vector_store %arg6[%c0_33, %c1_34, %c0_35, %c0_36], %31 {strides = array<i32>} : memref<1x8x67x128xf32, #tpu.memory_space<vmem>>, vector<1x1x67x128xf32>,
    %c0_37 = arith.constant 0 : index
    %c2 = arith.constant 2 : index
    %c0_38 = arith.constant 0 : index
    %c0_39 = arith.constant 0 : index
    %32 = vector.load %arg1[%c0_37, %c2, %c0_38, %c0_39] : memref<1x8x31x31xf32, #tpu.memory_space<vmem>>, vector<1x1x31x31xf32>
    %33 = vector.shape_cast %32 : vector<1x1x31x31xf32> to vector<31x31xf32>
    %cst_40 = arith.constant dense<0.000000e+00> : vector<31x128xf32>
    %34 = tpu.matmul %33, %1, %cst_40 {dimension_numbers = #tpu.dot_dimension_numbers<[1], [0], [0], [1], [0, 0, 1, 1], [], []>} : vector<31x31xf32>, vector<31x128xf32>, vector<31x128xf32> -> vector<31x128xf32>
    %cst_41 = arith.constant dense<0.000000e+00> : vector<67x128xf32>
    %35 = tpu.matmul %0, %34, %cst_41 {dimension_numbers = #tpu.dot_dimension_numbers<[1], [0], [0], [1], [0, 0, 1, 1], [], []>} : vector<67x31xf32>, vector<31x128xf32>, vector<67x128xf32> -> vector<67x128xf32>
    %c2_42 = arith.constant 2 : index
    %c0_43 = arith.constant 0 : index
    %c0_44 = arith.constant 0 : index
    %36 = vector.load %arg4[%c2_42, %c0_43, %c0_44] : memref<8x67x128xf32, #tpu.memory_space<vmem>>, vector<1x67x128xf32>
    %37 = vector.shape_cast %36 : vector<1x67x128xf32> to vector<67x128xf32>
    %38 = arith.addf %35, %37 : vector<67x128xf32>
    %c0_45 = arith.constant 0 : index
    %c2_46 = arith.constant 2 : index
    %c0_47 = arith.constant 0 : index
    %c0_48 = arith.constant 0 : index
    %39 = vector.load %arg5[%c0_45, %c2_46, %c0_47, %c0_48] : memref<1x8x67x128xf32, #tpu.memory_space<vmem>>, vector<1x1x67x128xf32>
    %40 = vector.shape_cast %39 : vector<1x1x67x128xf32> to vector<67x128xf32>
    %cst_49 = arith.constant 1.000000e-01 : f32
    %41 = vector.broadcast %cst_49 : f32 to vector<67x128xf32>
    %42 = arith.mulf %41, %40 : vector<67x128xf32>
    %43 = arith.addf %38, %42 : vector<67x128xf32>
    %c0_50 = arith.constant 0 : index
    %c2_51 = arith.constant 2 : index
    %c0_52 = arith.constant 0 : index
    %c0_53 = arith.constant 0 : index
    %44 = vector.load %arg6[%c0_50, %c2_51, %c0_52, %c0_53] : memref<1x8x67x128xf32, #tpu.memory_space<vmem>>, vector<1x1x67x128xf32>
    %45 = vector.shape_cast %44 : vector<1x1x67x128xf32> to vector<67x128xf32>
    %46 = vector.shape_cast %43 : vector<67x128xf32> to vector<1x1x67x128xf32>
    tpu.vector_store %arg6[%c0_50, %c2_51, %c0_52, %c0_53], %46 {strides = array<i32>} : memref<1x8x67x128xf32, #tpu.memory_space<vmem>>, vector<1x1x67x128xf32>,
    %c0_54 = arith.constant 0 : index
    %c3 = arith.constant 3 : index
    %c0_55 = arith.constant 0 : index
    %c0_56 = arith.constant 0 : index
    %47 = vector.load %arg1[%c0_54, %c3, %c0_55, %c0_56] : memref<1x8x31x31xf32, #tpu.memory_space<vmem>>, vector<1x1x31x31xf32>
    %48 = vector.shape_cast %47 : vector<1x1x31x31xf32> to vector<31x31xf32>
    %cst_57 = arith.constant dense<0.000000e+00> : vector<31x128xf32>
    %49 = tpu.matmul %48, %1, %cst_57 {dimension_numbers = #tpu.dot_dimension_numbers<[1], [0], [0], [1], [0, 0, 1, 1], [], []>} : vector<31x31xf32>, vector<31x128xf32>, vector<31x128xf32> -> vector<31x128xf32>
    %cst_58 = arith.constant dense<0.000000e+00> : vector<67x128xf32>
    %50 = tpu.matmul %0, %49, %cst_58 {dimension_numbers = #tpu.dot_dimension_numbers<[1], [0], [0], [1], [0, 0, 1, 1], [], []>} : vector<67x31xf32>, vector<31x128xf32>, vector<67x128xf32> -> vector<67x128xf32>
    %c3_59 = arith.constant 3 : index
    %c0_60 = arith.constant 0 : index
    %c0_61 = arith.constant 0 : index
    %51 = vector.load %arg4[%c3_59, %c0_60, %c0_61] : memref<8x67x128xf32, #tpu.memory_space<vmem>>, vector<1x67x128xf32>
    %52 = vector.shape_cast %51 : vector<1x67x128xf32> to vector<67x128xf32>
    %53 = arith.addf %50, %52 : vector<67x128xf32>
    %c0_62 = arith.constant 0 : index
    %c3_63 = arith.constant 3 : index
    %c0_64 = arith.constant 0 : index
    %c0_65 = arith.constant 0 : index
    %54 = vector.load %arg5[%c0_62, %c3_63, %c0_64, %c0_65] : memref<1x8x67x128xf32, #tpu.memory_space<vmem>>, vector<1x1x67x128xf32>
    %55 = vector.shape_cast %54 : vector<1x1x67x128xf32> to vector<67x128xf32>
    %cst_66 = arith.constant 1.000000e-01 : f32
    %56 = vector.broadcast %cst_66 : f32 to vector<67x128xf32>
    %57 = arith.mulf %56, %55 : vector<67x128xf32>
    %58 = arith.addf %53, %57 : vector<67x128xf32>
    %c0_67 = arith.constant 0 : index
    %c3_68 = arith.constant 3 : index
    %c0_69 = arith.constant 0 : index
    %c0_70 = arith.constant 0 : index
    %59 = vector.load %arg6[%c0_67, %c3_68, %c0_69, %c0_70] : memref<1x8x67x128xf32, #tpu.memory_space<vmem>>, vector<1x1x67x128xf32>
    %60 = vector.shape_cast %59 : vector<1x1x67x128xf32> to vector<67x128xf32>
    %61 = vector.shape_cast %58 : vector<67x128xf32> to vector<1x1x67x128xf32>
    tpu.vector_store %arg6[%c0_67, %c3_68, %c0_69, %c0_70], %61 {strides = array<i32>} : memref<1x8x67x128xf32, #tpu.memory_space<vmem>>, vector<1x1x67x128xf32>,
    %c0_71 = arith.constant 0 : index
    %c4 = arith.constant 4 : index
    %c0_72 = arith.constant 0 : index
    %c0_73 = arith.constant 0 : index
    %62 = vector.load %arg1[%c0_71, %c4, %c0_72, %c0_73] : memref<1x8x31x31xf32, #tpu.memory_space<vmem>>, vector<1x1x31x31xf32>
    %63 = vector.shape_cast %62 : vector<1x1x31x31xf32> to vector<31x31xf32>
    %cst_74 = arith.constant dense<0.000000e+00> : vector<31x128xf32>
    %64 = tpu.matmul %63, %1, %cst_74 {dimension_numbers = #tpu.dot_dimension_numbers<[1], [0], [0], [1], [0, 0, 1, 1], [], []>} : vector<31x31xf32>, vector<31x128xf32>, vector<31x128xf32> -> vector<31x128xf32>
    %cst_75 = arith.constant dense<0.000000e+00> : vector<67x128xf32>
    %65 = tpu.matmul %0, %64, %cst_75 {dimension_numbers = #tpu.dot_dimension_numbers<[1], [0], [0], [1], [0, 0, 1, 1], [], []>} : vector<67x31xf32>, vector<31x128xf32>, vector<67x128xf32> -> vector<67x128xf32>
    %c4_76 = arith.constant 4 : index
    %c0_77 = arith.constant 0 : index
    %c0_78 = arith.constant 0 : index
    %66 = vector.load %arg4[%c4_76, %c0_77, %c0_78] : memref<8x67x128xf32, #tpu.memory_space<vmem>>, vector<1x67x128xf32>
    %67 = vector.shape_cast %66 : vector<1x67x128xf32> to vector<67x128xf32>
    %68 = arith.addf %65, %67 : vector<67x128xf32>
    %c0_79 = arith.constant 0 : index
    %c4_80 = arith.constant 4 : index
    %c0_81 = arith.constant 0 : index
    %c0_82 = arith.constant 0 : index
    %69 = vector.load %arg5[%c0_79, %c4_80, %c0_81, %c0_82] : memref<1x8x67x128xf32, #tpu.memory_space<vmem>>, vector<1x1x67x128xf32>
    %70 = vector.shape_cast %69 : vector<1x1x67x128xf32> to vector<67x128xf32>
    %cst_83 = arith.constant 1.000000e-01 : f32
    %71 = vector.broadcast %cst_83 : f32 to vector<67x128xf32>
    %72 = arith.mulf %71, %70 : vector<67x128xf32>
    %73 = arith.addf %68, %72 : vector<67x128xf32>
    %c0_84 = arith.constant 0 : index
    %c4_85 = arith.constant 4 : index
    %c0_86 = arith.constant 0 : index
    %c0_87 = arith.constant 0 : index
    %74 = vector.load %arg6[%c0_84, %c4_85, %c0_86, %c0_87] : memref<1x8x67x128xf32, #tpu.memory_space<vmem>>, vector<1x1x67x128xf32>
    %75 = vector.shape_cast %74 : vector<1x1x67x128xf32> to vector<67x128xf32>
    %76 = vector.shape_cast %73 : vector<67x128xf32> to vector<1x1x67x128xf32>
    tpu.vector_store %arg6[%c0_84, %c4_85, %c0_86, %c0_87], %76 {strides = array<i32>} : memref<1x8x67x128xf32, #tpu.memory_space<vmem>>, vector<1x1x67x128xf32>,
    %c0_88 = arith.constant 0 : index
    %c5 = arith.constant 5 : index
    %c0_89 = arith.constant 0 : index
    %c0_90 = arith.constant 0 : index
    %77 = vector.load %arg1[%c0_88, %c5, %c0_89, %c0_90] : memref<1x8x31x31xf32, #tpu.memory_space<vmem>>, vector<1x1x31x31xf32>
    %78 = vector.shape_cast %77 : vector<1x1x31x31xf32> to vector<31x31xf32>
    %cst_91 = arith.constant dense<0.000000e+00> : vector<31x128xf32>
    %79 = tpu.matmul %78, %1, %cst_91 {dimension_numbers = #tpu.dot_dimension_numbers<[1], [0], [0], [1], [0, 0, 1, 1], [], []>} : vector<31x31xf32>, vector<31x128xf32>, vector<31x128xf32> -> vector<31x128xf32>
    %cst_92 = arith.constant dense<0.000000e+00> : vector<67x128xf32>
    %80 = tpu.matmul %0, %79, %cst_92 {dimension_numbers = #tpu.dot_dimension_numbers<[1], [0], [0], [1], [0, 0, 1, 1], [], []>} : vector<67x31xf32>, vector<31x128xf32>, vector<67x128xf32> -> vector<67x128xf32>
    %c5_93 = arith.constant 5 : index
    %c0_94 = arith.constant 0 : index
    %c0_95 = arith.constant 0 : index
    %81 = vector.load %arg4[%c5_93, %c0_94, %c0_95] : memref<8x67x128xf32, #tpu.memory_space<vmem>>, vector<1x67x128xf32>
    %82 = vector.shape_cast %81 : vector<1x67x128xf32> to vector<67x128xf32>
    %83 = arith.addf %80, %82 : vector<67x128xf32>
    %c0_96 = arith.constant 0 : index
    %c5_97 = arith.constant 5 : index
    %c0_98 = arith.constant 0 : index
    %c0_99 = arith.constant 0 : index
    %84 = vector.load %arg5[%c0_96, %c5_97, %c0_98, %c0_99] : memref<1x8x67x128xf32, #tpu.memory_space<vmem>>, vector<1x1x67x128xf32>
    %85 = vector.shape_cast %84 : vector<1x1x67x128xf32> to vector<67x128xf32>
    %cst_100 = arith.constant 1.000000e-01 : f32
    %86 = vector.broadcast %cst_100 : f32 to vector<67x128xf32>
    %87 = arith.mulf %86, %85 : vector<67x128xf32>
    %88 = arith.addf %83, %87 : vector<67x128xf32>
    %c0_101 = arith.constant 0 : index
    %c5_102 = arith.constant 5 : index
    %c0_103 = arith.constant 0 : index
    %c0_104 = arith.constant 0 : index
    %89 = vector.load %arg6[%c0_101, %c5_102, %c0_103, %c0_104] : memref<1x8x67x128xf32, #tpu.memory_space<vmem>>, vector<1x1x67x128xf32>
    %90 = vector.shape_cast %89 : vector<1x1x67x128xf32> to vector<67x128xf32>
    %91 = vector.shape_cast %88 : vector<67x128xf32> to vector<1x1x67x128xf32>
    tpu.vector_store %arg6[%c0_101, %c5_102, %c0_103, %c0_104], %91 {strides = array<i32>} : memref<1x8x67x128xf32, #tpu.memory_space<vmem>>, vector<1x1x67x128xf32>,
    %c0_105 = arith.constant 0 : index
    %c6 = arith.constant 6 : index
    %c0_106 = arith.constant 0 : index
    %c0_107 = arith.constant 0 : index
    %92 = vector.load %arg1[%c0_105, %c6, %c0_106, %c0_107] : memref<1x8x31x31xf32, #tpu.memory_space<vmem>>, vector<1x1x31x31xf32>
    %93 = vector.shape_cast %92 : vector<1x1x31x31xf32> to vector<31x31xf32>
    %cst_108 = arith.constant dense<0.000000e+00> : vector<31x128xf32>
    %94 = tpu.matmul %93, %1, %cst_108 {dimension_numbers = #tpu.dot_dimension_numbers<[1], [0], [0], [1], [0, 0, 1, 1], [], []>} : vector<31x31xf32>, vector<31x128xf32>, vector<31x128xf32> -> vector<31x128xf32>
    %cst_109 = arith.constant dense<0.000000e+00> : vector<67x128xf32>
    %95 = tpu.matmul %0, %94, %cst_109 {dimension_numbers = #tpu.dot_dimension_numbers<[1], [0], [0], [1], [0, 0, 1, 1], [], []>} : vector<67x31xf32>, vector<31x128xf32>, vector<67x128xf32> -> vector<67x128xf32>
    %c6_110 = arith.constant 6 : index
    %c0_111 = arith.constant 0 : index
    %c0_112 = arith.constant 0 : index
    %96 = vector.load %arg4[%c6_110, %c0_111, %c0_112] : memref<8x67x128xf32, #tpu.memory_space<vmem>>, vector<1x67x128xf32>
    %97 = vector.shape_cast %96 : vector<1x67x128xf32> to vector<67x128xf32>
    %98 = arith.addf %95, %97 : vector<67x128xf32>
    %c0_113 = arith.constant 0 : index
    %c6_114 = arith.constant 6 : index
    %c0_115 = arith.constant 0 : index
    %c0_116 = arith.constant 0 : index
    %99 = vector.load %arg5[%c0_113, %c6_114, %c0_115, %c0_116] : memref<1x8x67x128xf32, #tpu.memory_space<vmem>>, vector<1x1x67x128xf32>
    %100 = vector.shape_cast %99 : vector<1x1x67x128xf32> to vector<67x128xf32>
    %cst_117 = arith.constant 1.000000e-01 : f32
    %101 = vector.broadcast %cst_117 : f32 to vector<67x128xf32>
    %102 = arith.mulf %101, %100 : vector<67x128xf32>
    %103 = arith.addf %98, %102 : vector<67x128xf32>
    %c0_118 = arith.constant 0 : index
    %c6_119 = arith.constant 6 : index
    %c0_120 = arith.constant 0 : index
    %c0_121 = arith.constant 0 : index
    %104 = vector.load %arg6[%c0_118, %c6_119, %c0_120, %c0_121] : memref<1x8x67x128xf32, #tpu.memory_space<vmem>>, vector<1x1x67x128xf32>
    %105 = vector.shape_cast %104 : vector<1x1x67x128xf32> to vector<67x128xf32>
    %106 = vector.shape_cast %103 : vector<67x128xf32> to vector<1x1x67x128xf32>
    tpu.vector_store %arg6[%c0_118, %c6_119, %c0_120, %c0_121], %106 {strides = array<i32>} : memref<1x8x67x128xf32, #tpu.memory_space<vmem>>, vector<1x1x67x128xf32>,
    %c0_122 = arith.constant 0 : index
    %c7 = arith.constant 7 : index
    %c0_123 = arith.constant 0 : index
    %c0_124 = arith.constant 0 : index
    %107 = vector.load %arg1[%c0_122, %c7, %c0_123, %c0_124] : memref<1x8x31x31xf32, #tpu.memory_space<vmem>>, vector<1x1x31x31xf32>
    %108 = vector.shape_cast %107 : vector<1x1x31x31xf32> to vector<31x31xf32>
    %cst_125 = arith.constant dense<0.000000e+00> : vector<31x128xf32>
    %109 = tpu.matmul %108, %1, %cst_125 {dimension_numbers = #tpu.dot_dimension_numbers<[1], [0], [0], [1], [0, 0, 1, 1], [], []>} : vector<31x31xf32>, vector<31x128xf32>, vector<31x128xf32> -> vector<31x128xf32>
    %cst_126 = arith.constant dense<0.000000e+00> : vector<67x128xf32>
    %110 = tpu.matmul %0, %109, %cst_126 {dimension_numbers = #tpu.dot_dimension_numbers<[1], [0], [0], [1], [0, 0, 1, 1], [], []>} : vector<67x31xf32>, vector<31x128xf32>, vector<67x128xf32> -> vector<67x128xf32>
    %c7_127 = arith.constant 7 : index
    %c0_128 = arith.constant 0 : index
    %c0_129 = arith.constant 0 : index
    %111 = vector.load %arg4[%c7_127, %c0_128, %c0_129] : memref<8x67x128xf32, #tpu.memory_space<vmem>>, vector<1x67x128xf32>
    %112 = vector.shape_cast %111 : vector<1x67x128xf32> to vector<67x128xf32>
    %113 = arith.addf %110, %112 : vector<67x128xf32>
    %c0_130 = arith.constant 0 : index
    %c7_131 = arith.constant 7 : index
    %c0_132 = arith.constant 0 : index
    %c0_133 = arith.constant 0 : index
    %114 = vector.load %arg5[%c0_130, %c7_131, %c0_132, %c0_133] : memref<1x8x67x128xf32, #tpu.memory_space<vmem>>, vector<1x1x67x128xf32>
    %115 = vector.shape_cast %114 : vector<1x1x67x128xf32> to vector<67x128xf32>
    %cst_134 = arith.constant 1.000000e-01 : f32
    %116 = vector.broadcast %cst_134 : f32 to vector<67x128xf32>
    %117 = arith.mulf %116, %115 : vector<67x128xf32>
    %118 = arith.addf %113, %117 : vector<67x128xf32>
    %c0_135 = arith.constant 0 : index
    %c7_136 = arith.constant 7 : index
    %c0_137 = arith.constant 0 : index
    %c0_138 = arith.constant 0 : index
    %119 = vector.load %arg6[%c0_135, %c7_136, %c0_137, %c0_138] : memref<1x8x67x128xf32, #tpu.memory_space<vmem>>, vector<1x1x67x128xf32>
    %120 = vector.shape_cast %119 : vector<1x1x67x128xf32> to vector<67x128xf32>
    %121 = vector.shape_cast %118 : vector<67x128xf32> to vector<1x1x67x128xf32>
    tpu.vector_store %arg6[%c0_135, %c7_136, %c0_137, %c0_138], %121 {strides = array<i32>} : memref<1x8x67x128xf32, #tpu.memory_space<vmem>>, vector<1x1x67x128xf32>,
    return
  }
  func.func @transform_0(%arg0: i32) -> (i32, i32, i32, i32) {
    %c0_i32 = arith.constant 0 : i32
    %c0_i32_0 = arith.constant 0 : i32
    %c0_i32_1 = arith.constant 0 : i32
    %c0_i32_2 = arith.constant 0 : i32
    return %arg0, %c0_i32, %c0_i32_0, %c0_i32_1 : i32, i32, i32, i32
  }
  func.func @transform_1(%arg0: i32) -> (i32, i32) {
    %c0_i32 = arith.constant 0 : i32
    %c0_i32_0 = arith.constant 0 : i32
    %c0_i32_1 = arith.constant 0 : i32
    return %c0_i32, %c0_i32_0 : i32, i32
  }
  func.func @transform_2(%arg0: i32) -> (i32, i32) {
    %c0_i32 = arith.constant 0 : i32
    %c0_i32_0 = arith.constant 0 : i32
    %c0_i32_1 = arith.constant 0 : i32
    return %c0_i32, %c0_i32_0 : i32, i32
  }
  func.func @transform_3(%arg0: i32) -> (i32, i32, i32) {
    %c0_i32 = arith.constant 0 : i32
    %c0_i32_0 = arith.constant 0 : i32
    %c0_i32_1 = arith.constant 0 : i32
    %c0_i32_2 = arith.constant 0 : i32
    return %c0_i32, %c0_i32_0, %c0_i32_1 : i32, i32, i32
  }
  func.func @transform_4(%arg0: i32) -> (i32, i32, i32, i32) {
    %c0_i32 = arith.constant 0 : i32
    %c0_i32_0 = arith.constant 0 : i32
    %c0_i32_1 = arith.constant 0 : i32
    %c0_i32_2 = arith.constant 0 : i32
    return %arg0, %c0_i32, %c0_i32_0, %c0_i32_1 : i32, i32, i32, i32
  }
  func.func @transform_5(%arg0: i32) -> (i32, i32, i32, i32) {
    %c0_i32 = arith.constant 0 : i32
    %c0_i32_0 = arith.constant 0 : i32
    %c0_i32_1 = arith.constant 0 : i32
    %c0_i32_2 = arith.constant 0 : i32
    return %arg0, %c0_i32, %c0_i32_0, %c0_i32_1 : i32, i32, i32, i32
  }
}

</mosaic_0001>

<bundles_post_ra>
// kernel: basic_decoder_block_forward.6
= control target key start
LH: loop header
LB: loop body
LE: loop exit
PB: predicated region body
PF: predicated region fallthrough
CT: control target
= control target key end

     0   :  { %vm18_vm0 = vcmask 1043456   ;;  %vm28_vm1 = vcmask 3072   ;;  %s93_s0 = inlined_call_operand.vmem [shape: f32[4,512], index: 0, kind: input, shape index: {}]   ;;  %s94_s1 = inlined_call_operand.vmem [shape: f32[4,1], index: 1, kind: output, shape index: {0}]   ;;  %s95_s2 = inlined_call_operand.vmem [shape: f32[4,1], index: 2, kind: output, shape index: {1}]  }
   0x1   :  { %v10_v0 = vld [vmem:[%s93_s0] sm:$0xff]  ;;  %v11_v1 = vld [vmem:[%s93_s0 + $0x8] sm:$0xff] }
   0x2   :  { %v14_v2 = vcombine.high %v10_v0, %v10_v0  ;;  %v15_v3 = vcombine.high %v11_v1, %v11_v1  ;;  %v19_v4 = vsel %vm18_vm0, %v10_v0, 0.0  ;;  %v30_v5 = vmul.f32 %v10_v0, %v10_v0 }
   0x3   :  { %v31_v6 = vmul.f32 %v11_v1, %v11_v1  ;;  %v22_v8 = vsel %vm18_vm0, %v11_v1, 0.0 }
   0x4   :  { %v20_v7 = vsel %vm18_vm0, %v14_v2, 0.0  ;;  %v34_v10 = vcombine.high %v30_v5, %v30_v5  ;;  %v38_v12 = vsel %vm18_vm0, %v30_v5, 0.0  ;;  %v24_v13 = vsel %vm18_vm0, %v15_v3, 0.0 }
   0x5   :  { %v21_v9 = vadd.f32 %v20_v7, %v19_v4  ;;  %v35_v11 = vcombine.high %v31_v6, %v31_v6  ;;  %v41_v16 = vsel %vm18_vm0, %v31_v6, 0.0 }
   0x6   :  { %v39_v15 = vsel %vm18_vm0, %v34_v10, 0.0 }
   0x7   :  { %v23_v14 = vadd.f32 %v22_v8, %v21_v9  ;;  %v40_v17 = vadd.f32 %v39_v15, %v38_v12  ;;  %v43_v19 = vsel %vm18_vm0, %v35_v11, 0.0 }
   0x9   :  { %v25_v18 = vadd.f32 %v24_v13, %v23_v14  ;;  %v42_v20 = vadd.f32 %v41_v16, %v40_v17 }
   0xb   :  { %26 = vadd.xlane.f32.xlu0 %v25_v18  ;;  %v44_v21 = vadd.f32 %v43_v19, %v42_v20 }
   0xf   :  { %45 = vadd.xlane.f32.xlu0 %v44_v21 }
  0x98   :  { %v27_v22 = vpop.xlane.xlu0 %26 }
  0x99   :  { %29 = vst.msk [vmem:[%s94_s1] sm:$0xf] %vm28_vm1, %v27_v22 }
  0x9c   :  { %v46_v23 = vpop.xlane.xlu0 %45 }
  0x9d   :  { %47 = vst.msk [vmem:[%s95_s2] sm:$0xf] %vm28_vm1, %v46_v23 }

// kernel: basic_decoder_block_forward.7
= control target key start
LH: loop header
LB: loop body
LE: loop exit
PB: predicated region body
PF: predicated region fallthrough
CT: control target
= control target key end

     0   :  { %v915_v0 = vmov 0   ;;  %v916_v12 = vmov 2   ;;  %v917_v13 = vmov 1   ;;  %v918_v14 = vmov 3   ;;  %s1910_s3 = inlined_call_operand.vmem [shape: f32[72,4], index: 3, kind: input, shape index: {}]   ;;  %s1911_s1 = inlined_call_operand.vmem [shape: f32[4,1], index: 1, kind: input, shape index: {}]   ;;  %s1912_s2 = inlined_call_operand.vmem [shape: f32[4,1], index: 2, kind: input, shape index: {}]   ;;  %s1913_s4 = inlined_call_operand.vmem [shape: f32[8,4], index: 4, kind: input, shape index: {}]   ;;  %s1914_s0 = inlined_call_operand.vmem [shape: f32[4,512], index: 0, kind: input, shape index: {}]   ;;  %s1915_s6 = inlined_call_operand.vmem [shape: f32[8,512], index: 6, kind: output, shape index: {1}]   ;;  %s1916_s5 = inlined_call_operand.vmem [shape: f32[72,512], index: 5, kind: output, shape index: {0}]   ;;  %s1917_s7 = inlined_call_operand.vmem [shape: f32[8,1], index: 7, kind: output, shape index: {2}]   ;;  %s1918_s8 = inlined_call_operand.vmem [shape: f32[8,1], index: 8, kind: output, shape index: {3}]  }
   0x1   :  { %901 = vset.pattern.permute.xlu1 %v915_v0  ;;  %900 = vset.pattern.permute.xlu0 %v915_v0  ;;  %v68_v1 = vld [vmem:[%s1910_s3] sm:$0xff]  ;;  %v69_v3 = vld [vmem:[%s1910_s3 + $0x8] sm:$0xff]  ;;  %v71_v5 = vld [vmem:[%s1910_s3 + $0x18] sm:$0xff]  ;;  %v919_v16 = vmov 839922192   ;;  %v34_v18 = vlaneseq  ;;  %vm865_vm2 = vcmask 7168  }
   0x2   :  { %v26_v2 = vld [vmem:[%s1911_s1] sm:$0xf]  ;;  %79 = vperm.xlu1 %901, %v68_v1   ;;  %v70_v6 = vld [vmem:[%s1910_s3 + $0x10] sm:$0xff]  ;;  %v73_v7 = vld [vmem:[%s1910_s3 + $0x28] sm:$0xff]  ;;  %v32_v17 = vunpack.c.l.s4 %v919_v16 }
   0x3   :  { %29 = vperm.xlu0 %900, %v26_v2   ;;  %v41_v4 = vld [vmem:[%s1912_s2] sm:$0xf]  ;;  %v74_v10 = vld [vmem:[%s1910_s3 + $0x30] sm:$0xff]  ;;  %v998_v11 = vld [vmem:[%s1910_s3 + $0x38] sm:$0xff]  ;;  %v35_v20 = vshrl.u32 %v34_v18, 7 }
   0x4   :  { %v72_v8 = vld [vmem:[%s1910_s3 + $0x20] sm:$0xff]  ;;  %1924 = vst [vmem:[#allocation2_spill] sm:$0xff] %v998_v11  ;;  %v33_v19 = vunpack.c.0.s8 %v32_v17  ;;  %v25_v26 = vld [vmem:[%s1914_s0 + $0x8] sm:$0xff] }
   0x5   :  { %v664_v9 = vld [vmem:[%s1913_s4] sm:$0xff]  ;;  %v1031_v38 = vsub.s32 0, %v35_v20  ;;  %v1033_v41 = vsub.s32 4, %v35_v20  ;;  %v1035_v42 = vsub.s32 2, %v35_v20  ;;  %v1041_v45 = vsub.s32 6, %v35_v20 }
   0x6   :  { %84 = vperm.xlu1 %901, %v69_v3   ;;  %v1004_v15 = vld [vmem:[%s1910_s3 + $0x40] sm:$0xff]  ;;  %v36_v21 = vsub.s32 %v33_v19, %v35_v20  ;;  %v1043_v46 = vsub.s32 1, %v35_v20  ;;  %v1045_v47 = vsub.s32 5, %v35_v20  ;;  %v1047_v48 = vsub.s32 3, %v35_v20 }
   0x7   :  { %44 = vperm.xlu0 %900, %v41_v4   ;;  %1925 = vst [vmem:[#allocation3_spill] sm:$0xff] %v1004_v15  ;;  %v24_v25 = vld [vmem:[%s1914_s0] sm:$0xff]  ;;  %v1049_v49 = vsub.s32 7, %v35_v20  ;;  %v683_v52 = vrot.slane %v25_v26, %v1031_v38  ;;  %v687_v53 = vrot.slane %v25_v26, %v1033_v41  ;;  %v775_v57 = vrot.slane %v25_v26, %v1035_v42 }
   0x8   :  { %v675_v50 = vrot.slane %v24_v25, %v1031_v38  ;;  %v679_v51 = vrot.slane %v24_v25, %v1033_v41  ;;  %v767_v55 = vrot.slane %v24_v25, %v1035_v42  ;;  %v771_v56 = vrot.slane %v24_v25, %v1041_v45 }
   0x9   :  { %v779_v58 = vrot.slane %v25_v26, %v1041_v45  ;;  %v719_v60 = vrot.slane %v24_v25, %v1043_v46  ;;  %v723_v61 = vrot.slane %v24_v25, %v1045_v47  ;;  %v727_v62 = vrot.slane %v25_v26, %v1043_v46 }
   0xa   :  { %94 = vperm.xlu1 %901, %v71_v5   ;;  %v731_v63 = vrot.slane %v25_v26, %v1045_v47  ;;  %v823_v2 = vrot.slane %v25_v26, %v1047_v48  ;;  %v695_v4 = vrot.slane %v675_v50, %v1031_v38 }
   0xb   :  { %89 = vperm.xlu0 %900, %v70_v6   ;;  %v739_v16 = vrot.slane %v719_v60, %v1043_v46  ;;  %v743_v17 = vrot.slane %v723_v61, %v1043_v46  ;;  %v747_v18 = vrot.slane %v727_v62, %v1043_v46 }
   0xc   :  { %v1083_v19 = vrot.slane %v731_v63, %v1043_v46 }
   0xe   :  { %104 = vperm.xlu1 %901, %v73_v7  }
   0xf   :  { %99 = vperm.xlu0 %900, %v72_v8  }
  0x12   :  { %667 = vperm.xlu1 %901, %v664_v9  }
  0x13   :  { %109 = vperm.xlu0 %900, %v74_v10  }
  0x16   :  { %902 = vset.pattern.permute.xlu1 %v916_v12 }
  0x17   :  { %114 = vperm.xlu0 %900, %v998_v11   ;;  %761 = vperm.xlu1 %902, %v664_v9  }
  0x1b   :  { %904 = vset.pattern.permute.xlu0 %v917_v13  ;;  %903 = vset.pattern.permute.xlu1 %v918_v14 }
  0x1c   :  { %713 = vperm.xlu0 %904, %v664_v9   ;;  %809 = vperm.xlu1 %903, %v664_v9   ;;  %v787_v9 = vrot.slane %v767_v55, %v1035_v42 }
  0x20   :  { %201 = vperm.xlu0 %904, %v69_v3   ;;  %905 = vset.pattern.permute.xlu1 %v915_v0  ;;  %v815_v0 = vrot.slane %v24_v25, %v1047_v48 }
  0x21   :  { %119 = vperm.xlu1 %905, %v1004_v15  }
  0x22   :  { %v1086_v20 = vrot.slane %v815_v0, %v1047_v48 }
  0x24   :  { %213 = vperm.xlu0 %904, %v72_v8  }
  0x25   :  { %906 = vset.pattern.permute.xlu1 %v917_v13  ;;  %v799_v13 = vrot.slane %v779_v58, %v1035_v42 }
  0x26   :  { %197 = vperm.xlu1 %906, %v68_v1  }
  0x28   :  { %221 = vperm.xlu0 %904, %v74_v10  }
  0x2a   :  { %205 = vperm.xlu1 %906, %v70_v6  }
  0x2c   :  { %229 = vperm.xlu0 %904, %v1004_v15  }
  0x2e   :  { %209 = vperm.xlu1 %906, %v71_v5  }
  0x30   :  { %908 = vset.pattern.permute.xlu0 %v916_v12 }
  0x31   :  { %345 = vperm.xlu0 %908, %v69_v3  }
  0x32   :  { %217 = vperm.xlu1 %906, %v73_v7  }
  0x35   :  { %357 = vperm.xlu0 %908, %v72_v8  }
  0x36   :  { %225 = vperm.xlu1 %906, %v998_v11  }
  0x39   :  { %361 = vperm.xlu0 %908, %v73_v7  }
  0x3a   :  { %907 = vset.pattern.permute.xlu1 %v916_v12  ;;  %v795_v12 = vrot.slane %v775_v57, %v1035_v42 }
  0x3b   :  { %341 = vperm.xlu1 %907, %v68_v1  }
  0x3d   :  { %373 = vperm.xlu0 %908, %v1004_v15  }
  0x3f   :  { %349 = vperm.xlu1 %907, %v70_v6  }
  0x41   :  { %910 = vset.pattern.permute.xlu0 %v918_v14 }
  0x42   :  { %489 = vperm.xlu0 %910, %v69_v3   ;;  %v827_v3 = vrot.slane %v25_v26, %v1049_v49 }
  0x43   :  { %353 = vperm.xlu1 %907, %v71_v5  }
  0x46   :  { %501 = vperm.xlu0 %910, %v72_v8  }
  0x47   :  { %365 = vperm.xlu1 %907, %v74_v10  }
  0x4a   :  { %509 = vperm.xlu0 %910, %v74_v10   ;;  %v791_v10 = vrot.slane %v771_v56, %v1035_v42 }
  0x4b   :  { %369 = vperm.xlu1 %907, %v998_v11  }
  0x4f   :  { %909 = vset.pattern.permute.xlu1 %v918_v14 }
  0x50   :  { %485 = vperm.xlu1 %909, %v68_v1   ;;  %v819_v1 = vrot.slane %v24_v25, %v1049_v49 }
  0x54   :  { %493 = vperm.xlu1 %909, %v70_v6   ;;  %v703_v6 = vrot.slane %v683_v52, %v1031_v38 }
  0x58   :  { %497 = vperm.xlu1 %909, %v71_v5   ;;  %v699_v5 = vrot.slane %v679_v51, %v1031_v38 }
  0x5c   :  { %505 = vperm.xlu1 %909, %v73_v7   ;;  %v707_v7 = vrot.slane %v687_v53, %v1031_v38 }
  0x81   :  { %v1011_v22 = vpop.permute.xlu1 %79 }
  0x82   :  { %v30_v23 = vpop.permute.xlu0 %29 }
  0x83   :  { %v37_v24 = vrot.slane %v30_v23, %v36_v21  ;;  %v1092_v23 = vrot.slane %v823_v2, %v1047_v48 }
  0x85   :  { %v1019_v27 = vpop.permute.xlu1 %84  ;;  %v39_v29 = vmul.f32 %v37_v24, %v24_v25  ;;  %v40_v30 = vmul.f32 %v37_v24, %v25_v26  ;;  %v1095_v24 = vrot.slane %v827_v3, %v1047_v48 }
  0x86   :  { %v45_v28 = vpop.permute.xlu0 %44 }
  0x87   :  { %v52_v31 = vrot.slane %v45_v28, %v36_v21  ;;  %v1089_v21 = vrot.slane %v819_v1, %v1047_v48 }
  0x89   :  { %v1021_v32 = vadd.f32 %v52_v31, %v39_v29  ;;  %v1023_v33 = vadd.f32 %v52_v31, %v40_v30  ;;  %v1025_v34 = vpop.permute.xlu1 %94 }
  0x8a   :  { %v1027_v35 = vpop.permute.xlu0 %89 }
  0x8b   :  { %v58_v36 = vmin.f32 %v1021_v32, 0.0  ;;  %v59_v37 = vmin.f32 %v1023_v33, 0.0  ;;  %vm56_vm0 = vcmp.gt.f32.partialorder %v1021_v32, 0.0  ;;  %vm57_vm1 = vcmp.gt.f32.partialorder %v1023_v33, 0.0 }
  0x8d   :  { %v60_v39 = vmul.f32 1.442695, %v58_v36  ;;  %v62_v40 = vmul.f32 1.442695, %v59_v37  ;;  %v1037_v43 = vpop.permute.xlu1 %104 }
  0x8e   :  { %v1039_v44 = vpop.permute.xlu0 %99 }
  0x8f   :  { %911 = vpow2.f32 %v60_v39 }
  0x90   :  { %913 = vpow2.f32 %v62_v40 }
  0x91   :  { %v668_v59 = vpop.permute.xlu1 %667 }
  0x92   :  { %v1055_v54 = vpop.permute.xlu0 %109  ;;  %v1099_v26 = vmul.f32 %v695_v4, %v668_v59  ;;  %v1101_v28 = vmul.f32 %v699_v5, %v668_v59  ;;  %v1103_v31 = vmul.f32 %v703_v6, %v668_v59  ;;  %v1105_v36 = vmul.f32 %v707_v7, %v668_v59 }
  0x96   :  { %v1073_v8 = vpop.permute.xlu0 %114  ;;  %v762_v14 = vpop.permute.xlu1 %761 }
  0x97   :  { %v1107_v37 = vmul.f32 %v787_v9, %v762_v14  ;;  %v1109_v40 = vmul.f32 %v791_v10, %v762_v14  ;;  %v1111_v50 = vmul.f32 %v795_v12, %v762_v14  ;;  %v1113_v51 = vmul.f32 %v799_v13, %v762_v14 }
  0x99   :  { %v912_v25 = vpop.eup %911 }
  0x9a   :  { %v914_v29 = vpop.eup %913  ;;  %v893_v30 = vadd.f32 -1.0, %v912_v25 }
  0x9b   :  { %v894_v39 = vadd.f32 -1.0, %v914_v29  ;;  %v714_v52 = vpop.permute.xlu0 %713  ;;  %v1118_v58 = vpop.permute.xlu1 %809 }
  0x9c   :  { %v1116_v53 = vsel %vm56_vm0, %v1021_v32, %v893_v30  ;;  %v752_v55 = vmul.f32 %v739_v16, %v714_v52  ;;  %v753_v56 = vmul.f32 %v743_v17, %v714_v52  ;;  %v754_v57 = vmul.f32 %v747_v18, %v714_v52 }
  0x9d   :  { %v1123_v59 = vsel %vm57_vm1, %v1023_v33, %v894_v39  ;;  %v127_v60 = vrot.slane %v1116_v53, %v1031_v38  ;;  %v235_v61 = vrot.slane %v1116_v53, %v1043_v46  ;;  %v379_v32 = vrot.slane %v1116_v53, %v1035_v42 }
  0x9e   :  { %v135_v62 = vrot.slane %v1123_v59, %v1031_v38  ;;  %v243_v63 = vrot.slane %v1123_v59, %v1043_v46  ;;  %v387_v0 = vrot.slane %v1123_v59, %v1035_v42  ;;  %v523_v33 = vrot.slane %v1116_v53, %v1047_v48 }
  0x9f   :  { %v1140_v1 = vrot.slane %v127_v60, %v1031_v38  ;;  %v1143_v2 = vrot.slane %v235_v61, %v1043_v46  ;;  %v1146_v3 = vrot.slane %v379_v32, %v1035_v42  ;;  %v531_v4 = vrot.slane %v1123_v59, %v1047_v48  ;;  %v1150_v5 = vpop.permute.xlu0 %201 }
  0xa0   :  { %v1153_v6 = vrot.slane %v135_v62, %v1031_v38  ;;  %v1156_v7 = vrot.slane %v243_v63, %v1043_v46  ;;  %v1159_v9 = vrot.slane %v387_v0, %v1035_v42  ;;  %v1162_v10 = vrot.slane %v523_v33, %v1047_v48  ;;  %v1175_v17 = vpop.permute.xlu1 %119 }
  0xa1   :  { %v1165_v12 = vrot.slane %v531_v4, %v1047_v48  ;;  %v131_v13 = vrot.slane %v1116_v53, %v1033_v41  ;;  %v139_v14 = vrot.slane %v1123_v59, %v1033_v41  ;;  %v1173_v16 = vmul.f32 %v1140_v1, %v1025_v34 }
  0xa2   :  { %1926 = vst [vmem:[#allocation4_spill] sm:$0xff] %v1159_v9  ;;  %1927 = vst [vmem:[#allocation5_spill] sm:$0xff] %v1162_v10  ;;  %v1179_v18 = vmul.f32 %v1153_v6, %v1025_v34  ;;  %v1183_v25 = vmul.f32 %v1140_v1, %v1027_v35  ;;  %v1187_v29 = vmul.f32 %v1153_v6, %v1027_v35 }
  0xa3   :  { %1928 = vst [vmem:[#allocation6_spill] sm:$0xff] %v1165_v12  ;;  %v1191_v41 = vmul.f32 %v1140_v1, %v1037_v43  ;;  %v1194_v30 = vrot.slane %v131_v13, %v1031_v38  ;;  %v1197_v39 = vrot.slane %v139_v14, %v1031_v38  ;;  %v1201_v60 = vmul.f32 %v1153_v6, %v1037_v43  ;;  %v1207_v32 = vpop.permute.xlu0 %213 }
  0xa4   :  { %1929 = vst [vmem:[#allocation7_spill] sm:$0xff] %v1179_v18  ;;  %v1205_v61 = vmul.f32 %v1140_v1, %v1039_v44  ;;  %v1211_v62 = vmul.f32 %v1153_v6, %v1039_v44  ;;  %v1215_v63 = vmul.f32 %v1140_v1, %v1055_v54  ;;  %v1219_v38 = vmul.f32 %v1153_v6, %v1055_v54 }
  0xa5   :  { %1930 = vst [vmem:[#allocation8_spill] sm:$0xff] %v1191_v41  ;;  %1931 = vst [vmem:[#allocation9_spill] sm:$0xff] %v1201_v60  ;;  %v1223_v0 = vmul.f32 %v1140_v1, %v1073_v8  ;;  %v1227_v33 = vmul.f32 %v1194_v30, %v1025_v34  ;;  %v1231_v4 = vmul.f32 %v1197_v39, %v1025_v34  ;;  %v1257_v10 = vpop.permute.xlu1 %197 }
  0xa6   :  { %v1235_v13 = vmul.f32 %v1194_v30, %v1027_v35  ;;  %v1239_v14 = vmul.f32 %v1197_v39, %v1027_v35  ;;  %v1243_v15 = vmul.f32 %v1194_v30, %v1037_v43  ;;  %v1247_v11 = vmul.f32 %v1197_v39, %v1037_v43 }
  0xa7   :  { %1932 = vst [vmem:[#allocation10_spill] sm:$0xff] %v1223_v0  ;;  %1933 = vst [vmem:[#allocation11_spill] sm:$0xff] %v1227_v33  ;;  %v1251_v34 = vmul.f32 %v1194_v30, %v1039_v44  ;;  %v1255_v12 = vmul.f32 %v1197_v39, %v1039_v44  ;;  %v1261_v35 = vmul.f32 %v1194_v30, %v1055_v54  ;;  %v1275_v44 = vpop.permute.xlu0 %221 }
  0xa8   :  { %1934 = vst [vmem:[#allocation12_spill] sm:$0xff] %v1231_v4  ;;  %1935 = vst [vmem:[#allocation13_spill] sm:$0xff] %v1243_v15  ;;  %v1265_v0 = vmul.f32 %v1197_v39, %v1055_v54  ;;  %v1269_v43 = vmul.f32 %v1194_v30, %v1073_v8  ;;  %v1279_v60 = vmul.f32 %v1197_v39, %v1073_v8 }
  0xa9   :  { %1936 = vst [vmem:[#allocation14_spill] sm:$0xff] %v1247_v11  ;;  %v1273_v11 = vmul.f32 %v1153_v6, %v1073_v8  ;;  %v383_v15 = vrot.slane %v1116_v53, %v1041_v45  ;;  %v391_v54 = vrot.slane %v1123_v59, %v1041_v45  ;;  %v239_v41 = vrot.slane %v1116_v53, %v1045_v47  ;;  %v1302_v33 = vpop.permute.xlu1 %205 }
  0xaa   :  { %1937 = vst [vmem:[#allocation15_spill] sm:$0xff] %v1269_v43  ;;  %1939 = vst [vmem:[#allocation17_spill] sm:$0xff] %v1279_v60  ;;  %v247_v43 = vrot.slane %v1123_v59, %v1045_v47  ;;  %v756_v4 = vadd.f32 %v752_v55, %v1099_v26  ;;  %v757_v18 = vadd.f32 %v753_v56, %v1101_v28 }
  0xab   :  { %1938 = vst [vmem:[#allocation16_spill] sm:$0xff] %v1273_v11  ;;  %v755_v11 = vmul.f32 %v1083_v19, %v714_v52  ;;  %v1293_v8 = vrot.slane %v383_v15, %v1035_v42  ;;  %v1296_v60 = vrot.slane %v391_v54, %v1035_v42  ;;  %v1299_v45 = vrot.slane %v239_v41, %v1043_v46 }
  0xac   :  { %v758_v9 = vadd.f32 %v754_v57, %v1103_v31  ;;  %v1305_v47 = vrot.slane %v247_v43, %v1043_v46  ;;  %v527_v15 = vrot.slane %v1116_v53, %v1049_v49  ;;  %v535_v42 = vrot.slane %v1123_v59, %v1049_v49  ;;  %v1319_v46 = vpop.permute.xlu0 %229 }
  0xad   :  { %v1308_v19 = vadd.f32 %v755_v11, %v1105_v36  ;;  %v804_v26 = vadd.f32 %v1107_v37, %v756_v4  ;;  %v805_v28 = vadd.f32 %v1109_v40, %v757_v18  ;;  %v848_v52 = vmul.f32 %v1086_v20, %v1118_v58 }
  0xae   :  { %v806_v31 = vadd.f32 %v1111_v50, %v758_v9  ;;  %v1322_v11 = vrot.slane %v527_v15, %v1047_v48  ;;  %v1325_v36 = vrot.slane %v535_v42, %v1047_v48  ;;  %v849_v49 = vmul.f32 %v1089_v21, %v1118_v58  ;;  %v1341_v48 = vpop.permute.xlu1 %209 }
  0xaf   :  { %v850_v37 = vmul.f32 %v1092_v23, %v1118_v58  ;;  %v1333_v40 = vmul.f32 %v1095_v24, %v1118_v58  ;;  %v1335_v50 = vadd.f32 %v848_v52, %v804_v26  ;;  %v164_v20 = vmul.f32 %v1140_v1, %v1019_v27 }
  0xb0   :  { %v165_v53 = vmul.f32 %v1194_v30, %v1019_v27  ;;  %v1343_v55 = vadd.f32 %v849_v49, %v805_v28  ;;  %v166_v23 = vmul.f32 %v1153_v6, %v1019_v27  ;;  %v167_v24 = vmul.f32 %v1197_v39, %v1019_v27  ;;  %v1387_v15 = vpop.permute.xlu0 %345 }
  0xb1   :  { %v1345_v21 = vadd.f32 %v850_v37, %v806_v31  ;;  %856 = vst [vmem:[%s1915_s6] sm:$0xff] %v1335_v50  ;;  %v272_v56 = vmul.f32 %v1143_v2, %v1150_v5  ;;  %v273_v57 = vmul.f32 %v1299_v45, %v1150_v5  ;;  %v274_v58 = vmul.f32 %v1156_v7, %v1150_v5 }
  0xb2   :  { %v275_v59 = vmul.f32 %v1305_v47, %v1150_v5  ;;  %857 = vst [vmem:[%s1915_s6 + $0x8] sm:$0xff] %v1343_v55  ;;  %v192_v27 = vmul.f32 %v1140_v1, %v1175_v17  ;;  %v193_v9 = vmul.f32 %v1194_v30, %v1175_v17  ;;  %v194_v18 = vmul.f32 %v1153_v6, %v1175_v17  ;;  %v1389_v42 = vpop.permute.xlu1 %217 }
  0xb3   :  { %858 = vst [vmem:[%s1915_s6 + $0x10] sm:$0xff] %v1345_v21  ;;  %v195_v5 = vmul.f32 %v1197_v39, %v1175_v17  ;;  %v1379_v41 = vadd.f32 %v272_v56, %v164_v20  ;;  %v1381_v4 = vadd.f32 %v273_v57, %v165_v53  ;;  %v1383_v43 = vadd.f32 %v274_v58, %v166_v23 }
  0xb4   :  { %v1385_v54 = vadd.f32 %v275_v59, %v167_v24  ;;  %v284_v26 = vmul.f32 %v1143_v2, %v1207_v32  ;;  %v285_v28 = vmul.f32 %v1299_v45, %v1207_v32  ;;  %v286_v17 = vmul.f32 %v1156_v7, %v1207_v32  ;;  %v1445_v59 = vpop.permute.xlu0 %357 }
  0xb5   :  { %v287_v31 = vmul.f32 %v1305_v47, %v1207_v32  ;;  %v160_v52 = vmul.f32 %v1140_v1, %v1011_v22  ;;  %v161_v49 = vmul.f32 %v1194_v30, %v1011_v22  ;;  %v162_v37 = vmul.f32 %v1153_v6, %v1011_v22 }
  0xb6   :  { %v163_v20 = vmul.f32 %v1197_v39, %v1011_v22  ;;  %v1408_v53 = vadd.f32 %v284_v26, %v1205_v61  ;;  %v1411_v23 = vadd.f32 %v285_v28, %v1251_v34  ;;  %v1414_v32 = vadd.f32 %v286_v17, %v1211_v62  ;;  %v1427_v61 = vpop.permute.xlu1 %225 }
  0xb7   :  { %v1417_v1 = vadd.f32 %v287_v31, %v1255_v12  ;;  %v268_v30 = vmul.f32 %v1143_v2, %v1257_v10  ;;  %v269_v6 = vmul.f32 %v1299_v45, %v1257_v10  ;;  %v270_v22 = vmul.f32 %v1156_v7, %v1257_v10 }
  0xb8   :  { %v271_v39 = vmul.f32 %v1305_v47, %v1257_v10  ;;  %v292_v62 = vmul.f32 %v1143_v2, %v1275_v44  ;;  %v293_v12 = vmul.f32 %v1299_v45, %v1275_v44  ;;  %v294_v34 = vmul.f32 %v1156_v7, %v1275_v44 }
  0xb9   :  { %v295_v24 = vmul.f32 %v1305_v47, %v1275_v44  ;;  %v1437_v56 = vadd.f32 %v268_v30, %v160_v52  ;;  %v1439_v57 = vadd.f32 %v269_v6, %v161_v49  ;;  %v1441_v58 = vadd.f32 %v270_v22, %v162_v37 }
  0xba   :  { %v1443_v10 = vadd.f32 %v271_v39, %v163_v20  ;;  %v1448_v26 = vadd.f32 %v292_v62, %v1215_v63  ;;  %v1451_v28 = vadd.f32 %v293_v12, %v1261_v35  ;;  %v1454_v17 = vadd.f32 %v294_v34, %v1219_v38  ;;  %v1475_v20 = vpop.permute.xlu1 %341  ;;  %v362_v12 = vpop.permute.xlu0 %361 }
  0xbb   :  { %v1457_v44 = vadd.f32 %v295_v24, %v1265_v0  ;;  %v276_v31 = vmul.f32 %v1143_v2, %v1302_v33  ;;  %v277_v52 = vmul.f32 %v1299_v45, %v1302_v33  ;;  %v278_v49 = vmul.f32 %v1156_v7, %v1302_v33 }
  0xbc   :  { %v279_v63 = vmul.f32 %v1305_v47, %v1302_v33  ;;  %v807_v35 = vadd.f32 %v1113_v51, %v1308_v19  ;;  %v860_v38 = vadd.f32 %v1343_v55, %v1335_v50  ;;  %v300_v0 = vmul.f32 %v1143_v2, %v1319_v46 }
  0xbd   :  { %v301_v37 = vmul.f32 %v1299_v45, %v1319_v46  ;;  %v1478_v30 = vadd.f32 %v276_v31, %v1183_v25  ;;  %v1481_v6 = vadd.f32 %v277_v52, %v1235_v13  ;;  %v1484_v33 = vadd.f32 %v278_v49, %v1187_v29 }
  0xbe   :  { %v1487_v51 = vadd.f32 %v279_v63, %v1239_v14  ;;  %v855_v19 = vadd.f32 %v1333_v40, %v807_v35  ;;  %v861_v22 = vadd.f32 %v860_v38, %v1345_v21  ;;  %v302_v39 = vmul.f32 %v1156_v7, %v1319_v46  ;;  %v1942_v35 = vld [vmem:[#allocation11_spill] sm:$0xff] }
  0xbf   :  { %v303_v25 = vmul.f32 %v1305_v47, %v1319_v46  ;;  %v1495_v62 = vadd.f32 %v300_v0, %v192_v27  ;;  %v1497_v13 = vadd.f32 %v301_v37, %v193_v9  ;;  %v867_v29 = vmul.f32 %v1335_v50, %v1335_v50  ;;  %v1512_v27 = vpop.permute.xlu1 %349  ;;  %v1943_v0 = vld [vmem:[#allocation4_spill] sm:$0xff] }
  0xc0   :  { %v868_v14 = vmul.f32 %v1343_v55, %v1343_v55  ;;  %859 = vst [vmem:[%s1915_s6 + $0x18] sm:$0xff] %v855_v19  ;;  %v862_v40 = vadd.f32 %v861_v22, %v855_v19  ;;  %v1506_v34 = vadd.f32 %v302_v39, %v194_v18  ;;  %v869_v46 = vmul.f32 %v1345_v21, %v1345_v21 }
  0xc1   :  { %1940 = vst [vmem:[#allocation18_spill] sm:$0xff] %v1495_v62  ;;  %1941 = vst [vmem:[#allocation19_spill] sm:$0xff] %v1497_v13  ;;  %v1508_v24 = vadd.f32 %v303_v25, %v195_v5  ;;  %v870_v9 = vmul.f32 %v855_v19, %v855_v19  ;;  %v280_v55 = vmul.f32 %v1143_v2, %v1341_v48  ;;  %v1944_v19 = vld [vmem:[#allocation7_spill] sm:$0xff] }
  0xc2   :  { %v871_v50 = vadd.f32 %v868_v14, %v867_v29  ;;  %v281_v31 = vmul.f32 %v1299_v45, %v1341_v48  ;;  %863 = vadd.xlane.f32.xlu1 %v862_v40  ;;  %v282_v18 = vmul.f32 %v1156_v7, %v1341_v48  ;;  %v283_v5 = vmul.f32 %v1305_v47, %v1341_v48  ;;  %v1945_v48 = vld [vmem:[#allocation12_spill] sm:$0xff] }
  0xc3   :  { %v416_v21 = vmul.f32 %v1146_v3, %v1387_v15  ;;  %v417_v52 = vmul.f32 %v1293_v8, %v1387_v15  ;;  %v1527_v63 = vadd.f32 %v280_v55, %v1173_v16  ;;  %v418_v37 = vmul.f32 %v1943_v0, %v1387_v15  ;;  %v1545_v16 = vpop.permute.xlu1 %353  ;;  %v374_v55 = vpop.permute.xlu0 %373 }
  0xc4   :  { %v872_v49 = vadd.f32 %v871_v50, %v869_v46  ;;  %v1530_v38 = vadd.f32 %v281_v31, %v1942_v35  ;;  %v1535_v22 = vadd.f32 %v282_v18, %v1944_v19  ;;  %v1538_v39 = vadd.f32 %v283_v5, %v1945_v48 }
  0xc5   :  { %v419_v25 = vmul.f32 %v1296_v60, %v1387_v15  ;;  %v1543_v29 = vadd.f32 %v416_v21, %v1379_v41  ;;  %v1548_v40 = vadd.f32 %v417_v52, %v1381_v4  ;;  %v1551_v46 = vadd.f32 %v418_v37, %v1383_v43  ;;  %v1947_v21 = vld [vmem:[#allocation13_spill] sm:$0xff]  ;;  %v1949_v37 = vld [vmem:[#allocation14_spill] sm:$0xff] }
  0xc6   :  { %v873_v14 = vadd.f32 %v872_v49, %v870_v9  ;;  %v288_v50 = vmul.f32 %v1143_v2, %v1389_v42  ;;  %v289_v41 = vmul.f32 %v1299_v45, %v1389_v42  ;;  %v290_v15 = vmul.f32 %v1156_v7, %v1389_v42  ;;  %v1946_v9 = vld [vmem:[#allocation8_spill] sm:$0xff]  ;;  %v1948_v49 = vld [vmem:[#allocation9_spill] sm:$0xff] }
  0xc7   :  { %v1556_v31 = vadd.f32 %v419_v25, %v1385_v54  ;;  %v291_v4 = vmul.f32 %v1305_v47, %v1389_v42  ;;  %v428_v18 = vmul.f32 %v1146_v3, %v1445_v59  ;;  %v429_v5 = vmul.f32 %v1293_v8, %v1445_v59  ;;  %v1576_v48 = vpop.permute.xlu1 %365 }
  0xc8   :  { %874 = vadd.xlane.f32.xlu0 %v873_v14  ;;  %v324_v43 = vadd.f32 %v288_v50, %v1946_v9  ;;  %v430_v54 = vmul.f32 %v1943_v0, %v1445_v59  ;;  %v325_v52 = vadd.f32 %v289_v41, %v1947_v21  ;;  %v326_v35 = vadd.f32 %v290_v15, %v1948_v49 }
  0xc9   :  { %v327_v19 = vadd.f32 %v291_v4, %v1949_v37  ;;  %v431_v42 = vmul.f32 %v1296_v60, %v1445_v59  ;;  %v1579_v25 = vadd.f32 %v428_v18, %v1408_v53  ;;  %v1582_v14 = vadd.f32 %v429_v5, %v1411_v23  ;;  %v1950_v23 = vld [vmem:[#allocation10_spill] sm:$0xff]  ;;  %v1951_v5 = vld [vmem:[#allocation15_spill] sm:$0xff] }
  0xca   :  { %v1585_v50 = vadd.f32 %v430_v54, %v1414_v32  ;;  %v296_v41 = vmul.f32 %v1143_v2, %v1427_v61  ;;  %v297_v59 = vmul.f32 %v1299_v45, %v1427_v61  ;;  %v298_v4 = vmul.f32 %v1156_v7, %v1427_v61  ;;  %v1952_v45 = vld [vmem:[#allocation16_spill] sm:$0xff]  ;;  %v1953_v7 = vld [vmem:[#allocation17_spill] sm:$0xff] }
  0xcb   :  { %v1590_v15 = vadd.f32 %v431_v42, %v1417_v1  ;;  %v299_v53 = vmul.f32 %v1305_v47, %v1427_v61  ;;  %v432_v32 = vmul.f32 %v1146_v3, %v362_v12  ;;  %v433_v18 = vmul.f32 %v1293_v8, %v362_v12  ;;  %v490_v1 = vpop.permute.xlu0 %489  ;;  %v1614_v61 = vpop.permute.xlu1 %369 }
  0xcc   :  { %v1599_v9 = vadd.f32 %v296_v41, %v1950_v23  ;;  %v434_v2 = vmul.f32 %v1943_v0, %v362_v12  ;;  %v1605_v54 = vadd.f32 %v297_v59, %v1951_v5  ;;  %v1608_v21 = vadd.f32 %v298_v4, %v1952_v45 }
  0xcd   :  { %v1611_v49 = vadd.f32 %v299_v53, %v1953_v7  ;;  %v435_v47 = vmul.f32 %v1296_v60, %v362_v12  ;;  %v1616_v37 = vadd.f32 %v432_v32, %v324_v43  ;;  %v1618_v42 = vadd.f32 %v433_v18, %v325_v52 }
  0xce   :  { %v1620_v41 = vadd.f32 %v434_v2, %v326_v35  ;;  %v412_v59 = vmul.f32 %v1146_v3, %v1475_v20  ;;  %v413_v4 = vmul.f32 %v1293_v8, %v1475_v20  ;;  %v414_v53 = vmul.f32 %v1943_v0, %v1475_v20 }
  0xcf   :  { %v1624_v23 = vadd.f32 %v435_v47, %v327_v19  ;;  %v415_v12 = vmul.f32 %v1296_v60, %v1475_v20  ;;  %v1636_v52 = vmul.f32 %v1146_v3, %v374_v55  ;;  %v1639_v35 = vmul.f32 %v1293_v8, %v374_v55  ;;  %v1664_v7 = vpop.permute.xlu1 %485 }
  0xd0   :  { %v1633_v43 = vadd.f32 %v412_v59, %v1437_v56  ;;  %v1642_v19 = vmul.f32 %v1943_v0, %v374_v55  ;;  %v1645_v32 = vadd.f32 %v413_v4, %v1439_v57  ;;  %v1648_v18 = vadd.f32 %v414_v53, %v1441_v58  ;;  %v502_v58 = vpop.permute.xlu0 %501  ;;  %v1958_v59 = vld [vmem:[#allocation6_spill] sm:$0xff] }
  0xd1   :  { %1954 = vst [vmem:[#allocation11_spill] sm:$0xff] %v1636_v52  ;;  %1955 = vst [vmem:[#allocation4_spill] sm:$0xff] %v1639_v35  ;;  %v1651_v20 = vadd.f32 %v415_v12, %v1443_v10  ;;  %v1654_v56 = vmul.f32 %v1296_v60, %v374_v55  ;;  %v420_v2 = vmul.f32 %v1146_v3, %v1512_v27  ;;  %v1957_v10 = vld [vmem:[#allocation5_spill] sm:$0xff]  ;;  %v1959_v12 = vld [vmem:[#allocation2_spill] sm:$0xff] }
  0xd2   :  { %v421_v5 = vmul.f32 %v1293_v8, %v1512_v27  ;;  %v422_v45 = vmul.f32 %v1943_v0, %v1512_v27  ;;  %v423_v57 = vmul.f32 %v1296_v60, %v1512_v27  ;;  %v560_v47 = vmul.f32 %v1957_v10, %v490_v1 }
  0xd3   :  { %1956 = vst [vmem:[#allocation7_spill] sm:$0xff] %v1654_v56  ;;  %v561_v55 = vmul.f32 %v1322_v11, %v490_v1  ;;  %v562_v4 = vmul.f32 %v1958_v59, %v490_v1  ;;  %v563_v53 = vmul.f32 %v1325_v36, %v490_v1  ;;  %513 = vperm.xlu1 %909, %v1959_v12  }
  0xd4   :  { %v1672_v35 = vadd.f32 %v420_v2, %v1478_v30  ;;  %v1675_v13 = vadd.f32 %v421_v5, %v1481_v6  ;;  %v1678_v27 = vadd.f32 %v422_v45, %v1484_v33  ;;  %v1681_v52 = vadd.f32 %v423_v57, %v1487_v51  ;;  %v494_v2 = vpop.permute.xlu1 %493  ;;  %v510_v45 = vpop.permute.xlu0 %509 }
  0xd5   :  { %v596_v62 = vadd.f32 %v560_v47, %v1543_v29  ;;  %v597_v56 = vadd.f32 %v561_v55, %v1548_v40  ;;  %v598_v1 = vadd.f32 %v562_v4, %v1551_v46  ;;  %v599_v12 = vadd.f32 %v563_v53, %v1556_v31 }
  0xd6   :  { %v424_v30 = vmul.f32 %v1146_v3, %v1545_v16  ;;  %v425_v6 = vmul.f32 %v1293_v8, %v1545_v16  ;;  %v426_v33 = vmul.f32 %v1943_v0, %v1545_v16  ;;  %v427_v51 = vmul.f32 %v1296_v60, %v1545_v16 }
  0xd7   :  { %632 = vst [vmem:[%s1916_s5 + $0x20] sm:$0xff] %v596_v62  ;;  %633 = vst [vmem:[%s1916_s5 + $0x28] sm:$0xff] %v597_v56  ;;  %v572_v29 = vmul.f32 %v1957_v10, %v502_v58  ;;  %v573_v16 = vmul.f32 %v1322_v11, %v502_v58  ;;  %v574_v40 = vmul.f32 %v1958_v59, %v502_v58 }
  0xd8   :  { %634 = vst [vmem:[%s1916_s5 + $0x30] sm:$0xff] %v598_v1  ;;  %635 = vst [vmem:[%s1916_s5 + $0x38] sm:$0xff] %v599_v12  ;;  %v575_v62 = vmul.f32 %v1325_v36, %v502_v58  ;;  %v1712_v46 = vadd.f32 %v424_v30, %v1527_v63  ;;  %v1715_v31 = vadd.f32 %v425_v6, %v1530_v38 }
  0xd9   :  { %v1718_v56 = vadd.f32 %v426_v33, %v1535_v22  ;;  %v1721_v5 = vadd.f32 %v427_v51, %v1538_v39  ;;  %v608_v57 = vadd.f32 %v572_v29, %v1579_v25  ;;  %v609_v47 = vadd.f32 %v573_v16, %v1582_v14  ;;  %v1960_v29 = vld [vmem:[#allocation3_spill] sm:$0xff] }
  0xda   :  { %v610_v55 = vadd.f32 %v574_v40, %v1585_v50  ;;  %v611_v58 = vadd.f32 %v575_v62, %v1590_v15  ;;  %v436_v63 = vmul.f32 %v1146_v3, %v1576_v48  ;;  %v437_v38 = vmul.f32 %v1293_v8, %v1576_v48  ;;  %v498_v15 = vpop.permute.xlu1 %497 }
  0xdb   :  { %v438_v22 = vmul.f32 %v1943_v0, %v1576_v48  ;;  %v439_v39 = vmul.f32 %v1296_v60, %v1576_v48  ;;  %644 = vst [vmem:[%s1916_s5 + $0x80] sm:$0xff] %v608_v57  ;;  %645 = vst [vmem:[%s1916_s5 + $0x88] sm:$0xff] %v609_v47  ;;  %v580_v25 = vmul.f32 %v1957_v10, %v510_v45 }
  0xdc   :  { %646 = vst [vmem:[%s1916_s5 + $0x90] sm:$0xff] %v610_v55  ;;  %647 = vst [vmem:[%s1916_s5 + $0x98] sm:$0xff] %v611_v58  ;;  %v581_v48 = vmul.f32 %v1322_v11, %v510_v45  ;;  %v582_v14 = vmul.f32 %v1958_v59, %v510_v45  ;;  %v583_v50 = vmul.f32 %v1325_v36, %v510_v45 }
  0xdd   :  { %v472_v4 = vadd.f32 %v436_v63, %v1448_v26  ;;  %v473_v53 = vadd.f32 %v437_v38, %v1451_v28  ;;  %v474_v1 = vadd.f32 %v438_v22, %v1454_v17  ;;  %v475_v12 = vadd.f32 %v439_v39, %v1457_v44 }
  0xde   :  { %v440_v30 = vmul.f32 %v1146_v3, %v1614_v61  ;;  %v441_v6 = vmul.f32 %v1293_v8, %v1614_v61  ;;  %v442_v33 = vmul.f32 %v1943_v0, %v1614_v61  ;;  %v443_v51 = vmul.f32 %v1296_v60, %v1614_v61  ;;  %517 = vperm.xlu0 %910, %v1960_v29   ;;  %v506_v55 = vpop.permute.xlu1 %505 }
  0xdf   :  { %v616_v26 = vadd.f32 %v580_v25, %v472_v4  ;;  %v617_v28 = vadd.f32 %v581_v48, %v473_v53  ;;  %v618_v16 = vadd.f32 %v582_v14, %v474_v1  ;;  %v619_v17 = vadd.f32 %v583_v50, %v475_v12 }
  0xe0   :  { %v556_v44 = vmul.f32 %v1957_v10, %v1664_v7  ;;  %v557_v3 = vmul.f32 %v1322_v11, %v1664_v7  ;;  %v558_v8 = vmul.f32 %v1958_v59, %v1664_v7  ;;  %v559_v0 = vmul.f32 %v1325_v36, %v1664_v7 }
  0xe1   :  { %652 = vst [vmem:[%s1916_s5 + $0xc0] sm:$0xff] %v616_v26  ;;  %653 = vst [vmem:[%s1916_s5 + $0xc8] sm:$0xff] %v617_v28  ;;  %v564_v60 = vmul.f32 %v1957_v10, %v494_v2  ;;  %v565_v61 = vmul.f32 %v1322_v11, %v494_v2  ;;  %v566_v7 = vmul.f32 %v1958_v59, %v494_v2 }
  0xe2   :  { %654 = vst [vmem:[%s1916_s5 + $0xd0] sm:$0xff] %v618_v16  ;;  %655 = vst [vmem:[%s1916_s5 + $0xd8] sm:$0xff] %v619_v17  ;;  %v567_v40 = vmul.f32 %v1325_v36, %v494_v2  ;;  %v592_v62 = vadd.f32 %v556_v44, %v1633_v43  ;;  %v593_v45 = vadd.f32 %v557_v3, %v1645_v32 }
  0xe3   :  { %v594_v57 = vadd.f32 %v558_v8, %v1648_v18  ;;  %v595_v47 = vadd.f32 %v559_v0, %v1651_v20  ;;  %v600_v58 = vadd.f32 %v564_v60, %v1672_v35  ;;  %v601_v63 = vadd.f32 %v565_v61, %v1675_v13 }
  0xe4   :  { %v602_v38 = vadd.f32 %v566_v7, %v1678_v27  ;;  %v603_v22 = vadd.f32 %v567_v40, %v1681_v52  ;;  %628 = vst [vmem:[%s1916_s5] sm:$0xff] %v592_v62  ;;  %629 = vst [vmem:[%s1916_s5 + $0x8] sm:$0xff] %v593_v45  ;;  %v568_v13 = vmul.f32 %v1957_v10, %v498_v15 }
  0xe5   :  { %630 = vst [vmem:[%s1916_s5 + $0x10] sm:$0xff] %v594_v57  ;;  %631 = vst [vmem:[%s1916_s5 + $0x18] sm:$0xff] %v595_v47  ;;  %v569_v43 = vmul.f32 %v1322_v11, %v498_v15  ;;  %v570_v52 = vmul.f32 %v1958_v59, %v498_v15  ;;  %v571_v35 = vmul.f32 %v1325_v36, %v498_v15 }
  0xe6   :  { %636 = vst [vmem:[%s1916_s5 + $0x40] sm:$0xff] %v600_v58  ;;  %637 = vst [vmem:[%s1916_s5 + $0x48] sm:$0xff] %v601_v63  ;;  %v576_v32 = vmul.f32 %v1957_v10, %v506_v55  ;;  %v577_v18 = vmul.f32 %v1322_v11, %v506_v55  ;;  %v578_v20 = vmul.f32 %v1958_v59, %v506_v55 }
  0xe7   :  { %638 = vst [vmem:[%s1916_s5 + $0x50] sm:$0xff] %v602_v38  ;;  %639 = vst [vmem:[%s1916_s5 + $0x58] sm:$0xff] %v603_v22  ;;  %v579_v27 = vmul.f32 %v1325_v36, %v506_v55  ;;  %v604_v2 = vadd.f32 %v568_v13, %v1712_v46  ;;  %v605_v39 = vadd.f32 %v569_v43, %v1715_v31  ;;  %v1963_v46 = vld [vmem:[#allocation11_spill] sm:$0xff] }
  0xe8   :  { %v606_v25 = vadd.f32 %v570_v52, %v1718_v56  ;;  %v607_v48 = vadd.f32 %v571_v35, %v1721_v5  ;;  %v612_v14 = vadd.f32 %v576_v32, %v1616_v37  ;;  %v613_v50 = vadd.f32 %v577_v18, %v1618_v42  ;;  %v1964_v56 = vld [vmem:[#allocation19_spill] sm:$0xff]  ;;  %v1965_v5 = vld [vmem:[#allocation4_spill] sm:$0xff] }
  0xe9   :  { %v614_v15 = vadd.f32 %v578_v20, %v1620_v41  ;;  %v615_v4 = vadd.f32 %v579_v27, %v1624_v23  ;;  %640 = vst [vmem:[%s1916_s5 + $0x60] sm:$0xff] %v604_v2  ;;  %641 = vst [vmem:[%s1916_s5 + $0x68] sm:$0xff] %v605_v39  ;;  %v478_v37 = vadd.f32 %v442_v33, %v1608_v21 }
  0xea   :  { %642 = vst [vmem:[%s1916_s5 + $0x70] sm:$0xff] %v606_v25  ;;  %643 = vst [vmem:[%s1916_s5 + $0x78] sm:$0xff] %v607_v48  ;;  %v479_v42 = vadd.f32 %v443_v51, %v1611_v49  ;;  %v476_v41 = vadd.f32 %v440_v30, %v1599_v9  ;;  %v477_v23 = vadd.f32 %v441_v6, %v1605_v54  ;;  %v1961_v54 = vld [vmem:[#allocation7_spill] sm:$0xff]  ;;  %v1962_v49 = vld [vmem:[#allocation18_spill] sm:$0xff] }
  0xeb   :  { %648 = vst [vmem:[%s1916_s5 + $0xa0] sm:$0xff] %v612_v14  ;;  %649 = vst [vmem:[%s1916_s5 + $0xa8] sm:$0xff] %v613_v50  ;;  %v482_v9 = vadd.f32 %v1642_v19, %v1506_v34  ;;  %v483_v21 = vadd.f32 %v1961_v54, %v1508_v24  ;;  %v480_v31 = vadd.f32 %v1963_v46, %v1962_v49 }
  0xec   :  { %650 = vst [vmem:[%s1916_s5 + $0xb0] sm:$0xff] %v614_v15  ;;  %651 = vst [vmem:[%s1916_s5 + $0xb8] sm:$0xff] %v615_v4  ;;  %v481_v53 = vadd.f32 %v1965_v5, %v1964_v56 }
 0x14f   :  { %v864_v1 = vpop.xlane.xlu1 %863 }
 0x150   :  { %866 = vst.msk [vmem:[%s1917_s7] sm:$0xff] %vm865_vm2, %v864_v1 }
 0x153   :  { %v514_v12 = vpop.permute.xlu1 %513 }
 0x154   :  { %v584_v6 = vmul.f32 %v1957_v10, %v514_v12  ;;  %v585_v34 = vmul.f32 %v1322_v11, %v514_v12  ;;  %v586_v24 = vmul.f32 %v1958_v59, %v514_v12  ;;  %v587_v19 = vmul.f32 %v1325_v36, %v514_v12 }
 0x155   :  { %v875_v30 = vpop.xlane.xlu0 %874 }
 0x156   :  { %876 = vst.msk [vmem:[%s1918_s8] sm:$0xff] %vm865_vm2, %v875_v30  ;;  %v620_v33 = vadd.f32 %v584_v6, %v476_v41  ;;  %v621_v51 = vadd.f32 %v585_v34, %v477_v23  ;;  %v622_v29 = vadd.f32 %v586_v24, %v478_v37  ;;  %v623_v26 = vadd.f32 %v587_v19, %v479_v42 }
 0x158   :  { %656 = vst [vmem:[%s1916_s5 + $0xe0] sm:$0xff] %v620_v33  ;;  %657 = vst [vmem:[%s1916_s5 + $0xe8] sm:$0xff] %v621_v51 }
 0x159   :  { %658 = vst [vmem:[%s1916_s5 + $0xf0] sm:$0xff] %v622_v29  ;;  %659 = vst [vmem:[%s1916_s5 + $0xf8] sm:$0xff] %v623_v26 }
 0x15d   :  { %v518_v28 = vpop.permute.xlu0 %517 }
 0x15e   :  { %v588_v16 = vmul.f32 %v1957_v10, %v518_v28  ;;  %v589_v17 = vmul.f32 %v1322_v11, %v518_v28  ;;  %v590_v44 = vmul.f32 %v1958_v59, %v518_v28  ;;  %v591_v3 = vmul.f32 %v1325_v36, %v518_v28 }
 0x160   :  { %v624_v8 = vadd.f32 %v588_v16, %v480_v31  ;;  %v625_v0 = vadd.f32 %v589_v17, %v481_v53  ;;  %v626_v60 = vadd.f32 %v590_v44, %v482_v9  ;;  %v627_v61 = vadd.f32 %v591_v3, %v483_v21 }
 0x162   :  { %660 = vst [vmem:[%s1916_s5 + $0x100] sm:$0xff] %v624_v8  ;;  %661 = vst [vmem:[%s1916_s5 + $0x108] sm:$0xff] %v625_v0 }
 0x163   :  { %662 = vst [vmem:[%s1916_s5 + $0x110] sm:$0xff] %v626_v60  ;;  %663 = vst [vmem:[%s1916_s5 + $0x118] sm:$0xff] %v627_v61 }

// kernel: basic_decoder_block_forward.8
= control target key start
LH: loop header
LB: loop body
LE: loop exit
PB: predicated region body
PF: predicated region fallthrough
CT: control target
= control target key end

     0   :  { %vm44_vm0 = vcmask 15360   ;;  %vm49_vm1 = vcmask 7168   ;;  %s173_s0 = inlined_call_operand.vmem [shape: f32[8,2178], index: 0, kind: input, shape index: {}]   ;;  %s174_s1 = inlined_call_operand.vmem [shape: f32[8,1], index: 1, kind: output, shape index: {0}]   ;;  %s175_s2 = inlined_call_operand.vmem [shape: f32[8,1], index: 2, kind: output, shape index: {1}]  }
   0x1   :  { %v10_v0 = vld [vmem:[%s173_s0] sm:$0xff]  ;;  %v11_v1 = vld [vmem:[%s173_s0 + $0x8] sm:$0xff]  ;;  %v12_v2 = vld [vmem:[%s173_s0 + $0x10] sm:$0xff] }
   0x2   :  { %v28_v3 = vadd.f32 %v11_v1, %v10_v0  ;;  %v51_v4 = vmul.f32 %v10_v0, %v10_v0  ;;  %v52_v5 = vmul.f32 %v11_v1, %v11_v1  ;;  %v13_v6 = vld [vmem:[%s173_s0 + $0x18] sm:$0xff]  ;;  %v53_v8 = vmul.f32 %v12_v2, %v12_v2  ;;  %v14_v9 = vld [vmem:[%s173_s0 + $0x20] sm:$0xff]  ;;  %v15_v13 = vld [vmem:[%s173_s0 + $0x28] sm:$0xff] }
   0x3   :  { %v54_v12 = vmul.f32 %v13_v6, %v13_v6  ;;  %v55_v15 = vmul.f32 %v14_v9, %v14_v9  ;;  %v16_v17 = vld [vmem:[%s173_s0 + $0x30] sm:$0xff]  ;;  %v56_v19 = vmul.f32 %v15_v13, %v15_v13  ;;  %v17_v21 = vld [vmem:[%s173_s0 + $0x38] sm:$0xff]  ;;  %v18_v25 = vld [vmem:[%s173_s0 + $0x40] sm:$0xff] }
   0x4   :  { %v29_v7 = vadd.f32 %v28_v3, %v12_v2  ;;  %v69_v10 = vadd.f32 %v52_v5, %v51_v4  ;;  %v57_v23 = vmul.f32 %v16_v17, %v16_v17  ;;  %v58_v27 = vmul.f32 %v17_v21, %v17_v21  ;;  %v19_v29 = vld [vmem:[%s173_s0 + $0x48] sm:$0xff]  ;;  %v20_v33 = vld [vmem:[%s173_s0 + $0x50] sm:$0xff]  ;;  %v21_v37 = vld [vmem:[%s173_s0 + $0x58] sm:$0xff] }
   0x5   :  { %v59_v31 = vmul.f32 %v18_v25, %v18_v25  ;;  %v60_v35 = vmul.f32 %v19_v29, %v19_v29  ;;  %v61_v39 = vmul.f32 %v20_v33, %v20_v33  ;;  %v22_v41 = vld [vmem:[%s173_s0 + $0x60] sm:$0xff]  ;;  %v62_v43 = vmul.f32 %v21_v37, %v21_v37  ;;  %v23_v45 = vld [vmem:[%s173_s0 + $0x68] sm:$0xff]  ;;  %v24_v49 = vld [vmem:[%s173_s0 + $0x70] sm:$0xff] }
   0x6   :  { %v30_v11 = vadd.f32 %v29_v7, %v13_v6  ;;  %v70_v16 = vadd.f32 %v69_v10, %v53_v8  ;;  %v63_v47 = vmul.f32 %v22_v41, %v22_v41  ;;  %v64_v51 = vmul.f32 %v23_v45, %v23_v45  ;;  %v25_v53 = vld [vmem:[%s173_s0 + $0x78] sm:$0xff]  ;;  %v27_v54 = vld [vmem:[%s173_s0 + $0x88] sm:$0xff]  ;;  %v26_v58 = vld [vmem:[%s173_s0 + $0x80] sm:$0xff] }
   0x7   :  { %v65_v56 = vmul.f32 %v24_v49, %v24_v49  ;;  %v66_v60 = vmul.f32 %v25_v53, %v25_v53  ;;  %v45_v62 = vsel %vm44_vm0, %v27_v54, 0.0  ;;  %v68_v63 = vmul.f32 %v27_v54, %v27_v54 }
   0x8   :  { %v31_v14 = vadd.f32 %v30_v11, %v14_v9  ;;  %v71_v20 = vadd.f32 %v70_v16, %v54_v12  ;;  %v67_v1 = vmul.f32 %v26_v58, %v26_v58 }
   0x9   :  { %v85_v5 = vsel %vm44_vm0, %v68_v63, 0.0 }
   0xa   :  { %v32_v18 = vadd.f32 %v31_v14, %v15_v13  ;;  %v72_v24 = vadd.f32 %v71_v20, %v55_v15 }
   0xc   :  { %v33_v22 = vadd.f32 %v32_v18, %v16_v17  ;;  %v73_v28 = vadd.f32 %v72_v24, %v56_v19 }
   0xe   :  { %v34_v26 = vadd.f32 %v33_v22, %v17_v21  ;;  %v74_v32 = vadd.f32 %v73_v28, %v57_v23 }
  0x10   :  { %v35_v30 = vadd.f32 %v34_v26, %v18_v25  ;;  %v75_v36 = vadd.f32 %v74_v32, %v58_v27 }
  0x12   :  { %v36_v34 = vadd.f32 %v35_v30, %v19_v29  ;;  %v76_v40 = vadd.f32 %v75_v36, %v59_v31 }
  0x14   :  { %v37_v38 = vadd.f32 %v36_v34, %v20_v33  ;;  %v77_v44 = vadd.f32 %v76_v40, %v60_v35 }
  0x16   :  { %v38_v42 = vadd.f32 %v37_v38, %v21_v37  ;;  %v78_v48 = vadd.f32 %v77_v44, %v61_v39 }
  0x18   :  { %v39_v46 = vadd.f32 %v38_v42, %v22_v41  ;;  %v79_v52 = vadd.f32 %v78_v48, %v62_v43 }
  0x1a   :  { %v40_v50 = vadd.f32 %v39_v46, %v23_v45  ;;  %v80_v57 = vadd.f32 %v79_v52, %v63_v47 }
  0x1c   :  { %v41_v55 = vadd.f32 %v40_v50, %v24_v49  ;;  %v81_v61 = vadd.f32 %v80_v57, %v64_v51 }
  0x1e   :  { %v42_v59 = vadd.f32 %v41_v55, %v25_v53  ;;  %v82_v2 = vadd.f32 %v81_v61, %v65_v56 }
  0x20   :  { %v43_v0 = vadd.f32 %v42_v59, %v26_v58  ;;  %v83_v4 = vadd.f32 %v82_v2, %v66_v60 }
  0x22   :  { %v46_v3 = vadd.f32 %v45_v62, %v43_v0  ;;  %v84_v6 = vadd.f32 %v83_v4, %v67_v1 }
  0x24   :  { %47 = vadd.xlane.f32.xlu0 %v46_v3  ;;  %v86_v7 = vadd.f32 %v85_v5, %v84_v6 }
  0x28   :  { %87 = vadd.xlane.f32.xlu0 %v86_v7 }
  0xb1   :  { %v48_v8 = vpop.xlane.xlu0 %47 }
  0xb2   :  { %50 = vst.msk [vmem:[%s174_s1] sm:$0xff] %vm49_vm1, %v48_v8 }
  0xb5   :  { %v88_v9 = vpop.xlane.xlu0 %87 }
  0xb6   :  { %89 = vst.msk [vmem:[%s175_s2] sm:$0xff] %vm49_vm1, %v88_v9 }

// kernel: basic_decoder_block_forward.9
= control target key start
LH: loop header
LB: loop body
LE: loop exit
PB: predicated region body
PF: predicated region fallthrough
CT: control target
= control target key end

     0   :  { %s1433_s15 = smov 0   ;;  %s1435_s16 = smov 0   ;;  %s1972_s0 = inlined_call_operand.vmem [shape: f32[8,2178], index: 0, kind: input, shape index: {}]   ;;  %s1973_s1 = inlined_call_operand.vmem [shape: f32[8,1], index: 1, kind: input, shape index: {}]   ;;  %s1974_s2 = inlined_call_operand.vmem [shape: f32[8,1], index: 2, kind: input, shape index: {}]   ;;  %s1975_s3 = inlined_call_operand.vmem [shape: f32[72,8], index: 3, kind: input, shape index: {}]   ;;  %s1976_s4 = inlined_call_operand.vmem [shape: f32[72,2178], index: 4, kind: output, shape index: {}]  }
   0x1   :  { %s1437_s17 = smov 0  }
   0x2 LB: > { %s1446_s18 = sadd.s32 4294967295, %s1403_s17   ;;  %s1448_s19 = sadd.s32 1, %s1403_s17   ;;  %s1403_s17 = sphi %s1437_s17, %s1980_s17   ;;  %s1399_s16 = sphi %s1435_s16, %s1979_s16   ;;  %s1395_s15 = sphi %s1433_s15, %s1978_s15  }
   0x3   : > { %s107_s20 = ssub.s32 %s1403_s17, %s1448_s19  ;;  %s110_s21 = sadd.s32 1, %s1399_s16 }
   0x4   : > { %p108_p0 = scmp.eq.s32.totalorder %s107_s20, 0  ;;  %p120_p1 = scmp.ne.s32.totalorder %s1399_s16, %s1395_s15 }
   0x5   : > { %p121_p2 = scmp.eq.s32.totalorder %s1446_s18, 1  ;;  %p1233_p3 = scmp.ge.s32.totalorder %s1403_s17, 1 }
   0x6   : > { %s1456_s22 = scalar_select %p108_p0, %s1399_s16, %s110_s21  }
   0x7   : > { %p1458_p4 = por %p121_p2, %p120_p1  ;;  %p163_p5 = scmp.lt.s32.totalorder %s1403_s17, 3 }
   0x9   : > { %p164_p6 = pnand %p1233_p3, %p163_p5 }
   0xa   : > { %v204_v0 = vld [vmem:[%s1973_s1] sm:$0xff] (!%p164_p6)  ;;  %v1405_v1 = vmov (!%p164_p6), 0   ;;  %v1406_v3 = vmov (!%p164_p6), 0.0   ;;  %s188_s28 = smul.u32 (!%p164_p6), 9, %s1446_s18  ;;  %vm297_vm2 = vcmask (!%p164_p6), 64512   ;;  %v1514_v58 = vld [vmem:[%s1975_s3 + $0x28] sm:$0xff] (!%p164_p6) }
   0xb   : > { %167 = sbr.rel (%p164_p6) target bundleno = 476 (0x1dc), region = 36  ;;  %1362 = vset.pattern.permute.xlu0 (!%p164_p6), %v1405_v1  ;;  %v219_v2 = vld [vmem:[%s1974_s2] sm:$0xff] (!%p164_p6)  ;;  %389 = vmatprep.mubr.f32.mxu0 (!%p164_p6), %v1406_v3  ;;  %vm1407_vm10 = vmmov (!%p164_p6), 0   ;;  %s185_s5 = sand.u32 (!%p164_p6), 1, %s1395_s15  }
   0xc   : > { %207 = vperm.xlu0 (!%p164_p6), %1362, %v204_v0   ;;  %419 = vmatprep.mubr.f32.mxu1 (!%p164_p6), %v1406_v3  ;;  %p189_p7 = scmp.lt.s32.totalorder (!%p164_p6), %s188_s28, 17  ;;  %v1509_v57 = vld [vmem:[%s1975_s3] sm:$0xff] (!%p164_p6) }
  0x10   : > { %222 = vperm.xlu0 (!%p164_p6), %1362, %v219_v2  }
  0x12   : > { %s1982_s28 = smov (!%p189_p7, %s188_s28), 17  ;;  %s1292_s15 = smul.u32 (%p1458_p4), 72, %s1446_s18 }
  0x13   : > { %s1234_s29 = sshll.u32 %s1982_s28, 3 }
  0x14   : > { %s1474_s6 = scalar_lea.vmem %s1972_s0, %s1234_s29  ;;  %s1804_s9 = scalar_lea.vmem (%p1458_p4), %s1976_s4, %s1292_s15 }
  0x15   : > { %v196_v4 = vld [vmem:[%s1474_s6 + $0x8] sm:$0xff]  ;;  %v195_v6 = vld [vmem:[%s1474_s6] sm:$0xff]  ;;  %v198_v7 = vld [vmem:[%s1474_s6 + $0x18] sm:$0xff] }
  0x16   : > { %v200_v8 = vld [vmem:[%s1474_s6 + $0x28] sm:$0xff]  ;;  %v197_v9 = vld [vmem:[%s1474_s6 + $0x10] sm:$0xff]  ;;  %v199_v10 = vld [vmem:[%s1474_s6 + $0x20] sm:$0xff] }
  0x17   : > { %v202_v11 = vld [vmem:[%s1474_s6 + $0x38] sm:$0xff]  ;;  %v201_v37 = vld [vmem:[%s1474_s6 + $0x30] sm:$0xff]  ;;  %v203_v43 = vld [vmem:[%s1474_s6 + $0x40] sm:$0xff]  ;;  %s1334_s6 = smul.u32 648, %s185_s5 }
  0x19   : > { %s1709_s7 = scalar_lea.vmem [#allocation2], %s1334_s6 }
  0x8b   : > { %v208_v5 = vpop.permute.xlu0 %207 }
  0x8c   : > { %v211_v12 = vmul.f32 %v208_v5, %v196_v4  ;;  %v210_v13 = vmul.f32 %v208_v5, %v195_v6  ;;  %v213_v14 = vmul.f32 %v208_v5, %v198_v7  ;;  %v215_v15 = vmul.f32 %v208_v5, %v200_v8 }
  0x8d   : > { %v212_v17 = vmul.f32 %v208_v5, %v197_v9  ;;  %v214_v18 = vmul.f32 %v208_v5, %v199_v10  ;;  %v217_v19 = vmul.f32 %v208_v5, %v202_v11  ;;  %v216_v42 = vmul.f32 %v208_v5, %v201_v37  ;;  %v1530_v9 = vld [vmem:[%s1975_s3 + $0x8] sm:$0xff]  ;;  %v1538_v11 = vld [vmem:[%s1975_s3 + $0x30] sm:$0xff] }
  0x8e   : > { %v218_v45 = vmul.f32 %v208_v5, %v203_v43 }
  0x8f   : > { %v223_v16 = vpop.permute.xlu0 %222 }
  0x90   : > { %v226_v20 = vadd.f32 %v223_v16, %v211_v12  ;;  %v225_v21 = vadd.f32 %v223_v16, %v210_v13  ;;  %v1483_v22 = vadd.f32 %v223_v16, %v213_v14  ;;  %v1485_v23 = vadd.f32 %v223_v16, %v215_v15  ;;  %v1550_v13 = vld [vmem:[%s1975_s3 + $0x10] sm:$0xff]  ;;  %v1556_v14 = vld [vmem:[%s1975_s3 + $0x38] sm:$0xff] }
  0x91   : > { %v1487_v24 = vadd.f32 %v223_v16, %v212_v17  ;;  %v1489_v25 = vadd.f32 %v223_v16, %v214_v18  ;;  %v1491_v28 = vadd.f32 %v223_v16, %v217_v19  ;;  %v1500_v44 = vadd.f32 %v223_v16, %v216_v42  ;;  %v1567_v15 = vld [vmem:[%s1975_s3 + $0x18] sm:$0xff]  ;;  %v1573_v17 = vld [vmem:[%s1975_s3 + $0x40] sm:$0xff] }
  0x92   : > { %v244_v26 = vmin.f32 %v226_v20, 0.0  ;;  %v243_v27 = vmin.f32 %v225_v21, 0.0  ;;  %v246_v29 = vmin.f32 %v1483_v22, 0.0  ;;  %v248_v30 = vmin.f32 %v1485_v23, 0.0  ;;  %v1583_v19 = vld [vmem:[%s1975_s3 + $0x20] sm:$0xff] }
  0x93   : > { %v245_v33 = vmin.f32 %v1487_v24, 0.0  ;;  %v247_v36 = vmin.f32 %v1489_v25, 0.0  ;;  %v250_v39 = vmin.f32 %v1491_v28, 0.0  ;;  %v1502_v46 = vadd.f32 %v223_v16, %v218_v45 }
  0x94   : > { %v254_v31 = vmul.f32 1.442695, %v244_v26  ;;  %v252_v32 = vmul.f32 1.442695, %v243_v27  ;;  %v258_v34 = vmul.f32 1.442695, %v246_v29 }
  0x95   : > { %v262_v35 = vmul.f32 1.442695, %v248_v30  ;;  %v256_v38 = vmul.f32 1.442695, %v245_v33  ;;  %v260_v40 = vmul.f32 1.442695, %v247_v36 }
  0x96   : > { %1363 = vpow2.f32 %v254_v31  ;;  %v266_v41 = vmul.f32 1.442695, %v250_v39  ;;  %v249_v47 = vmin.f32 %v1500_v44, 0.0  ;;  %v251_v51 = vmin.f32 %v1502_v46, 0.0 }
  0x97   : > { %1365 = vpow2.f32 %v252_v32  ;;  %vm235_vm0 = vcmp.gt.f32.partialorder %v226_v20, 0.0  ;;  %vm234_vm1 = vcmp.gt.f32.partialorder %v225_v21, 0.0  ;;  %vm237_vm3 = vcmp.gt.f32.partialorder %v1483_v22, 0.0 }
  0x98   : > { %1367 = vpow2.f32 %v258_v34  ;;  %v264_v54 = vmul.f32 1.442695, %v249_v47  ;;  %vm239_vm4 = vcmp.gt.f32.partialorder %v1485_v23, 0.0  ;;  %vm236_vm5 = vcmp.gt.f32.partialorder %v1487_v24, 0.0 }
  0x99   : > { %1369 = vpow2.f32 %v262_v35  ;;  %v268_v1 = vmul.f32 1.442695, %v251_v51  ;;  %vm238_vm6 = vcmp.gt.f32.partialorder %v1489_v25, 0.0  ;;  %vm241_vm7 = vcmp.gt.f32.partialorder %v1491_v28, 0.0 }
  0x9a   : > { %1371 = vpow2.f32 %v256_v38  ;;  %vm240_vm8 = vcmp.gt.f32.partialorder %v1500_v44, 0.0  ;;  %vm242_vm9 = vcmp.gt.f32.partialorder %v1502_v46, 0.0 }
  0x9b   : > { %1373 = vpow2.f32 %v260_v40 }
  0x9c   : > { %1375 = vpow2.f32 %v266_v41 }
  0x9d   : > { %1377 = vpow2.f32 %v264_v54 }
  0x9e   : > { %1379 = vpow2.f32 %v268_v1 }
  0xa0   : > { %v1364_v48 = vpop.eup %1363 }
  0xa1   : > { %v1366_v49 = vpop.eup %1365  ;;  %v1236_v50 = vadd.f32 -1.0, %v1364_v48 }
  0xa2   : > { %v1368_v52 = vpop.eup %1367  ;;  %v1235_v53 = vadd.f32 -1.0, %v1366_v49 }
  0xa3   : > { %v1370_v55 = vpop.eup %1369  ;;  %v280_v56 = vsel %vm235_vm0, %v226_v20, %v1236_v50  ;;  %v1238_v59 = vadd.f32 -1.0, %v1368_v52 }
  0xa4   : > { %v1372_v60 = vpop.eup %1371  ;;  %325 = vmatprep.subr.mxu0 %v280_v56  ;;  %1332 = vmatprep.subr.mxu1 %v280_v56  ;;  %v279_v61 = vsel %vm234_vm1, %v225_v21, %v1235_v53  ;;  %v1240_v62 = vadd.f32 -1.0, %v1370_v55 }
  0xa5   : > { %v1374_v63 = vpop.eup %1373  ;;  %326 = vmatpush1.msra.mxu0 %v279_v61  ;;  %1333 = vmatpush1.msra.mxu1 %v279_v61  ;;  %v1237_v0 = vadd.f32 -1.0, %v1372_v60  ;;  %v282_v4 = vsel %vm237_vm3, %v1483_v22, %v1238_v59 }
  0xa6   : > { %v1376_v2 = vpop.eup %1375  ;;  %1244 = vmatmul.mubr.msk.f32.vlgmr.msra.gmra.mrb[0].mxu0 %vm297_vm2, %v1509_v57  ;;  %1249 = vmatmul.mubr.msk.f32.vlgmr.msra.gmra.mrb[0].mxu1 %vm297_vm2, %v1514_v58  ;;  %v284_v5 = vsel %vm239_vm4, %v1485_v23, %v1240_v62  ;;  %v1239_v6 = vadd.f32 -1.0, %v1374_v63 }
  0xa7   : > { %444 = vmatprep.subr.mxu1 %v282_v4  ;;  %563 = vmatprep.subr.mxu0 %v284_v5  ;;  %v281_v7 = vsel %vm236_vm5, %v1487_v24, %v1237_v0  ;;  %v1242_v8 = vadd.f32 -1.0, %v1376_v2  ;;  %v1378_v16 = vpop.eup %1377 }
  0xa8   : > { %445 = vmatpush1.msra.mxu1 %v281_v7  ;;  %v283_v10 = vsel %vm238_vm6, %v1489_v25, %v1239_v6  ;;  %395 = vmatprep.mubr.f32.mxu0 %v1406_v3  ;;  %v1380_v18 = vpop.eup %1379  ;;  %v1241_v20 = vadd.f32 -1.0, %v1378_v16 }
  0xa9   : > { %564 = vmatpush1.msra.mxu0 %v283_v10  ;;  %v286_v12 = vsel %vm241_vm7, %v1491_v28, %v1242_v8  ;;  %425 = vmatprep.mubr.f32.mxu1 %v1406_v3  ;;  %v1243_v21 = vadd.f32 -1.0, %v1380_v18 }
  0xaa   : > { %682 = vmatprep.subr.mxu1 %v286_v12  ;;  %1245 = vmatmul.mubr.msk.f32.gmra.mrb[2].mxu0 %vm297_vm2, %v1530_v9  ;;  %v285_v22 = vsel %vm240_vm8, %v1500_v44, %v1241_v20 }
  0xab   : > { %1250 = vmatmul.mubr.msk.f32.gmra.mrb[2].mxu1 %vm297_vm2, %v1538_v11  ;;  %401 = vmatprep.mubr.f32.mxu0 %v1406_v3  ;;  %v287_v23 = vsel %vm242_vm9, %v1502_v46, %v1243_v21 }
  0xac   : > { %431 = vmatprep.mubr.f32.mxu1 %v1406_v3  ;;  %1303 = vmatprep.subr.mxu0 %v1406_v3 }
  0xae   : > { %1246 = vmatmul.mubr.msk.f32.gmra.mrb[4].mxu0 %vm297_vm2, %v1550_v13 }
  0xaf   : > { %1251 = vmatmul.mubr.msk.f32.gmra.mrb[4].mxu1 %vm297_vm2, %v1556_v14  ;;  %407 = vmatprep.mubr.f32.mxu0 %v1406_v3 }
  0xb0   : > { %437 = vmatprep.mubr.f32.mxu1 %v1406_v3 }
  0xb2   : > { %1247 = vmatmul.mubr.msk.f32.gmra.mrb[6].mxu0 %vm297_vm2, %v1567_v15 }
  0xb3   : > { %1252 = vmatmul.mubr.msk.f32.gmra.mrb[6].mxu1 %vm297_vm2, %v1573_v17  ;;  %413 = vmatprep.mubr.f32.mxu0 %v1406_v3 }
  0xb4   : > { %508 = vmatprep.mubr.f32.mxu1 %v1406_v3 }
  0xb6   : > { %1248 = vmatmul.mubr.msk.f32.gmra.mrb[8].mxu0 %vm297_vm2, %v1583_v19 }
  0xb7   : > { %1253 = vmatmul.mubr.msk.f32.vlgmr.msra.gmra.mrb[8].mxu1 %vm297_vm2, %v1509_v57  ;;  %627 = vmatprep.mubr.f32.mxu0 %v1406_v3 }
  0xb8   : > { %683 = vmatpush1.msra.mxu1 %v285_v22  ;;  %514 = vmatprep.mubr.f32.mxu1 %v1406_v3 }
  0xba   : > { %1262 = vmatmul.mubr.msk.f32.vlgmr.msra.gmra.mrb[10].mxu0 %vm297_vm2, %v1509_v57 }
  0xbb   : > { %1304 = vmatpush3.msra.mxu0 %v287_v23  ;;  %1254 = vmatmul.mubr.msk.f32.gmra.mrb[10].mxu1 %vm297_vm2, %v1530_v9 }
  0xbc   : > { %633 = vmatprep.mubr.f32.mxu0 %v1406_v3  ;;  %520 = vmatprep.mubr.f32.mxu1 %v1406_v3 }
  0xbe   : > { %1263 = vmatmul.mubr.msk.f32.gmra.mrb[12].mxu0 %vm297_vm2, %v1530_v9 }
  0xbf   : > { %1255 = vmatmul.mubr.msk.f32.gmra.mrb[12].mxu1 %vm297_vm2, %v1550_v13  ;;  %639 = vmatprep.mubr.f32.mxu0 %v1406_v3 }
  0xc0   : > { %526 = vmatprep.mubr.f32.mxu1 %v1406_v3 }
  0xc2   : > { %1264 = vmatmul.mubr.msk.f32.gmra.mrb[14].mxu0 %vm297_vm2, %v1550_v13 }
  0xc3   : > { %1256 = vmatmul.mubr.msk.f32.gmra.mrb[14].mxu1 %vm297_vm2, %v1567_v15  ;;  %645 = vmatprep.mubr.f32.mxu0 %v1406_v3 }
  0xc4   : > { %532 = vmatprep.mubr.f32.mxu1 %v1406_v3 }
  0xc6   : > { %1265 = vmatmul.mubr.msk.f32.gmra.mrb[16].mxu0 %vm297_vm2, %v1567_v15 }
  0xc7   : > { %1257 = vmatmul.mubr.msk.f32.gmra.mrb[16].mxu1 %vm297_vm2, %v1583_v19  ;;  %651 = vmatprep.mubr.f32.mxu0 %v1406_v3 }
  0xc8   : > { %538 = vmatprep.mubr.f32.mxu1 %v1406_v3 }
  0xca   : > { %1266 = vmatmul.mubr.msk.f32.gmra.mrb[18].mxu0 %vm297_vm2, %v1583_v19 }
  0xcb   : > { %1258 = vmatmul.mubr.msk.f32.gmra.mrb[18].mxu1 %vm297_vm2, %v1514_v58  ;;  %657 = vmatprep.mubr.f32.mxu0 %v1406_v3 }
  0xcc   : > { %544 = vmatprep.mubr.f32.mxu1 %v1406_v3 }
  0xce   : > { %1267 = vmatmul.mubr.msk.f32.gmra.mrb[20].mxu0 %vm297_vm2, %v1514_v58 }
  0xcf   : > { %1259 = vmatmul.mubr.msk.f32.gmra.mrb[20].mxu1 %vm297_vm2, %v1538_v11  ;;  %663 = vmatprep.mubr.f32.mxu0 %v1406_v3 }
  0xd0   : > { %550 = vmatprep.mubr.f32.mxu1 %v1406_v3 }
  0xd2   : > { %1268 = vmatmul.mubr.msk.f32.gmra.mrb[22].mxu0 %vm297_vm2, %v1538_v11 }
  0xd3   : > { %1260 = vmatmul.mubr.msk.f32.gmra.mrb[22].mxu1 %vm297_vm2, %v1556_v14  ;;  %669 = vmatprep.mubr.f32.mxu0 %v1406_v3 }
  0xd4   : > { %556 = vmatprep.mubr.f32.mxu1 %v1406_v3 }
  0xd6   : > { %1269 = vmatmul.mubr.msk.f32.gmra.mrb[24].mxu0 %vm297_vm2, %v1556_v14 }
  0xd7   : > { %1261 = vmatmul.mubr.msk.f32.gmra.mrb[24].mxu1 %vm297_vm2, %v1573_v17  ;;  %675 = vmatprep.mubr.f32.mxu0 %v1406_v3 }
  0xd8   : > { %746 = vmatprep.mubr.f32.mxu1 %v1406_v3 }
  0xda   : > { %1270 = vmatmul.mubr.msk.f32.gmra.mrb[26].mxu0 %vm297_vm2, %v1573_v17 }
  0xdb   : > { %1271 = vmatmul.mubr.msk.f32.vlgmr.msra.gmra.mrb[26].mxu1 %vm297_vm2, %v1509_v57  ;;  %1305 = vmatprep.mubr.msk.f32.mxu0 %vm1407_vm10, %v1406_v3 }
  0xdc   : > { %752 = vmatprep.mubr.f32.mxu1 %v1406_v3 }
  0xde   : > { %1306 = vmatmul.mubr.msk.f32.vlgmr.msra.gmra.mrb[28].mxu0 %vm297_vm2, %v1509_v57 }
  0xdf   : > { %1272 = vmatmul.mubr.msk.f32.gmra.mrb[28].mxu1 %vm297_vm2, %v1530_v9  ;;  %1308 = vmatprep.mubr.msk.f32.mxu0 %vm1407_vm10, %v1406_v3 }
  0xe0   : > { %758 = vmatprep.mubr.f32.mxu1 %v1406_v3 }
  0xe2   : > { %1309 = vmatmul.mubr.msk.f32.gmra.mrb[30].mxu0 %vm297_vm2, %v1530_v9 }
  0xe3   : > { %1273 = vmatmul.mubr.msk.f32.gmra.mrb[30].mxu1 %vm297_vm2, %v1550_v13  ;;  %1311 = vmatprep.mubr.msk.f32.mxu0 %vm1407_vm10, %v1406_v3 }
  0xe4   : > { %764 = vmatprep.mubr.f32.mxu1 %v1406_v3 }
  0xe6   : > { %1312 = vmatmul.mubr.msk.f32.gmra.mrb[32].mxu0 %vm297_vm2, %v1550_v13 }
  0xe7   : > { %1274 = vmatmul.mubr.msk.f32.gmra.mrb[32].mxu1 %vm297_vm2, %v1567_v15  ;;  %1314 = vmatprep.mubr.msk.f32.mxu0 %vm1407_vm10, %v1406_v3 }
  0xe8   : > { %770 = vmatprep.mubr.f32.mxu1 %v1406_v3 }
  0xea   : > { %1315 = vmatmul.mubr.msk.f32.gmra.mrb[34].mxu0 %vm297_vm2, %v1567_v15 }
  0xeb   : > { %1275 = vmatmul.mubr.msk.f32.gmra.mrb[34].mxu1 %vm297_vm2, %v1583_v19  ;;  %1317 = vmatprep.mubr.msk.f32.mxu0 %vm1407_vm10, %v1406_v3 }
  0xec   : > { %776 = vmatprep.mubr.f32.mxu1 %v1406_v3 }
  0xee   : > { %1318 = vmatmul.mubr.msk.f32.gmra.mrb[36].mxu0 %vm297_vm2, %v1583_v19 }
  0xef   : > { %1276 = vmatmul.mubr.msk.f32.gmra.mrb[36].mxu1 %vm297_vm2, %v1514_v58  ;;  %1320 = vmatprep.mubr.msk.f32.mxu0 %vm1407_vm10, %v1406_v3 }
  0xf0   : > { %782 = vmatprep.mubr.f32.mxu1 %v1406_v3 }
  0xf2   : > { %1321 = vmatmul.mubr.msk.f32.gmra.mrb[38].mxu0 %vm297_vm2, %v1514_v58 }
  0xf3   : > { %1277 = vmatmul.mubr.msk.f32.gmra.mrb[38].mxu1 %vm297_vm2, %v1538_v11  ;;  %1323 = vmatprep.mubr.msk.f32.mxu0 %vm1407_vm10, %v1406_v3 }
  0xf4   : > { %788 = vmatprep.mubr.f32.mxu1 %v1406_v3 }
  0xf6   : > { %1324 = vmatmul.mubr.msk.f32.gmra.mrb[40].mxu0 %vm297_vm2, %v1538_v11 }
  0xf7   : > { %1278 = vmatmul.mubr.msk.f32.gmra.mrb[40].mxu1 %vm297_vm2, %v1556_v14  ;;  %1326 = vmatprep.mubr.msk.f32.mxu0 %vm1407_vm10, %v1406_v3 }
  0xf8   : > { %794 = vmatprep.mubr.f32.mxu1 %v1406_v3 }
  0xfa   : > { %1327 = vmatmul.mubr.msk.f32.gmra.mrb[42].mxu0 %vm297_vm2, %v1556_v14 }
  0xfb   : > { %1279 = vmatmul.mubr.msk.f32.gmra.mrb[42].mxu1 %vm297_vm2, %v1573_v17  ;;  %1329 = vmatprep.mubr.msk.f32.mxu0 %vm1407_vm10, %v1406_v3 }
  0xfe   : > { %1330 = vmatmul.mubr.msk.f32.gmra.mrb[44].mxu0 %vm297_vm2, %v1573_v17 }
 0x179   : > { %v391_v24 = vpop.f32.mrb[0].mxu0  ;;  %v421_v25 = vpop.f32.mrb[0].mxu1 }
 0x17a   : > { %911 = vst [vmem:[%s1709_s7] sm:$0xff] %v391_v24  ;;  %v393_v3 = vpop.f32.mrb[1].mxu0  ;;  %956 = vst [vmem:[%s1709_s7 + $0x168] sm:$0xff] %v421_v25  ;;  %v423_v26 = vpop.f32.mrb[1].mxu1 }
 0x17b   : > { %912 = vst [vmem:[%s1709_s7 + $0x8] sm:$0xff] %v393_v3  ;;  %957 = vst [vmem:[%s1709_s7 + $0x170] sm:$0xff] %v423_v26 }
 0x17d   : > { %v397_v27 = vpop.f32.mrb[2].mxu0 }
 0x17e   : > { %920 = vst [vmem:[%s1709_s7 + $0x48] sm:$0xff] %v397_v27  ;;  %v399_v28 = vpop.f32.mrb[3].mxu0  ;;  %v427_v29 = vpop.f32.mrb[2].mxu1 }
 0x17f   : > { %921 = vst [vmem:[%s1709_s7 + $0x50] sm:$0xff] %v399_v28  ;;  %965 = vst [vmem:[%s1709_s7 + $0x1b0] sm:$0xff] %v427_v29  ;;  %v429_v30 = vpop.f32.mrb[3].mxu1 }
 0x180   : > { %966 = vst [vmem:[%s1709_s7 + $0x1b8] sm:$0xff] %v429_v30 }
 0x181   : > { %v403_v31 = vpop.f32.mrb[4].mxu0 }
 0x182   : > { %929 = vst [vmem:[%s1709_s7 + $0x90] sm:$0xff] %v403_v31  ;;  %v405_v32 = vpop.f32.mrb[5].mxu0  ;;  %v433_v33 = vpop.f32.mrb[4].mxu1 }
 0x183   : > { %930 = vst [vmem:[%s1709_s7 + $0x98] sm:$0xff] %v405_v32  ;;  %974 = vst [vmem:[%s1709_s7 + $0x1f8] sm:$0xff] %v433_v33  ;;  %v435_v34 = vpop.f32.mrb[5].mxu1 }
 0x184   : > { %975 = vst [vmem:[%s1709_s7 + $0x200] sm:$0xff] %v435_v34 }
 0x185   : > { %v409_v35 = vpop.f32.mrb[6].mxu0 }
 0x186   : > { %938 = vst [vmem:[%s1709_s7 + $0xd8] sm:$0xff] %v409_v35  ;;  %v411_v36 = vpop.f32.mrb[7].mxu0  ;;  %v439_v37 = vpop.f32.mrb[6].mxu1 }
 0x187   : > { %939 = vst [vmem:[%s1709_s7 + $0xe0] sm:$0xff] %v411_v36  ;;  %983 = vst [vmem:[%s1709_s7 + $0x240] sm:$0xff] %v439_v37  ;;  %v441_v38 = vpop.f32.mrb[7].mxu1 }
 0x188   : > { %984 = vst [vmem:[%s1709_s7 + $0x248] sm:$0xff] %v441_v38 }
 0x189   : > { %v415_v39 = vpop.f32.mrb[8].mxu0 }
 0x18a   : > { %947 = vst [vmem:[%s1709_s7 + $0x120] sm:$0xff] %v415_v39  ;;  %v417_v40 = vpop.f32.mrb[9].mxu0  ;;  %v510_v41 = vpop.f32.mrb[8].mxu1 }
 0x18b   : > { %948 = vst [vmem:[%s1709_s7 + $0x128] sm:$0xff] %v417_v40  ;;  %913 = vst [vmem:[%s1709_s7 + $0x10] sm:$0xff] %v510_v41  ;;  %v512_v42 = vpop.f32.mrb[9].mxu1 }
 0x18c   : > { %914 = vst [vmem:[%s1709_s7 + $0x18] sm:$0xff] %v512_v42 }
 0x18d   : > { %v629_v43 = vpop.f32.mrb[10].mxu0 }
 0x18e   : > { %915 = vst [vmem:[%s1709_s7 + $0x20] sm:$0xff] %v629_v43  ;;  %v631_v44 = vpop.f32.mrb[11].mxu0  ;;  %v516_v45 = vpop.f32.mrb[10].mxu1 }
 0x18f   : > { %916 = vst [vmem:[%s1709_s7 + $0x28] sm:$0xff] %v631_v44  ;;  %922 = vst [vmem:[%s1709_s7 + $0x58] sm:$0xff] %v516_v45  ;;  %v518_v46 = vpop.f32.mrb[11].mxu1 }
 0x190   : > { %923 = vst [vmem:[%s1709_s7 + $0x60] sm:$0xff] %v518_v46 }
 0x191   : > { %v635_v47 = vpop.f32.mrb[12].mxu0 }
 0x192   : > { %924 = vst [vmem:[%s1709_s7 + $0x68] sm:$0xff] %v635_v47  ;;  %v637_v48 = vpop.f32.mrb[13].mxu0  ;;  %v522_v49 = vpop.f32.mrb[12].mxu1 }
 0x193   : > { %925 = vst [vmem:[%s1709_s7 + $0x70] sm:$0xff] %v637_v48  ;;  %931 = vst [vmem:[%s1709_s7 + $0xa0] sm:$0xff] %v522_v49  ;;  %v524_v50 = vpop.f32.mrb[13].mxu1  ;;  %v1014_v49 = vld [vmem:[%s1709_s7] sm:$0xff] (%p1458_p4) }
 0x194   : > { %932 = vst [vmem:[%s1709_s7 + $0xa8] sm:$0xff] %v524_v50  ;;  %v1016_v50 = vld [vmem:[%s1709_s7 + $0x8] sm:$0xff] (%p1458_p4)  ;;  %1015 = vst [vmem:[%s1804_s9] sm:$0xff] (%p1458_p4), %v1014_v49  ;;  %v1142_v49 = vld [vmem:[%s1709_s7 + $0x200] sm:$0xff] (%p1458_p4) }
 0x195   : > { %v641_v51 = vpop.f32.mrb[14].mxu0  ;;  %1017 = vst [vmem:[%s1804_s9 + $0x8] sm:$0xff] (%p1458_p4), %v1016_v50  ;;  %1143 = vst [vmem:[%s1804_s9 + $0x3f8] sm:$0xff] (%p1458_p4), %v1142_v49 }
 0x196   : > { %933 = vst [vmem:[%s1709_s7 + $0xb0] sm:$0xff] %v641_v51  ;;  %v643_v52 = vpop.f32.mrb[15].mxu0  ;;  %v528_v53 = vpop.f32.mrb[14].mxu1  ;;  %v1018_v51 = vld [vmem:[%s1709_s7 + $0x10] sm:$0xff] (%p1458_p4) }
 0x197   : > { %934 = vst [vmem:[%s1709_s7 + $0xb8] sm:$0xff] %v643_v52  ;;  %940 = vst [vmem:[%s1709_s7 + $0xe8] sm:$0xff] %v528_v53  ;;  %v530_v54 = vpop.f32.mrb[15].mxu1  ;;  %v1020_v52 = vld [vmem:[%s1709_s7 + $0x18] sm:$0xff] (%p1458_p4)  ;;  %v1022_v53 = vld [vmem:[%s1709_s7 + $0x20] sm:$0xff] (%p1458_p4) }
 0x198   : > { %941 = vst [vmem:[%s1709_s7 + $0xf0] sm:$0xff] %v530_v54  ;;  %v1024_v54 = vld [vmem:[%s1709_s7 + $0x28] sm:$0xff] (%p1458_p4)  ;;  %1019 = vst [vmem:[%s1804_s9 + $0x10] sm:$0xff] (%p1458_p4), %v1018_v51 }
 0x199   : > { %v647_v55 = vpop.f32.mrb[16].mxu0  ;;  %1021 = vst [vmem:[%s1804_s9 + $0x18] sm:$0xff] (%p1458_p4), %v1020_v52  ;;  %1023 = vst [vmem:[%s1804_s9 + $0x20] sm:$0xff] (%p1458_p4), %v1022_v53 }
 0x19a   : > { %942 = vst [vmem:[%s1709_s7 + $0xf8] sm:$0xff] %v647_v55  ;;  %v649_v56 = vpop.f32.mrb[17].mxu0  ;;  %v534_v57 = vpop.f32.mrb[16].mxu1  ;;  %1025 = vst [vmem:[%s1804_s9 + $0x28] sm:$0xff] (%p1458_p4), %v1024_v54 }
 0x19b   : > { %943 = vst [vmem:[%s1709_s7 + $0x100] sm:$0xff] %v649_v56  ;;  %949 = vst [vmem:[%s1709_s7 + $0x130] sm:$0xff] %v534_v57  ;;  %v536_v58 = vpop.f32.mrb[17].mxu1 }
 0x19c   : > { %950 = vst [vmem:[%s1709_s7 + $0x138] sm:$0xff] %v536_v58  ;;  %v1032_v58 = vld [vmem:[%s1709_s7 + $0x48] sm:$0xff] (%p1458_p4) }
 0x19d   : > { %v653_v59 = vpop.f32.mrb[18].mxu0  ;;  %1033 = vst [vmem:[%s1804_s9 + $0x90] sm:$0xff] (%p1458_p4), %v1032_v58  ;;  %v1160_v58 = vld [vmem:[%s1709_s7 + $0x248] sm:$0xff] (%p1458_p4) }
 0x19e   : > { %951 = vst [vmem:[%s1709_s7 + $0x140] sm:$0xff] %v653_v59  ;;  %v655_v60 = vpop.f32.mrb[19].mxu0  ;;  %v540_v61 = vpop.f32.mrb[18].mxu1  ;;  %v1034_v59 = vld [vmem:[%s1709_s7 + $0x50] sm:$0xff] (%p1458_p4)  ;;  %1161 = vst [vmem:[%s1804_s9 + $0x488] sm:$0xff] (%p1458_p4), %v1160_v58 }
 0x19f   : > { %952 = vst [vmem:[%s1709_s7 + $0x148] sm:$0xff] %v655_v60  ;;  %958 = vst [vmem:[%s1709_s7 + $0x178] sm:$0xff] %v540_v61  ;;  %v542_v62 = vpop.f32.mrb[19].mxu1  ;;  %v1036_v60 = vld [vmem:[%s1709_s7 + $0x58] sm:$0xff] (%p1458_p4)  ;;  %v1038_v61 = vld [vmem:[%s1709_s7 + $0x60] sm:$0xff] (%p1458_p4) }
 0x1a0   : > { %959 = vst [vmem:[%s1709_s7 + $0x180] sm:$0xff] %v542_v62  ;;  %1035 = vst [vmem:[%s1804_s9 + $0x98] sm:$0xff] (%p1458_p4), %v1034_v59  ;;  %v1040_v62 = vld [vmem:[%s1709_s7 + $0x68] sm:$0xff] (%p1458_p4) }
 0x1a1   : > { %v659_v63 = vpop.f32.mrb[20].mxu0  ;;  %1037 = vst [vmem:[%s1804_s9 + $0xa0] sm:$0xff] (%p1458_p4), %v1036_v60  ;;  %1039 = vst [vmem:[%s1804_s9 + $0xa8] sm:$0xff] (%p1458_p4), %v1038_v61 }
 0x1a2   : > { %960 = vst [vmem:[%s1709_s7 + $0x188] sm:$0xff] %v659_v63  ;;  %v661_v0 = vpop.f32.mrb[21].mxu0  ;;  %v546_v1 = vpop.f32.mrb[20].mxu1  ;;  %v1042_v63 = vld [vmem:[%s1709_s7 + $0x70] sm:$0xff] (%p1458_p4)  ;;  %1041 = vst [vmem:[%s1804_s9 + $0xb0] sm:$0xff] (%p1458_p4), %v1040_v62 }
 0x1a3   : > { %961 = vst [vmem:[%s1709_s7 + $0x190] sm:$0xff] %v661_v0  ;;  %967 = vst [vmem:[%s1709_s7 + $0x1c0] sm:$0xff] %v546_v1  ;;  %v548_v2 = vpop.f32.mrb[21].mxu1 }
 0x1a4   : > { %968 = vst [vmem:[%s1709_s7 + $0x1c8] sm:$0xff] %v548_v2  ;;  %1043 = vst [vmem:[%s1804_s9 + $0xb8] sm:$0xff] (%p1458_p4), %v1042_v63 }
 0x1a5   : > { %v665_v4 = vpop.f32.mrb[22].mxu0 }
 0x1a6   : > { %969 = vst [vmem:[%s1709_s7 + $0x1d0] sm:$0xff] %v665_v4  ;;  %v667_v5 = vpop.f32.mrb[23].mxu0  ;;  %v552_v6 = vpop.f32.mrb[22].mxu1  ;;  %v1050_v4 = vld [vmem:[%s1709_s7 + $0x90] sm:$0xff] (%p1458_p4) }
 0x1a7   : > { %970 = vst [vmem:[%s1709_s7 + $0x1d8] sm:$0xff] %v667_v5  ;;  %976 = vst [vmem:[%s1709_s7 + $0x208] sm:$0xff] %v552_v6  ;;  %v554_v7 = vpop.f32.mrb[23].mxu1  ;;  %v1052_v5 = vld [vmem:[%s1709_s7 + $0x98] sm:$0xff] (%p1458_p4)  ;;  %v1054_v6 = vld [vmem:[%s1709_s7 + $0xa0] sm:$0xff] (%p1458_p4) }
 0x1a8   : > { %977 = vst [vmem:[%s1709_s7 + $0x210] sm:$0xff] %v554_v7  ;;  %1051 = vst [vmem:[%s1804_s9 + $0x120] sm:$0xff] (%p1458_p4), %v1050_v4  ;;  %v1056_v7 = vld [vmem:[%s1709_s7 + $0xa8] sm:$0xff] (%p1458_p4) }
 0x1a9   : > { %v671_v8 = vpop.f32.mrb[24].mxu0  ;;  %1053 = vst [vmem:[%s1804_s9 + $0x128] sm:$0xff] (%p1458_p4), %v1052_v5  ;;  %1055 = vst [vmem:[%s1804_s9 + $0x130] sm:$0xff] (%p1458_p4), %v1054_v6 }
 0x1aa   : > { %978 = vst [vmem:[%s1709_s7 + $0x218] sm:$0xff] %v671_v8  ;;  %v673_v9 = vpop.f32.mrb[25].mxu0  ;;  %v558_v10 = vpop.f32.mrb[24].mxu1  ;;  %v1058_v8 = vld [vmem:[%s1709_s7 + $0xb0] sm:$0xff] (%p1458_p4)  ;;  %1057 = vst [vmem:[%s1804_s9 + $0x138] sm:$0xff] (%p1458_p4), %v1056_v7 }
 0x1ab   : > { %979 = vst [vmem:[%s1709_s7 + $0x220] sm:$0xff] %v673_v9  ;;  %985 = vst [vmem:[%s1709_s7 + $0x250] sm:$0xff] %v558_v10  ;;  %v560_v11 = vpop.f32.mrb[25].mxu1  ;;  %v1060_v9 = vld [vmem:[%s1709_s7 + $0xb8] sm:$0xff] (%p1458_p4) }
 0x1ac   : > { %986 = vst [vmem:[%s1709_s7 + $0x258] sm:$0xff] %v560_v11  ;;  %1059 = vst [vmem:[%s1804_s9 + $0x140] sm:$0xff] (%p1458_p4), %v1058_v8 }
 0x1ad   : > { %v677_v12 = vpop.f32.mrb[26].mxu0  ;;  %1061 = vst [vmem:[%s1804_s9 + $0x148] sm:$0xff] (%p1458_p4), %v1060_v9 }
 0x1ae   : > { %987 = vst [vmem:[%s1709_s7 + $0x260] sm:$0xff] %v677_v12  ;;  %v679_v13 = vpop.f32.mrb[27].mxu0  ;;  %v748_v14 = vpop.f32.mrb[26].mxu1  ;;  %v1144_v50 = vld [vmem:[%s1709_s7 + $0x208] sm:$0xff] (%p1458_p4) }
 0x1af   : > { %988 = vst [vmem:[%s1709_s7 + $0x268] sm:$0xff] %v679_v13  ;;  %917 = vst [vmem:[%s1709_s7 + $0x30] sm:$0xff] %v748_v14  ;;  %v750_v15 = vpop.f32.mrb[27].mxu1  ;;  %v1068_v13 = vld [vmem:[%s1709_s7 + $0xd8] sm:$0xff] (%p1458_p4)  ;;  %v1070_v14 = vld [vmem:[%s1709_s7 + $0xe0] sm:$0xff] (%p1458_p4) }
 0x1b0   : > { %918 = vst [vmem:[%s1709_s7 + $0x38] sm:$0xff] %v750_v15  ;;  %v1072_v15 = vld [vmem:[%s1709_s7 + $0xe8] sm:$0xff] (%p1458_p4)  ;;  %1069 = vst [vmem:[%s1804_s9 + $0x1b0] sm:$0xff] (%p1458_p4), %v1068_v13  ;;  %v1146_v51 = vld [vmem:[%s1709_s7 + $0x210] sm:$0xff] (%p1458_p4) }
 0x1b1   : > { %v867_v16 = vpop.f32.mrb[28].mxu0  ;;  %1071 = vst [vmem:[%s1804_s9 + $0x1b8] sm:$0xff] (%p1458_p4), %v1070_v14  ;;  %1073 = vst [vmem:[%s1804_s9 + $0x1c0] sm:$0xff] (%p1458_p4), %v1072_v15  ;;  %v1148_v52 = vld [vmem:[%s1709_s7 + $0x218] sm:$0xff] (%p1458_p4) }
 0x1b2   : > { %919 = vst [vmem:[%s1709_s7 + $0x40] sm:$0xff] %v867_v16  ;;  %v1307_v17 = vpop.f32.mrb[29].mxu0  ;;  %v754_v18 = vpop.f32.mrb[28].mxu1  ;;  %v1074_v16 = vld [vmem:[%s1709_s7 + $0xf0] sm:$0xff] (%p1458_p4)  ;;  %1145 = vst [vmem:[%s1804_s9 + $0x400] sm:$0xff] (%p1458_p4), %v1144_v50  ;;  %v1150_v53 = vld [vmem:[%s1709_s7 + $0x220] sm:$0xff] (%p1458_p4) }
 0x1b3   : > { %926 = vst [vmem:[%s1709_s7 + $0x78] sm:$0xff] %v754_v18  ;;  %v756_v19 = vpop.f32.mrb[29].mxu1  ;;  %v1076_v17 = vld [vmem:[%s1709_s7 + $0xf8] sm:$0xff] (%p1458_p4)  ;;  %v1078_v18 = vld [vmem:[%s1709_s7 + $0x100] sm:$0xff] (%p1458_p4)  ;;  %1075 = vst [vmem:[%s1804_s9 + $0x1c8] sm:$0xff] (%p1458_p4), %v1074_v16 }
 0x1b4   : > { %927 = vst [vmem:[%s1709_s7 + $0x80] sm:$0xff] %v756_v19  ;;  %1077 = vst [vmem:[%s1804_s9 + $0x1d0] sm:$0xff] (%p1458_p4), %v1076_v17  ;;  %v1162_v59 = vld [vmem:[%s1709_s7 + $0x250] sm:$0xff] (%p1458_p4)  ;;  %v1164_v60 = vld [vmem:[%s1709_s7 + $0x258] sm:$0xff] (%p1458_p4) }
 0x1b5   : > { %v872_v20 = vpop.f32.mrb[30].mxu0  ;;  %1079 = vst [vmem:[%s1804_s9 + $0x1d8] sm:$0xff] (%p1458_p4), %v1078_v18  ;;  %1147 = vst [vmem:[%s1804_s9 + $0x408] sm:$0xff] (%p1458_p4), %v1146_v51  ;;  %v1166_v61 = vld [vmem:[%s1709_s7 + $0x260] sm:$0xff] (%p1458_p4) }
 0x1b6   : > { %928 = vst [vmem:[%s1709_s7 + $0x88] sm:$0xff] %v872_v20  ;;  %v1310_v21 = vpop.f32.mrb[31].mxu0  ;;  %v760_v22 = vpop.f32.mrb[30].mxu1  ;;  %v1026_v55 = vld [vmem:[%s1709_s7 + $0x30] sm:$0xff] (%p1458_p4)  ;;  %1149 = vst [vmem:[%s1804_s9 + $0x410] sm:$0xff] (%p1458_p4), %v1148_v52  ;;  %v1168_v62 = vld [vmem:[%s1709_s7 + $0x268] sm:$0xff] (%p1458_p4) }
 0x1b7   : > { %935 = vst [vmem:[%s1709_s7 + $0xc0] sm:$0xff] %v760_v22  ;;  %v762_v23 = vpop.f32.mrb[31].mxu1  ;;  %v1028_v56 = vld [vmem:[%s1709_s7 + $0x38] sm:$0xff] (%p1458_p4)  ;;  %1027 = vst [vmem:[%s1804_s9 + $0x30] sm:$0xff] (%p1458_p4), %v1026_v55  ;;  %v1086_v22 = vld [vmem:[%s1709_s7 + $0x120] sm:$0xff] (%p1458_p4) }
 0x1b8   : > { %936 = vst [vmem:[%s1709_s7 + $0xc8] sm:$0xff] %v762_v23  ;;  %1029 = vst [vmem:[%s1804_s9 + $0x38] sm:$0xff] (%p1458_p4), %v1028_v56  ;;  %v1088_v23 = vld [vmem:[%s1709_s7 + $0x128] sm:$0xff] (%p1458_p4) }
 0x1b9   : > { %v877_v24 = vpop.f32.mrb[32].mxu0  ;;  %v1030_v57 = vld [vmem:[%s1709_s7 + $0x40] sm:$0xff] (%p1458_p4)  ;;  %1087 = vst [vmem:[%s1804_s9 + $0x240] sm:$0xff] (%p1458_p4), %v1086_v22  ;;  %1089 = vst [vmem:[%s1804_s9 + $0x248] sm:$0xff] (%p1458_p4), %v1088_v23 }
 0x1ba   : > { %937 = vst [vmem:[%s1709_s7 + $0xd0] sm:$0xff] %v877_v24  ;;  %v1313_v25 = vpop.f32.mrb[33].mxu0  ;;  %v766_v3 = vpop.f32.mrb[32].mxu1  ;;  %1031 = vst [vmem:[%s1804_s9 + $0x40] sm:$0xff] (%p1458_p4), %v1030_v57  ;;  %v1044_v0 = vld [vmem:[%s1709_s7 + $0x78] sm:$0xff] (%p1458_p4)  ;;  %v1090_v24 = vld [vmem:[%s1709_s7 + $0x130] sm:$0xff] (%p1458_p4) }
 0x1bb   : > { %944 = vst [vmem:[%s1709_s7 + $0x108] sm:$0xff] %v766_v3  ;;  %v768_v26 = vpop.f32.mrb[33].mxu1  ;;  %v1046_v1 = vld [vmem:[%s1709_s7 + $0x80] sm:$0xff] (%p1458_p4)  ;;  %1045 = vst [vmem:[%s1804_s9 + $0xc0] sm:$0xff] (%p1458_p4), %v1044_v0  ;;  %v1092_v25 = vld [vmem:[%s1709_s7 + $0x138] sm:$0xff] (%p1458_p4) }
 0x1bc   : > { %945 = vst [vmem:[%s1709_s7 + $0x110] sm:$0xff] %v768_v26  ;;  %1047 = vst [vmem:[%s1804_s9 + $0xc8] sm:$0xff] (%p1458_p4), %v1046_v1  ;;  %v1094_v3 = vld [vmem:[%s1709_s7 + $0x140] sm:$0xff] (%p1458_p4)  ;;  %v1096_v26 = vld [vmem:[%s1709_s7 + $0x148] sm:$0xff] (%p1458_p4) }
 0x1bd   : > { %v882_v27 = vpop.f32.mrb[34].mxu0  ;;  %v1048_v2 = vld [vmem:[%s1709_s7 + $0x88] sm:$0xff] (%p1458_p4)  ;;  %1091 = vst [vmem:[%s1804_s9 + $0x250] sm:$0xff] (%p1458_p4), %v1090_v24  ;;  %1093 = vst [vmem:[%s1804_s9 + $0x258] sm:$0xff] (%p1458_p4), %v1092_v25  ;;  %v1158_v57 = vld [vmem:[%s1709_s7 + $0x240] sm:$0xff] (%p1458_p4) }
 0x1be   : > { %946 = vst [vmem:[%s1709_s7 + $0x118] sm:$0xff] %v882_v27  ;;  %v1316_v28 = vpop.f32.mrb[35].mxu0  ;;  %v772_v29 = vpop.f32.mrb[34].mxu1  ;;  %1049 = vst [vmem:[%s1804_s9 + $0xd0] sm:$0xff] (%p1458_p4), %v1048_v2  ;;  %v1062_v10 = vld [vmem:[%s1709_s7 + $0xc0] sm:$0xff] (%p1458_p4) }
 0x1bf   : > { %953 = vst [vmem:[%s1709_s7 + $0x150] sm:$0xff] %v772_v29  ;;  %v774_v30 = vpop.f32.mrb[35].mxu1  ;;  %v1064_v11 = vld [vmem:[%s1709_s7 + $0xc8] sm:$0xff] (%p1458_p4)  ;;  %1063 = vst [vmem:[%s1804_s9 + $0x150] sm:$0xff] (%p1458_p4), %v1062_v10 }
 0x1c0   : > { %954 = vst [vmem:[%s1709_s7 + $0x158] sm:$0xff] %v774_v30  ;;  %1065 = vst [vmem:[%s1804_s9 + $0x158] sm:$0xff] (%p1458_p4), %v1064_v11  ;;  %v1104_v30 = vld [vmem:[%s1709_s7 + $0x168] sm:$0xff] (%p1458_p4) }
 0x1c1   : > { %v887_v31 = vpop.f32.mrb[36].mxu0  ;;  %v1066_v12 = vld [vmem:[%s1709_s7 + $0xd0] sm:$0xff] (%p1458_p4)  ;;  %1095 = vst [vmem:[%s1804_s9 + $0x260] sm:$0xff] (%p1458_p4), %v1094_v3  ;;  %1097 = vst [vmem:[%s1804_s9 + $0x268] sm:$0xff] (%p1458_p4), %v1096_v26 }
 0x1c2   : > { %955 = vst [vmem:[%s1709_s7 + $0x160] sm:$0xff] %v887_v31  ;;  %v1319_v32 = vpop.f32.mrb[37].mxu0  ;;  %v778_v33 = vpop.f32.mrb[36].mxu1  ;;  %1067 = vst [vmem:[%s1804_s9 + $0x160] sm:$0xff] (%p1458_p4), %v1066_v12  ;;  %v1080_v19 = vld [vmem:[%s1709_s7 + $0x108] sm:$0xff] (%p1458_p4)  ;;  %v1106_v31 = vld [vmem:[%s1709_s7 + $0x170] sm:$0xff] (%p1458_p4) }
 0x1c3   : > { %962 = vst [vmem:[%s1709_s7 + $0x198] sm:$0xff] %v778_v33  ;;  %v780_v34 = vpop.f32.mrb[37].mxu1  ;;  %v1082_v20 = vld [vmem:[%s1709_s7 + $0x110] sm:$0xff] (%p1458_p4)  ;;  %1081 = vst [vmem:[%s1804_s9 + $0x1e0] sm:$0xff] (%p1458_p4), %v1080_v19  ;;  %v1108_v32 = vld [vmem:[%s1709_s7 + $0x178] sm:$0xff] (%p1458_p4) }
 0x1c4   : > { %963 = vst [vmem:[%s1709_s7 + $0x1a0] sm:$0xff] %v780_v34  ;;  %1083 = vst [vmem:[%s1804_s9 + $0x1e8] sm:$0xff] (%p1458_p4), %v1082_v20  ;;  %v1110_v33 = vld [vmem:[%s1709_s7 + $0x180] sm:$0xff] (%p1458_p4)  ;;  %v1112_v34 = vld [vmem:[%s1709_s7 + $0x188] sm:$0xff] (%p1458_p4) }
 0x1c5   : > { %v892_v35 = vpop.f32.mrb[38].mxu0  ;;  %v1084_v21 = vld [vmem:[%s1709_s7 + $0x118] sm:$0xff] (%p1458_p4)  ;;  %1105 = vst [vmem:[%s1804_s9 + $0x2d0] sm:$0xff] (%p1458_p4), %v1104_v30  ;;  %1107 = vst [vmem:[%s1804_s9 + $0x2d8] sm:$0xff] (%p1458_p4), %v1106_v31 }
 0x1c6   : > { %964 = vst [vmem:[%s1709_s7 + $0x1a8] sm:$0xff] %v892_v35  ;;  %v1322_v36 = vpop.f32.mrb[39].mxu0  ;;  %v784_v37 = vpop.f32.mrb[38].mxu1  ;;  %1085 = vst [vmem:[%s1804_s9 + $0x1f0] sm:$0xff] (%p1458_p4), %v1084_v21  ;;  %v1098_v27 = vld [vmem:[%s1709_s7 + $0x150] sm:$0xff] (%p1458_p4) }
 0x1c7   : > { %971 = vst [vmem:[%s1709_s7 + $0x1e0] sm:$0xff] %v784_v37  ;;  %v786_v38 = vpop.f32.mrb[39].mxu1  ;;  %v1100_v28 = vld [vmem:[%s1709_s7 + $0x158] sm:$0xff] (%p1458_p4)  ;;  %1099 = vst [vmem:[%s1804_s9 + $0x270] sm:$0xff] (%p1458_p4), %v1098_v27  ;;  %v1114_v35 = vld [vmem:[%s1709_s7 + $0x190] sm:$0xff] (%p1458_p4) }
 0x1c8   : > { %972 = vst [vmem:[%s1709_s7 + $0x1e8] sm:$0xff] %v786_v38  ;;  %1101 = vst [vmem:[%s1804_s9 + $0x278] sm:$0xff] (%p1458_p4), %v1100_v28 }
 0x1c9   : > { %v897_v39 = vpop.f32.mrb[40].mxu0  ;;  %v1102_v29 = vld [vmem:[%s1709_s7 + $0x160] sm:$0xff] (%p1458_p4)  ;;  %1109 = vst [vmem:[%s1804_s9 + $0x2e0] sm:$0xff] (%p1458_p4), %v1108_v32  ;;  %1111 = vst [vmem:[%s1804_s9 + $0x2e8] sm:$0xff] (%p1458_p4), %v1110_v33 }
 0x1ca   : > { %973 = vst [vmem:[%s1709_s7 + $0x1f0] sm:$0xff] %v897_v39  ;;  %v1325_v40 = vpop.f32.mrb[41].mxu0  ;;  %v790_v41 = vpop.f32.mrb[40].mxu1  ;;  %1103 = vst [vmem:[%s1804_s9 + $0x280] sm:$0xff] (%p1458_p4), %v1102_v29  ;;  %v1116_v36 = vld [vmem:[%s1709_s7 + $0x198] sm:$0xff] (%p1458_p4)  ;;  %v1122_v39 = vld [vmem:[%s1709_s7 + $0x1b0] sm:$0xff] (%p1458_p4) }
 0x1cb   : > { %980 = vst [vmem:[%s1709_s7 + $0x228] sm:$0xff] %v790_v41  ;;  %v792_v42 = vpop.f32.mrb[41].mxu1  ;;  %1113 = vst [vmem:[%s1804_s9 + $0x2f0] sm:$0xff] (%p1458_p4), %v1112_v34  ;;  %v1118_v37 = vld [vmem:[%s1709_s7 + $0x1a0] sm:$0xff] (%p1458_p4)  ;;  %v1124_v40 = vld [vmem:[%s1709_s7 + $0x1b8] sm:$0xff] (%p1458_p4) }
 0x1cc   : > { %981 = vst [vmem:[%s1709_s7 + $0x230] sm:$0xff] %v792_v42  ;;  %998 = sbr.rel (!%p1458_p4) target bundleno = 476 (0x1dc), region = 40  ;;  %1115 = vst [vmem:[%s1804_s9 + $0x2f8] sm:$0xff] (%p1458_p4), %v1114_v35  ;;  %v1126_v41 = vld [vmem:[%s1709_s7 + $0x1c0] sm:$0xff] (%p1458_p4)  ;;  %v1128_v42 = vld [vmem:[%s1709_s7 + $0x1c8] sm:$0xff] (%p1458_p4) }
 0x1cd   : > { %v902_v43 = vpop.f32.mrb[42].mxu0  ;;  %v1120_v38 = vld [vmem:[%s1709_s7 + $0x1a8] sm:$0xff] (%p1458_p4)  ;;  %1117 = vst [vmem:[%s1804_s9 + $0x300] sm:$0xff] (%p1458_p4), %v1116_v36  ;;  %1119 = vst [vmem:[%s1804_s9 + $0x308] sm:$0xff] (%p1458_p4), %v1118_v37 }
 0x1ce   : > { %982 = vst [vmem:[%s1709_s7 + $0x238] sm:$0xff] %v902_v43  ;;  %v1328_v44 = vpop.f32.mrb[43].mxu0  ;;  %v796_v45 = vpop.f32.mrb[42].mxu1  ;;  %1121 = vst [vmem:[%s1804_s9 + $0x310] sm:$0xff] (%p1458_p4), %v1120_v38  ;;  %v1130_v43 = vld [vmem:[%s1709_s7 + $0x1d0] sm:$0xff] (%p1458_p4) }
 0x1cf   : > { %989 = vst [vmem:[%s1709_s7 + $0x270] sm:$0xff] %v796_v45  ;;  %v798_v46 = vpop.f32.mrb[43].mxu1  ;;  %1123 = vst [vmem:[%s1804_s9 + $0x360] sm:$0xff] (%p1458_p4), %v1122_v39  ;;  %v1132_v44 = vld [vmem:[%s1709_s7 + $0x1d8] sm:$0xff] (%p1458_p4)  ;;  %v1134_v45 = vld [vmem:[%s1709_s7 + $0x1e0] sm:$0xff] (%p1458_p4) }
 0x1d0   : > { %990 = vst [vmem:[%s1709_s7 + $0x278] sm:$0xff] %v798_v46  ;;  %1125 = vst [vmem:[%s1804_s9 + $0x368] sm:$0xff] (%p1458_p4), %v1124_v40  ;;  %v1136_v46 = vld [vmem:[%s1709_s7 + $0x1e8] sm:$0xff] (%p1458_p4) }
 0x1d1   : > { %v907_v47 = vpop.f32.mrb[44].mxu0  ;;  %1127 = vst [vmem:[%s1804_s9 + $0x370] sm:$0xff] (%p1458_p4), %v1126_v41  ;;  %1129 = vst [vmem:[%s1804_s9 + $0x378] sm:$0xff] (%p1458_p4), %v1128_v42 }
 0x1d2   : > { %991 = vst [vmem:[%s1709_s7 + $0x280] sm:$0xff] %v907_v47  ;;  %v1331_v48 = vpop.f32.mrb[45].mxu0  ;;  %1131 = vst [vmem:[%s1804_s9 + $0x380] sm:$0xff] (%p1458_p4), %v1130_v43  ;;  %v1138_v47 = vld [vmem:[%s1709_s7 + $0x1f0] sm:$0xff] (%p1458_p4)  ;;  %v1152_v54 = vld [vmem:[%s1709_s7 + $0x228] sm:$0xff] (%p1458_p4) }
 0x1d3   : > { %1133 = vst [vmem:[%s1804_s9 + $0x388] sm:$0xff] %v1132_v44  ;;  %1135 = vst [vmem:[%s1804_s9 + $0x390] sm:$0xff] %v1134_v45  ;;  %v1140_v48 = vld [vmem:[%s1709_s7 + $0x1f8] sm:$0xff]  ;;  %v1154_v55 = vld [vmem:[%s1709_s7 + $0x230] sm:$0xff] }
 0x1d4   : > { %1137 = vst [vmem:[%s1804_s9 + $0x398] sm:$0xff] %v1136_v46  ;;  %1139 = vst [vmem:[%s1804_s9 + $0x3a0] sm:$0xff] %v1138_v47 }
 0x1d5   : > { %1141 = vst [vmem:[%s1804_s9 + $0x3f0] sm:$0xff] %v1140_v48  ;;  %1151 = vst [vmem:[%s1804_s9 + $0x418] sm:$0xff] %v1150_v53  ;;  %v1156_v56 = vld [vmem:[%s1709_s7 + $0x238] sm:$0xff] }
 0x1d6   : > { %1153 = vst [vmem:[%s1804_s9 + $0x420] sm:$0xff] %v1152_v54  ;;  %1155 = vst [vmem:[%s1804_s9 + $0x428] sm:$0xff] %v1154_v55  ;;  %v1170_v63 = vld [vmem:[%s1709_s7 + $0x270] sm:$0xff] }
 0x1d7   : > { %1157 = vst [vmem:[%s1804_s9 + $0x430] sm:$0xff] %v1156_v56  ;;  %1159 = vst [vmem:[%s1804_s9 + $0x480] sm:$0xff] %v1158_v57  ;;  %v1172_v0 = vld [vmem:[%s1709_s7 + $0x278] sm:$0xff] }
 0x1d8   : > { %1163 = vst [vmem:[%s1804_s9 + $0x490] sm:$0xff] %v1162_v59  ;;  %1165 = vst [vmem:[%s1804_s9 + $0x498] sm:$0xff] %v1164_v60 }
 0x1d9   : > { %1167 = vst [vmem:[%s1804_s9 + $0x4a0] sm:$0xff] %v1166_v61  ;;  %1169 = vst [vmem:[%s1804_s9 + $0x4a8] sm:$0xff] %v1168_v62  ;;  %v1174_v1 = vld [vmem:[%s1709_s7 + $0x280] sm:$0xff] }
 0x1da   : > { %1171 = vst [vmem:[%s1804_s9 + $0x4b0] sm:$0xff] %v1170_v63  ;;  %1173 = vst [vmem:[%s1804_s9 + $0x4b8] sm:$0xff] %v1172_v0 }
 0x1db   : > { %1175 = vst [vmem:[%s1804_s9 + $0x4c0] sm:$0xff] %v1174_v1 }
 0x1dc PF: > { %p11_p8 = scmp.ge.s32.totalorder %s1448_s19, 4   ;;  %s1978_s15 = smov %s1399_s16 }
 0x1dd   : > { %s1979_s16 = smov %s1456_s22  ;;  %s1980_s17 = smov %s1448_s19 }
 0x1de   :  { %13 = sbr.rel (!%p11_p8) target bundleno = 2 (0x2), region = 89 }

// kernel: basic_decoder_block_forward.10
= control target key start
LH: loop header
LB: loop body
LE: loop exit
PB: predicated region body
PF: predicated region fallthrough
CT: control target
= control target key end

     0   :  { %v1112_v0 = vmov 0   ;;  %v1113_v4 = vmov 1   ;;  %v1114_v5 = vmov 2   ;;  %v1115_v6 = vmov 3   ;;  %s1755_s1 = inlined_call_operand.vmem [shape: f32[8,1], index: 1, kind: input, shape index: {}]   ;;  %s1756_s3 = inlined_call_operand.vmem [shape: f32[8,8], index: 3, kind: input, shape index: {}]   ;;  %s1757_s2 = inlined_call_operand.vmem [shape: f32[8,1], index: 2, kind: input, shape index: {}]   ;;  %s1758_s0 = inlined_call_operand.vmem [shape: f32[8,1922], index: 0, kind: input, shape index: {}]   ;;  %s1759_s4 = inlined_call_operand.vmem [shape: f32[8,1922], index: 4, kind: output, shape index: {0}]   ;;  %s1760_s5 = inlined_call_operand.vmem [shape: f32[8,1], index: 5, kind: output, shape index: {1}]   ;;  %s1761_s6 = inlined_call_operand.vmem [shape: f32[8,1], index: 6, kind: output, shape index: {2}]  }
   0x1   :  { %1070 = vset.pattern.permute.xlu0 %v1112_v0  ;;  %1071 = vset.pattern.permute.xlu1 %v1112_v0  ;;  %v36_v1 = vld [vmem:[%s1755_s1] sm:$0xff]  ;;  %v1116_v7 = vmov 5   ;;  %v1117_v8 = vmov 4   ;;  %v1118_v9 = vmov 7   ;;  %v1119_v10 = vmov 6   ;;  %v21_v14 = vld [vmem:[%s1758_s0 + $0x8] sm:$0xff] }
   0x2   :  { %v176_v2 = vld [vmem:[%s1756_s3] sm:$0xff]  ;;  %39 = vperm.xlu0 %1070, %v36_v1   ;;  %v182_v12 = vlaneseq  ;;  %v22_v15 = vld [vmem:[%s1758_s0 + $0x10] sm:$0xff]  ;;  %v23_v16 = vld [vmem:[%s1758_s0 + $0x18] sm:$0xff] }
   0x3   :  { %179 = vperm.xlu1 %1071, %v176_v2   ;;  %v58_v3 = vld [vmem:[%s1757_s2] sm:$0xff]  ;;  %v25_v20 = vld [vmem:[%s1758_s0 + $0x28] sm:$0xff]  ;;  %v26_v21 = vld [vmem:[%s1758_s0 + $0x30] sm:$0xff] }
   0x4   :  { %v20_v13 = vld [vmem:[%s1758_s0] sm:$0xff]  ;;  %v1181_v19 = vshrl.u32 %v182_v12, 7  ;;  %v27_v26 = vld [vmem:[%s1758_s0 + $0x38] sm:$0xff]  ;;  %v29_v32 = vld [vmem:[%s1758_s0 + $0x48] sm:$0xff] }
   0x5   :  { %v24_v18 = vld [vmem:[%s1758_s0 + $0x20] sm:$0xff]  ;;  %v30_v37 = vld [vmem:[%s1758_s0 + $0x50] sm:$0xff]  ;;  %v31_v38 = vld [vmem:[%s1758_s0 + $0x58] sm:$0xff] }
   0x6   :  { %61 = vperm.xlu0 %1070, %v58_v3   ;;  %v28_v27 = vld [vmem:[%s1758_s0 + $0x40] sm:$0xff]  ;;  %v1211_v36 = vsub.s32 0, %v1181_v19  ;;  %v1223_v40 = vsub.s32 1, %v1181_v19  ;;  %v1226_v41 = vsub.s32 2, %v1181_v19  ;;  %v1229_v42 = vsub.s32 3, %v1181_v19  ;;  %v33_v44 = vld [vmem:[%s1758_s0 + $0x68] sm:$0xff] }
   0x7   :  { %1072 = vset.pattern.permute.xlu1 %v1113_v4  ;;  %v32_v43 = vld [vmem:[%s1758_s0 + $0x60] sm:$0xff]  ;;  %v34_v49 = vld [vmem:[%s1758_s0 + $0x70] sm:$0xff]  ;;  %v35_v58 = vld [vmem:[%s1758_s0 + $0x78] sm:$0xff] }
   0x8   :  { %263 = vperm.xlu1 %1072, %v176_v2   ;;  %1777 = vst [vmem:[#allocation2_spill] sm:$0xff] %v1229_v42 }
   0xa   :  { %1073 = vset.pattern.permute.xlu0 %v1114_v5 }
   0xb   :  { %363 = vperm.xlu0 %1073, %v176_v2  }
   0xc   :  { %1074 = vset.pattern.permute.xlu1 %v1115_v6 }
   0xd   :  { %463 = vperm.xlu1 %1074, %v176_v2  }
   0xf   :  { %1076 = vset.pattern.permute.xlu0 %v1116_v7 }
  0x10   :  { %663 = vperm.xlu0 %1076, %v176_v2  }
  0x11   :  { %1075 = vset.pattern.permute.xlu1 %v1117_v8 }
  0x12   :  { %563 = vperm.xlu1 %1075, %v176_v2  }
  0x14   :  { %1079 = vset.pattern.permute.xlu0 %v1118_v9 }
  0x16   :  { %1077 = vset.pattern.permute.xlu1 %v1119_v10 }
  0x17   :  { %763 = vperm.xlu1 %1077, %v176_v2  }
  0x1b   :  { %1078 = vset.pattern.permute.xlu1 %v1118_v9 }
  0x1c   :  { %863 = vperm.xlu1 %1078, %v176_v2  }
  0x81   :  { %v40_v11 = vpop.permute.xlu0 %39 }
  0x82   :  { %v42_v22 = vmul.f32 %v40_v11, %v20_v13  ;;  %v43_v23 = vmul.f32 %v40_v11, %v21_v14  ;;  %v44_v24 = vmul.f32 %v40_v11, %v22_v15  ;;  %v45_v25 = vmul.f32 %v40_v11, %v23_v16 }
  0x83   :  { %v46_v28 = vmul.f32 %v40_v11, %v24_v18  ;;  %v47_v33 = vmul.f32 %v40_v11, %v25_v20  ;;  %v48_v34 = vmul.f32 %v40_v11, %v26_v21  ;;  %v49_v45 = vmul.f32 %v40_v11, %v27_v26 }
  0x84   :  { %v50_v46 = vmul.f32 %v40_v11, %v28_v27  ;;  %v51_v50 = vmul.f32 %v40_v11, %v29_v32  ;;  %v52_v54 = vmul.f32 %v40_v11, %v30_v37  ;;  %v53_v55 = vmul.f32 %v40_v11, %v31_v38 }
  0x85   :  { %v1176_v17 = vpop.permute.xlu0 %61  ;;  %v54_v59 = vmul.f32 %v40_v11, %v32_v43  ;;  %v55_v60 = vmul.f32 %v40_v11, %v33_v44  ;;  %v56_v63 = vmul.f32 %v40_v11, %v34_v49  ;;  %v57_v7 = vmul.f32 %v40_v11, %v35_v58 }
  0x86   :  { %v1196_v29 = vadd.f32 %v1176_v17, %v42_v22  ;;  %v1199_v30 = vadd.f32 %v1176_v17, %v43_v23  ;;  %v1202_v31 = vadd.f32 %v1176_v17, %v44_v24  ;;  %v1208_v35 = vadd.f32 %v1176_v17, %v45_v25 }
  0x87   :  { %v1220_v39 = vadd.f32 %v1176_v17, %v46_v28  ;;  %v1238_v47 = vadd.f32 %v1176_v17, %v47_v33  ;;  %v1241_v48 = vadd.f32 %v1176_v17, %v48_v34  ;;  %v1250_v56 = vadd.f32 %v1176_v17, %v49_v45 }
  0x88   :  { %v96_v51 = vmin.f32 %v1196_v29, 0.0  ;;  %v97_v52 = vmin.f32 %v1199_v30, 0.0  ;;  %v98_v53 = vmin.f32 %v1202_v31, 0.0  ;;  %v99_v57 = vmin.f32 %v1208_v35, 0.0 }
  0x89   :  { %v1257_v61 = vadd.f32 %v1176_v17, %v50_v46  ;;  %v100_v62 = vmin.f32 %v1220_v39, 0.0  ;;  %v1261_v0 = vadd.f32 %v1176_v17, %v51_v50  ;;  %v101_v1 = vmin.f32 %v1238_v47, 0.0 }
  0x8a   :  { %v102_v2 = vmin.f32 %v1241_v48, 0.0  ;;  %v1266_v3 = vadd.f32 %v1176_v17, %v52_v54  ;;  %v112_v4 = vmul.f32 1.442695, %v96_v51  ;;  %v114_v5 = vmul.f32 1.442695, %v97_v52 }
  0x8b   :  { %v116_v6 = vmul.f32 1.442695, %v98_v53  ;;  %v1269_v8 = vadd.f32 %v1176_v17, %v53_v55  ;;  %v103_v9 = vmin.f32 %v1250_v56, 0.0  ;;  %v118_v10 = vmul.f32 1.442695, %v99_v57 }
  0x8c   :  { %v1273_v12 = vadd.f32 %v1176_v17, %v54_v59  ;;  %v104_v13 = vmin.f32 %v1257_v61, 0.0  ;;  %1080 = vpow2.f32 %v112_v4  ;;  %v120_v14 = vmul.f32 1.442695, %v100_v62 }
  0x8d   :  { %v1277_v15 = vadd.f32 %v1176_v17, %v55_v60  ;;  %v105_v16 = vmin.f32 %v1261_v0, 0.0  ;;  %1082 = vpow2.f32 %v114_v5  ;;  %v122_v11 = vmul.f32 1.442695, %v101_v1 }
  0x8e   :  { %v1281_v18 = vadd.f32 %v1176_v17, %v56_v63  ;;  %v106_v20 = vmin.f32 %v1266_v3, 0.0  ;;  %1084 = vpow2.f32 %v116_v6  ;;  %v124_v21 = vmul.f32 1.442695, %v102_v2  ;;  %v1327_v2 = vpop.permute.xlu1 %179 }
  0x8f   :  { %v1285_v22 = vadd.f32 %v1176_v17, %v57_v7  ;;  %v107_v23 = vmin.f32 %v1269_v8, 0.0  ;;  %1086 = vpow2.f32 %v118_v10  ;;  %v126_v24 = vmul.f32 1.442695, %v103_v9 }
  0x90   :  { %v108_v25 = vmin.f32 %v1273_v12, 0.0  ;;  %1088 = vpow2.f32 %v120_v14  ;;  %v128_v26 = vmul.f32 1.442695, %v104_v13  ;;  %v1290_v27 = vsub.s32 4, %v1181_v19 }
  0x91   :  { %v109_v28 = vmin.f32 %v1277_v15, 0.0  ;;  %1090 = vpow2.f32 %v122_v11  ;;  %v130_v32 = vmul.f32 1.442695, %v105_v16  ;;  %v1294_v33 = vsub.s32 5, %v1181_v19 }
  0x92   :  { %1778 = vst [vmem:[#allocation3_spill] sm:$0xff] %v1290_v27  ;;  %v110_v17 = vmin.f32 %v1281_v18, 0.0  ;;  %1092 = vpow2.f32 %v124_v21  ;;  %v132_v34 = vmul.f32 1.442695, %v106_v20  ;;  %v1298_v37 = vsub.s32 6, %v1181_v19 }
  0x93   :  { %1779 = vst [vmem:[#allocation4_spill] sm:$0xff] %v1294_v33  ;;  %v111_v38 = vmin.f32 %v1285_v22, 0.0  ;;  %1094 = vpow2.f32 %v126_v24  ;;  %v134_v43 = vmul.f32 1.442695, %v107_v23  ;;  %v1302_v44 = vsub.s32 7, %v1181_v19 }
  0x94   :  { %1780 = vst [vmem:[#allocation5_spill] sm:$0xff] %v1298_v37  ;;  %vm80_vm0 = vcmp.gt.f32.partialorder %v1196_v29, 0.0  ;;  %vm81_vm1 = vcmp.gt.f32.partialorder %v1199_v30, 0.0  ;;  %1096 = vpow2.f32 %v128_v26  ;;  %v136_v45 = vmul.f32 1.442695, %v108_v25 }
  0x95   :  { %1781 = vst [vmem:[#allocation6_spill] sm:$0xff] %v1302_v44  ;;  %vm82_vm2 = vcmp.gt.f32.partialorder %v1202_v31, 0.0  ;;  %vm83_vm3 = vcmp.gt.f32.partialorder %v1208_v35, 0.0  ;;  %1098 = vpow2.f32 %v130_v32  ;;  %v138_v46 = vmul.f32 1.442695, %v109_v28 }
  0x96   :  { %v1081_v49 = vpop.eup %1080  ;;  %vm84_vm4 = vcmp.gt.f32.partialorder %v1220_v39, 0.0  ;;  %vm85_vm5 = vcmp.gt.f32.partialorder %v1238_v47, 0.0  ;;  %1100 = vpow2.f32 %v132_v34  ;;  %v140_v19 = vmul.f32 1.442695, %v110_v17 }
  0x97   :  { %v1083_v50 = vpop.eup %1082  ;;  %vm86_vm6 = vcmp.gt.f32.partialorder %v1241_v48, 0.0  ;;  %1102 = vpow2.f32 %v134_v43  ;;  %v142_v51 = vmul.f32 1.442695, %v111_v38  ;;  %v1046_v52 = vadd.f32 -1.0, %v1081_v49 }
  0x98   :  { %v1085_v53 = vpop.eup %1084  ;;  %vm87_vm7 = vcmp.gt.f32.partialorder %v1250_v56, 0.0  ;;  %vm88_vm8 = vcmp.gt.f32.partialorder %v1257_v61, 0.0  ;;  %1104 = vpow2.f32 %v136_v45  ;;  %v1047_v54 = vadd.f32 -1.0, %v1083_v50 }
  0x99   :  { %v1087_v55 = vpop.eup %1086  ;;  %vm89_vm9 = vcmp.gt.f32.partialorder %v1261_v0, 0.0  ;;  %1106 = vpow2.f32 %v138_v46  ;;  %v1048_v57 = vadd.f32 -1.0, %v1085_v53  ;;  %v1317_v58 = vsel %vm80_vm0, %v1196_v29, %v1046_v52 }
  0x9a   :  { %v1089_v59 = vpop.eup %1088  ;;  %vm90_vm10 = vcmp.gt.f32.partialorder %v1266_v3, 0.0  ;;  %1108 = vpow2.f32 %v140_v19  ;;  %v1049_v60 = vadd.f32 -1.0, %v1087_v55  ;;  %v1323_v62 = vsel %vm81_vm1, %v1199_v30, %v1047_v54 }
  0x9b   :  { %v185_v63 = vrot.slane %v1317_v58, %v1211_v36  ;;  %v1091_v1 = vpop.eup %1090  ;;  %vm91_vm11 = vcmp.gt.f32.partialorder %v1269_v8, 0.0  ;;  %1110 = vpow2.f32 %v142_v51  ;;  %v1050_v29 = vadd.f32 -1.0, %v1089_v59 }
  0x9c   :  { %v1333_v4 = vsel %vm82_vm2, %v1202_v31, %v1048_v57  ;;  %v189_v5 = vrot.slane %v1323_v62, %v1211_v36  ;;  %v1093_v30 = vpop.eup %1092  ;;  %vm92_vm12 = vcmp.gt.f32.partialorder %v1273_v12, 0.0  ;;  %v1051_v6 = vadd.f32 -1.0, %v1091_v1 }
  0x9d   :  { %v1341_v7 = vsel %vm83_vm3, %v1208_v35, %v1049_v60  ;;  %v193_v9 = vrot.slane %v1333_v4, %v1211_v36  ;;  %v1346_v10 = vmul.f32 %v185_v63, %v1327_v2  ;;  %v1095_v31 = vpop.eup %1094  ;;  %vm93_vm13 = vcmp.gt.f32.partialorder %v1277_v15, 0.0 }
  0x9e   :  { %v1052_v13 = vadd.f32 -1.0, %v1093_v30  ;;  %v1352_v14 = vsel %vm84_vm4, %v1220_v39, %v1050_v29  ;;  %v197_v16 = vrot.slane %v1341_v7, %v1211_v36  ;;  %v1357_v35 = vmul.f32 %v189_v5, %v1327_v2  ;;  %v1097_v11 = vpop.eup %1096 }
  0x9f   :  { %vm94_vm14 = vcmp.gt.f32.partialorder %v1281_v18, 0.0  ;;  %v1053_v20 = vadd.f32 -1.0, %v1095_v31  ;;  %v1363_v21 = vsel %vm85_vm5, %v1238_v47, %v1051_v6  ;;  %v201_v23 = vrot.slane %v1352_v14, %v1211_v36  ;;  %v1099_v24 = vpop.eup %1098 }
  0xa0   :  { %v1368_v39 = vmul.f32 %v193_v9, %v1327_v2  ;;  %vm95_vm15 = vcmp.gt.f32.partialorder %v1285_v22, 0.0  ;;  %v1054_v25 = vadd.f32 -1.0, %v1097_v11  ;;  %v1374_v26 = vsel %vm86_vm6, %v1241_v48, %v1052_v13  ;;  %v1101_v32 = vpop.eup %1100 }
  0xa1   :  { %v205_v28 = vrot.slane %v1363_v21, %v1211_v36  ;;  %v1379_v47 = vmul.f32 %v197_v16, %v1327_v2  ;;  %v1055_v17 = vadd.f32 -1.0, %v1099_v24  ;;  %v1384_v34 = vsel %vm87_vm7, %v1250_v56, %v1053_v20  ;;  %v1103_v48 = vpop.eup %1102 }
  0xa2   :  { %v209_v38 = vrot.slane %v1374_v26, %v1211_v36  ;;  %v1389_v43 = vmul.f32 %v201_v23, %v1327_v2  ;;  %v1056_v45 = vadd.f32 -1.0, %v1101_v32  ;;  %v1394_v46 = vsel %vm88_vm8, %v1257_v61, %v1054_v25  ;;  %v1105_v56 = vpop.eup %1104 }
  0xa3   :  { %v213_v49 = vrot.slane %v1384_v34, %v1211_v36  ;;  %v1399_v19 = vmul.f32 %v205_v28, %v1327_v2  ;;  %v1057_v50 = vadd.f32 -1.0, %v1103_v48  ;;  %v1404_v51 = vsel %vm89_vm9, %v1261_v0, %v1055_v17  ;;  %v1107_v61 = vpop.eup %1106 }
  0xa4   :  { %v217_v52 = vrot.slane %v1394_v46, %v1211_v36  ;;  %v1409_v53 = vmul.f32 %v209_v38, %v1327_v2  ;;  %v1058_v54 = vadd.f32 -1.0, %v1105_v56  ;;  %v1414_v55 = vsel %vm90_vm10, %v1266_v3, %v1056_v45  ;;  %v1109_v0 = vpop.eup %1108 }
  0xa5   :  { %1782 = vst [vmem:[#allocation7_spill] sm:$0xff] %v1414_v55  ;;  %v221_v57 = vrot.slane %v1404_v51, %v1211_v36  ;;  %v1419_v59 = vmul.f32 %v213_v49, %v1327_v2  ;;  %v1059_v60 = vadd.f32 -1.0, %v1107_v61  ;;  %v1424_v63 = vsel %vm91_vm11, %v1269_v8, %v1057_v50  ;;  %v1111_v3 = vpop.eup %1110  ;;  %v264_v61 = vpop.permute.xlu1 %263 }
  0xa6   :  { %1783 = vst [vmem:[#allocation8_spill] sm:$0xff] %v1424_v63  ;;  %v225_v1 = vrot.slane %v1414_v55, %v1211_v36  ;;  %v254_v29 = vmul.f32 %v217_v52, %v1327_v2  ;;  %v1060_v5 = vadd.f32 -1.0, %v1109_v0  ;;  %v1432_v30 = vsel %vm92_vm12, %v1273_v12, %v1058_v54 }
  0xa7   :  { %1784 = vst [vmem:[#allocation9_spill] sm:$0xff] %v1432_v30  ;;  %v229_v6 = vrot.slane %v1424_v63, %v1211_v36  ;;  %v255_v9 = vmul.f32 %v221_v57, %v1327_v2  ;;  %v1061_v31 = vadd.f32 -1.0, %v1111_v3  ;;  %v1440_v8 = vsel %vm93_vm13, %v1277_v15, %v1059_v60 }
  0xa8   :  { %1785 = vst [vmem:[#allocation10_spill] sm:$0xff] %v1440_v8  ;;  %v233_v13 = vrot.slane %v1432_v30, %v1211_v36  ;;  %v256_v16 = vmul.f32 %v225_v1, %v1327_v2  ;;  %v1448_v12 = vsel %vm94_vm14, %v1281_v18, %v1060_v5  ;;  %v237_v11 = vrot.slane %v1440_v8, %v1211_v36 }
  0xa9   :  { %1786 = vst [vmem:[#allocation11_spill] sm:$0xff] %v1448_v12  ;;  %v257_v20 = vmul.f32 %v229_v6, %v1327_v2  ;;  %v269_v23 = vrot.slane %v1317_v58, %v1223_v40  ;;  %v1458_v15 = vsel %vm95_vm15, %v1285_v22, %v1061_v31  ;;  %v241_v24 = vrot.slane %v1448_v12, %v1211_v36 }
  0xaa   :  { %v258_v25 = vmul.f32 %v233_v13, %v1327_v2  ;;  %v273_v18 = vrot.slane %v1323_v62, %v1223_v40  ;;  %v245_v28 = vrot.slane %v1458_v15, %v1211_v36  ;;  %v259_v32 = vmul.f32 %v237_v11, %v1327_v2 }
  0xab   :  { %v277_v17 = vrot.slane %v1333_v4, %v1223_v40  ;;  %v281_v22 = vrot.slane %v1341_v7, %v1223_v40  ;;  %v260_v38 = vmul.f32 %v241_v24, %v1327_v2  ;;  %v285_v48 = vrot.slane %v1352_v14, %v1223_v40 }
  0xac   :  { %v289_v45 = vrot.slane %v1363_v21, %v1223_v40  ;;  %v293_v49 = vrot.slane %v1374_v26, %v1223_v40  ;;  %v261_v36 = vmul.f32 %v245_v28, %v1327_v2  ;;  %v297_v56 = vrot.slane %v1384_v34, %v1223_v40 }
  0xad   :  { %v301_v50 = vrot.slane %v1394_v46, %v1223_v40  ;;  %v305_v52 = vrot.slane %v1404_v51, %v1223_v40  ;;  %v309_v54 = vrot.slane %v1414_v55, %v1223_v40  ;;  %v313_v57 = vrot.slane %v1424_v63, %v1223_v40 }
  0xae   :  { %v317_v0 = vrot.slane %v1432_v30, %v1223_v40  ;;  %v321_v2 = vrot.slane %v1440_v8, %v1223_v40  ;;  %v325_v60 = vrot.slane %v1448_v12, %v1223_v40  ;;  %v329_v1 = vrot.slane %v1458_v15, %v1223_v40 }
  0xaf   :  { %v330_v3 = vmul.f32 %v269_v23, %v264_v61  ;;  %v331_v5 = vmul.f32 %v273_v18, %v264_v61  ;;  %v332_v6 = vmul.f32 %v277_v17, %v264_v61  ;;  %v333_v31 = vmul.f32 %v281_v22, %v264_v61 }
  0xb0   :  { %v334_v13 = vmul.f32 %v285_v48, %v264_v61  ;;  %v335_v11 = vmul.f32 %v289_v45, %v264_v61  ;;  %v336_v24 = vmul.f32 %v293_v49, %v264_v61  ;;  %v337_v28 = vmul.f32 %v297_v56, %v264_v61 }
  0xb1   :  { %v338_v44 = vmul.f32 %v301_v50, %v264_v61  ;;  %v339_v37 = vmul.f32 %v305_v52, %v264_v61  ;;  %v340_v33 = vmul.f32 %v309_v54, %v264_v61  ;;  %v341_v27 = vmul.f32 %v313_v57, %v264_v61 }
  0xb2   :  { %v342_v42 = vmul.f32 %v317_v0, %v264_v61  ;;  %v343_v8 = vmul.f32 %v321_v2, %v264_v61  ;;  %v344_v30 = vmul.f32 %v325_v60, %v264_v61  ;;  %v345_v63 = vmul.f32 %v329_v1, %v264_v61 }
  0xb3   :  { %v346_v12 = vadd.f32 %v330_v3, %v1346_v10  ;;  %v347_v40 = vadd.f32 %v331_v5, %v1357_v35  ;;  %v348_v23 = vadd.f32 %v332_v6, %v1368_v39  ;;  %v349_v18 = vadd.f32 %v333_v31, %v1379_v47 }
  0xb4   :  { %v350_v17 = vadd.f32 %v334_v13, %v1389_v43  ;;  %v351_v22 = vadd.f32 %v335_v11, %v1399_v19  ;;  %v352_v48 = vadd.f32 %v336_v24, %v1409_v53  ;;  %v353_v45 = vadd.f32 %v337_v28, %v1419_v59  ;;  %v364_v59 = vpop.permute.xlu0 %363 }
  0xb5   :  { %v354_v49 = vadd.f32 %v338_v44, %v254_v29  ;;  %v355_v56 = vadd.f32 %v339_v37, %v255_v9  ;;  %v356_v50 = vadd.f32 %v340_v33, %v256_v16  ;;  %v357_v52 = vadd.f32 %v341_v27, %v257_v20  ;;  %v1787_v29 = vld [vmem:[#allocation8_spill] sm:$0xff]  ;;  %v1788_v9 = vld [vmem:[#allocation9_spill] sm:$0xff]  ;;  %v1789_v16 = vld [vmem:[#allocation10_spill] sm:$0xff] }
  0xb6   :  { %v358_v61 = vadd.f32 %v342_v42, %v258_v25  ;;  %v359_v10 = vadd.f32 %v343_v8, %v259_v32  ;;  %v360_v54 = vadd.f32 %v344_v30, %v260_v38  ;;  %v361_v35 = vadd.f32 %v345_v63, %v261_v36  ;;  %v1790_v25 = vld [vmem:[#allocation11_spill] sm:$0xff] }
  0xb7   :  { %v369_v39 = vrot.slane %v1317_v58, %v1226_v41  ;;  %v373_v47 = vrot.slane %v1323_v62, %v1226_v41  ;;  %v377_v43 = vrot.slane %v1333_v4, %v1226_v41  ;;  %v381_v19 = vrot.slane %v1341_v7, %v1226_v41 }
  0xb8   :  { %v385_v33 = vrot.slane %v1352_v14, %v1226_v41  ;;  %v389_v42 = vrot.slane %v1363_v21, %v1226_v41  ;;  %v393_v27 = vrot.slane %v1374_v26, %v1226_v41  ;;  %v397_v37 = vrot.slane %v1384_v34, %v1226_v41 }
  0xb9   :  { %v401_v44 = vrot.slane %v1394_v46, %v1226_v41  ;;  %v405_v53 = vrot.slane %v1404_v51, %v1226_v41  ;;  %v409_v63 = vrot.slane %v1414_v55, %v1226_v41  ;;  %v413_v30 = vrot.slane %v1787_v29, %v1226_v41 }
  0xba   :  { %v417_v8 = vrot.slane %v1788_v9, %v1226_v41  ;;  %v421_v20 = vrot.slane %v1789_v16, %v1226_v41  ;;  %v425_v32 = vrot.slane %v1790_v25, %v1226_v41  ;;  %v429_v38 = vrot.slane %v1458_v15, %v1226_v41 }
  0xbb   :  { %v430_v36 = vmul.f32 %v369_v39, %v364_v59  ;;  %v431_v57 = vmul.f32 %v373_v47, %v364_v59  ;;  %v432_v0 = vmul.f32 %v377_v43, %v364_v59  ;;  %v433_v2 = vmul.f32 %v381_v19, %v364_v59 }
  0xbc   :  { %v434_v60 = vmul.f32 %v385_v33, %v364_v59  ;;  %v435_v1 = vmul.f32 %v389_v42, %v364_v59  ;;  %v436_v3 = vmul.f32 %v393_v27, %v364_v59  ;;  %v437_v5 = vmul.f32 %v397_v37, %v364_v59 }
  0xbd   :  { %v438_v6 = vmul.f32 %v401_v44, %v364_v59  ;;  %v439_v31 = vmul.f32 %v405_v53, %v364_v59  ;;  %v440_v13 = vmul.f32 %v409_v63, %v364_v59  ;;  %v441_v11 = vmul.f32 %v413_v30, %v364_v59 }
  0xbe   :  { %v442_v24 = vmul.f32 %v417_v8, %v364_v59  ;;  %v443_v28 = vmul.f32 %v421_v20, %v364_v59  ;;  %v444_v16 = vmul.f32 %v425_v32, %v364_v59  ;;  %v445_v9 = vmul.f32 %v429_v38, %v364_v59  ;;  %v1791_v8 = vld [vmem:[#allocation2_spill] sm:$0xff] }
  0xbf   :  { %v446_v25 = vadd.f32 %v430_v36, %v346_v12  ;;  %v447_v29 = vadd.f32 %v431_v57, %v347_v40  ;;  %v448_v55 = vadd.f32 %v432_v0, %v348_v23  ;;  %v449_v41 = vadd.f32 %v433_v2, %v349_v18  ;;  %v1795_v59 = vld [vmem:[#allocation10_spill] sm:$0xff] }
  0xc0   :  { %v450_v39 = vadd.f32 %v434_v60, %v350_v17  ;;  %v451_v47 = vadd.f32 %v435_v1, %v351_v22  ;;  %v452_v43 = vadd.f32 %v436_v3, %v352_v48  ;;  %v453_v19 = vadd.f32 %v437_v5, %v353_v45 }
  0xc1   :  { %v454_v33 = vadd.f32 %v438_v6, %v354_v49  ;;  %v455_v42 = vadd.f32 %v439_v31, %v355_v56  ;;  %v456_v27 = vadd.f32 %v440_v13, %v356_v50  ;;  %v457_v37 = vadd.f32 %v441_v11, %v357_v52  ;;  %v464_v56 = vpop.permute.xlu1 %463  ;;  %v1792_v50 = vld [vmem:[#allocation7_spill] sm:$0xff] }
  0xc2   :  { %v458_v44 = vadd.f32 %v442_v24, %v358_v61  ;;  %v459_v53 = vadd.f32 %v443_v28, %v359_v10  ;;  %v460_v63 = vadd.f32 %v444_v16, %v360_v54  ;;  %v461_v30 = vadd.f32 %v445_v9, %v361_v35  ;;  %v1793_v61 = vld [vmem:[#allocation8_spill] sm:$0xff]  ;;  %v1794_v54 = vld [vmem:[#allocation9_spill] sm:$0xff]  ;;  %v1796_v16 = vld [vmem:[#allocation11_spill] sm:$0xff] }
  0xc3   :  { %v469_v20 = vrot.slane %v1317_v58, %v1791_v8  ;;  %v473_v12 = vrot.slane %v1323_v62, %v1791_v8  ;;  %v477_v40 = vrot.slane %v1333_v4, %v1791_v8  ;;  %v481_v23 = vrot.slane %v1341_v7, %v1791_v8 }
  0xc4   :  { %v485_v18 = vrot.slane %v1352_v14, %v1791_v8  ;;  %v489_v17 = vrot.slane %v1363_v21, %v1791_v8  ;;  %v493_v22 = vrot.slane %v1374_v26, %v1791_v8  ;;  %v497_v48 = vrot.slane %v1384_v34, %v1791_v8 }
  0xc5   :  { %v501_v45 = vrot.slane %v1394_v46, %v1791_v8  ;;  %v505_v49 = vrot.slane %v1404_v51, %v1791_v8  ;;  %v509_v52 = vrot.slane %v1792_v50, %v1791_v8  ;;  %v513_v10 = vrot.slane %v1793_v61, %v1791_v8 }
  0xc6   :  { %v517_v35 = vrot.slane %v1794_v54, %v1791_v8  ;;  %v521_v9 = vrot.slane %v1795_v59, %v1791_v8  ;;  %v525_v32 = vrot.slane %v1796_v16, %v1791_v8  ;;  %v529_v38 = vrot.slane %v1458_v15, %v1791_v8 }
  0xc7   :  { %v530_v36 = vmul.f32 %v469_v20, %v464_v56  ;;  %v531_v57 = vmul.f32 %v473_v12, %v464_v56  ;;  %v532_v0 = vmul.f32 %v477_v40, %v464_v56  ;;  %v533_v2 = vmul.f32 %v481_v23, %v464_v56 }
  0xc8   :  { %v534_v60 = vmul.f32 %v485_v18, %v464_v56  ;;  %v535_v1 = vmul.f32 %v489_v17, %v464_v56  ;;  %v536_v3 = vmul.f32 %v493_v22, %v464_v56  ;;  %v537_v5 = vmul.f32 %v497_v48, %v464_v56 }
  0xc9   :  { %v538_v6 = vmul.f32 %v501_v45, %v464_v56  ;;  %v539_v31 = vmul.f32 %v505_v49, %v464_v56  ;;  %v540_v13 = vmul.f32 %v509_v52, %v464_v56  ;;  %v541_v11 = vmul.f32 %v513_v10, %v464_v56 }
  0xca   :  { %v542_v24 = vmul.f32 %v517_v35, %v464_v56  ;;  %v543_v28 = vmul.f32 %v521_v9, %v464_v56  ;;  %v544_v59 = vmul.f32 %v525_v32, %v464_v56  ;;  %v545_v54 = vmul.f32 %v529_v38, %v464_v56  ;;  %v1797_v35 = vld [vmem:[#allocation3_spill] sm:$0xff]  ;;  %v1801_v56 = vld [vmem:[#allocation10_spill] sm:$0xff] }
  0xcb   :  { %v546_v16 = vadd.f32 %v530_v36, %v446_v25  ;;  %v547_v61 = vadd.f32 %v531_v57, %v447_v29  ;;  %v548_v50 = vadd.f32 %v532_v0, %v448_v55  ;;  %v549_v8 = vadd.f32 %v533_v2, %v449_v41 }
  0xcc   :  { %v550_v20 = vadd.f32 %v534_v60, %v450_v39  ;;  %v551_v12 = vadd.f32 %v535_v1, %v451_v47  ;;  %v552_v40 = vadd.f32 %v536_v3, %v452_v43  ;;  %v553_v23 = vadd.f32 %v537_v5, %v453_v19 }
  0xcd   :  { %v554_v18 = vadd.f32 %v538_v6, %v454_v33  ;;  %v555_v17 = vadd.f32 %v539_v31, %v455_v42  ;;  %v556_v22 = vadd.f32 %v540_v13, %v456_v27  ;;  %v557_v48 = vadd.f32 %v541_v11, %v457_v37  ;;  %v564_v42 = vpop.permute.xlu1 %563  ;;  %v1798_v27 = vld [vmem:[#allocation7_spill] sm:$0xff] }
  0xce   :  { %v558_v45 = vadd.f32 %v542_v24, %v458_v44  ;;  %v559_v49 = vadd.f32 %v543_v28, %v459_v53  ;;  %v560_v52 = vadd.f32 %v544_v59, %v460_v63  ;;  %v561_v10 = vadd.f32 %v545_v54, %v461_v30  ;;  %v1799_v44 = vld [vmem:[#allocation8_spill] sm:$0xff]  ;;  %v1800_v63 = vld [vmem:[#allocation9_spill] sm:$0xff]  ;;  %v1802_v59 = vld [vmem:[#allocation11_spill] sm:$0xff] }
  0xcf   :  { %v569_v9 = vrot.slane %v1317_v58, %v1797_v35  ;;  %v573_v29 = vrot.slane %v1323_v62, %v1797_v35  ;;  %v577_v55 = vrot.slane %v1333_v4, %v1797_v35  ;;  %v581_v25 = vrot.slane %v1341_v7, %v1797_v35 }
  0xd0   :  { %v585_v41 = vrot.slane %v1352_v14, %v1797_v35  ;;  %v589_v39 = vrot.slane %v1363_v21, %v1797_v35  ;;  %v593_v47 = vrot.slane %v1374_v26, %v1797_v35  ;;  %v597_v43 = vrot.slane %v1384_v34, %v1797_v35 }
  0xd1   :  { %v601_v19 = vrot.slane %v1394_v46, %v1797_v35  ;;  %v605_v33 = vrot.slane %v1404_v51, %v1797_v35  ;;  %v609_v37 = vrot.slane %v1798_v27, %v1797_v35  ;;  %v613_v53 = vrot.slane %v1799_v44, %v1797_v35 }
  0xd2   :  { %v617_v30 = vrot.slane %v1800_v63, %v1797_v35  ;;  %v621_v54 = vrot.slane %v1801_v56, %v1797_v35  ;;  %v625_v32 = vrot.slane %v1802_v59, %v1797_v35  ;;  %v629_v38 = vrot.slane %v1458_v15, %v1797_v35 }
  0xd3   :  { %v630_v36 = vmul.f32 %v569_v9, %v564_v42  ;;  %v631_v57 = vmul.f32 %v573_v29, %v564_v42  ;;  %v632_v0 = vmul.f32 %v577_v55, %v564_v42  ;;  %v633_v2 = vmul.f32 %v581_v25, %v564_v42 }
  0xd4   :  { %v634_v60 = vmul.f32 %v585_v41, %v564_v42  ;;  %v635_v1 = vmul.f32 %v589_v39, %v564_v42  ;;  %v636_v3 = vmul.f32 %v593_v47, %v564_v42  ;;  %v637_v5 = vmul.f32 %v597_v43, %v564_v42 }
  0xd5   :  { %v638_v6 = vmul.f32 %v601_v19, %v564_v42  ;;  %v639_v31 = vmul.f32 %v605_v33, %v564_v42  ;;  %v640_v13 = vmul.f32 %v609_v37, %v564_v42  ;;  %v641_v11 = vmul.f32 %v613_v53, %v564_v42 }
  0xd6   :  { %v642_v24 = vmul.f32 %v617_v30, %v564_v42  ;;  %v643_v28 = vmul.f32 %v621_v54, %v564_v42  ;;  %v644_v56 = vmul.f32 %v625_v32, %v564_v42  ;;  %v645_v63 = vmul.f32 %v629_v38, %v564_v42  ;;  %v1803_v30 = vld [vmem:[#allocation4_spill] sm:$0xff]  ;;  %v1807_v42 = vld [vmem:[#allocation10_spill] sm:$0xff] }
  0xd7   :  { %v646_v59 = vadd.f32 %v630_v36, %v546_v16  ;;  %v647_v44 = vadd.f32 %v631_v57, %v547_v61  ;;  %v648_v27 = vadd.f32 %v632_v0, %v548_v50  ;;  %v649_v35 = vadd.f32 %v633_v2, %v549_v8  ;;  %v664_v50 = vpop.permute.xlu0 %663 }
  0xd8   :  { %v650_v9 = vadd.f32 %v634_v60, %v550_v20  ;;  %v651_v29 = vadd.f32 %v635_v1, %v551_v12  ;;  %v652_v55 = vadd.f32 %v636_v3, %v552_v40  ;;  %v653_v25 = vadd.f32 %v637_v5, %v553_v23 }
  0xd9   :  { %v654_v41 = vadd.f32 %v638_v6, %v554_v18  ;;  %v655_v39 = vadd.f32 %v639_v31, %v555_v17  ;;  %v656_v47 = vadd.f32 %v640_v13, %v556_v22  ;;  %v657_v43 = vadd.f32 %v641_v11, %v557_v48  ;;  %v1804_v22 = vld [vmem:[#allocation7_spill] sm:$0xff] }
  0xda   :  { %v658_v19 = vadd.f32 %v642_v24, %v558_v45  ;;  %v659_v33 = vadd.f32 %v643_v28, %v559_v49  ;;  %v660_v37 = vadd.f32 %v644_v56, %v560_v52  ;;  %v661_v53 = vadd.f32 %v645_v63, %v561_v10  ;;  %v1805_v45 = vld [vmem:[#allocation8_spill] sm:$0xff]  ;;  %v1806_v52 = vld [vmem:[#allocation9_spill] sm:$0xff]  ;;  %v1808_v56 = vld [vmem:[#allocation11_spill] sm:$0xff] }
  0xdb   :  { %v669_v54 = vrot.slane %v1317_v58, %v1803_v30  ;;  %v673_v61 = vrot.slane %v1323_v62, %v1803_v30  ;;  %v677_v16 = vrot.slane %v1333_v4, %v1803_v30  ;;  %v681_v8 = vrot.slane %v1341_v7, %v1803_v30 }
  0xdc   :  { %v685_v20 = vrot.slane %v1352_v14, %v1803_v30  ;;  %v689_v12 = vrot.slane %v1363_v21, %v1803_v30  ;;  %v693_v40 = vrot.slane %v1374_v26, %v1803_v30  ;;  %v697_v23 = vrot.slane %v1384_v34, %v1803_v30 }
  0xdd   :  { %v701_v18 = vrot.slane %v1394_v46, %v1803_v30  ;;  %v705_v17 = vrot.slane %v1404_v51, %v1803_v30  ;;  %v709_v48 = vrot.slane %v1804_v22, %v1803_v30  ;;  %v713_v49 = vrot.slane %v1805_v45, %v1803_v30 }
  0xde   :  { %v717_v10 = vrot.slane %v1806_v52, %v1803_v30  ;;  %v721_v63 = vrot.slane %v1807_v42, %v1803_v30  ;;  %v725_v32 = vrot.slane %v1808_v56, %v1803_v30  ;;  %v729_v38 = vrot.slane %v1458_v15, %v1803_v30 }
  0xdf   :  { %v730_v36 = vmul.f32 %v669_v54, %v664_v50  ;;  %v731_v57 = vmul.f32 %v673_v61, %v664_v50  ;;  %v732_v0 = vmul.f32 %v677_v16, %v664_v50  ;;  %v733_v2 = vmul.f32 %v681_v8, %v664_v50 }
  0xe0   :  { %v734_v60 = vmul.f32 %v685_v20, %v664_v50  ;;  %v735_v1 = vmul.f32 %v689_v12, %v664_v50  ;;  %v736_v3 = vmul.f32 %v693_v40, %v664_v50  ;;  %v737_v5 = vmul.f32 %v697_v23, %v664_v50 }
  0xe1   :  { %v738_v6 = vmul.f32 %v701_v18, %v664_v50  ;;  %v739_v31 = vmul.f32 %v705_v17, %v664_v50  ;;  %v740_v13 = vmul.f32 %v709_v48, %v664_v50  ;;  %v741_v11 = vmul.f32 %v713_v49, %v664_v50 }
  0xe2   :  { %v742_v24 = vmul.f32 %v717_v10, %v664_v50  ;;  %v743_v28 = vmul.f32 %v721_v63, %v664_v50  ;;  %v744_v42 = vmul.f32 %v725_v32, %v664_v50  ;;  %v745_v52 = vmul.f32 %v729_v38, %v664_v50  ;;  %v1809_v10 = vld [vmem:[#allocation5_spill] sm:$0xff]  ;;  %v1813_v50 = vld [vmem:[#allocation10_spill] sm:$0xff] }
  0xe3   :  { %v746_v56 = vadd.f32 %v730_v36, %v646_v59  ;;  %v747_v45 = vadd.f32 %v731_v57, %v647_v44  ;;  %v748_v22 = vadd.f32 %v732_v0, %v648_v27  ;;  %v749_v30 = vadd.f32 %v733_v2, %v649_v35 }
  0xe4   :  { %v750_v54 = vadd.f32 %v734_v60, %v650_v9  ;;  %v751_v61 = vadd.f32 %v735_v1, %v651_v29  ;;  %v752_v16 = vadd.f32 %v736_v3, %v652_v55  ;;  %v753_v8 = vadd.f32 %v737_v5, %v653_v25 }
  0xe5   :  { %v754_v20 = vadd.f32 %v738_v6, %v654_v41  ;;  %v755_v12 = vadd.f32 %v739_v31, %v655_v39  ;;  %v756_v40 = vadd.f32 %v740_v13, %v656_v47  ;;  %v757_v23 = vadd.f32 %v741_v11, %v657_v43  ;;  %v764_v39 = vpop.permute.xlu1 %763  ;;  %v1810_v47 = vld [vmem:[#allocation7_spill] sm:$0xff] }
  0xe6   :  { %v758_v18 = vadd.f32 %v742_v24, %v658_v19  ;;  %v759_v17 = vadd.f32 %v743_v28, %v659_v33  ;;  %v760_v48 = vadd.f32 %v744_v42, %v660_v37  ;;  %v761_v49 = vadd.f32 %v745_v52, %v661_v53  ;;  %v1811_v19 = vld [vmem:[#allocation8_spill] sm:$0xff]  ;;  %v1812_v37 = vld [vmem:[#allocation9_spill] sm:$0xff]  ;;  %v1814_v42 = vld [vmem:[#allocation11_spill] sm:$0xff] }
  0xe7   :  { %v769_v63 = vrot.slane %v1317_v58, %v1809_v10  ;;  %v773_v44 = vrot.slane %v1323_v62, %v1809_v10  ;;  %v777_v27 = vrot.slane %v1333_v4, %v1809_v10  ;;  %v781_v59 = vrot.slane %v1341_v7, %v1809_v10 }
  0xe8   :  { %v785_v35 = vrot.slane %v1352_v14, %v1809_v10  ;;  %v789_v9 = vrot.slane %v1363_v21, %v1809_v10  ;;  %v793_v29 = vrot.slane %v1374_v26, %v1809_v10  ;;  %v797_v55 = vrot.slane %v1384_v34, %v1809_v10 }
  0xe9   :  { %v801_v25 = vrot.slane %v1394_v46, %v1809_v10  ;;  %v805_v41 = vrot.slane %v1404_v51, %v1809_v10  ;;  %v809_v43 = vrot.slane %v1810_v47, %v1809_v10  ;;  %v813_v33 = vrot.slane %v1811_v19, %v1809_v10 }
  0xea   :  { %v817_v53 = vrot.slane %v1812_v37, %v1809_v10  ;;  %v821_v52 = vrot.slane %v1813_v50, %v1809_v10  ;;  %v825_v32 = vrot.slane %v1814_v42, %v1809_v10  ;;  %v829_v38 = vrot.slane %v1458_v15, %v1809_v10 }
  0xeb   :  { %v830_v36 = vmul.f32 %v769_v63, %v764_v39  ;;  %v831_v57 = vmul.f32 %v773_v44, %v764_v39  ;;  %v832_v0 = vmul.f32 %v777_v27, %v764_v39  ;;  %v833_v2 = vmul.f32 %v781_v59, %v764_v39 }
  0xec   :  { %v834_v60 = vmul.f32 %v785_v35, %v764_v39  ;;  %v835_v1 = vmul.f32 %v789_v9, %v764_v39  ;;  %v836_v3 = vmul.f32 %v793_v29, %v764_v39  ;;  %v837_v5 = vmul.f32 %v797_v55, %v764_v39 }
  0xed   :  { %v838_v6 = vmul.f32 %v801_v25, %v764_v39  ;;  %v839_v31 = vmul.f32 %v805_v41, %v764_v39  ;;  %v840_v13 = vmul.f32 %v809_v43, %v764_v39  ;;  %v841_v11 = vmul.f32 %v813_v33, %v764_v39 }
  0xee   :  { %v842_v24 = vmul.f32 %v817_v53, %v764_v39  ;;  %v843_v28 = vmul.f32 %v821_v52, %v764_v39  ;;  %v844_v50 = vmul.f32 %v825_v32, %v764_v39  ;;  %v845_v37 = vmul.f32 %v829_v38, %v764_v39  ;;  %v1815_v53 = vld [vmem:[#allocation6_spill] sm:$0xff] }
  0xef   :  { %v846_v42 = vadd.f32 %v830_v36, %v746_v56  ;;  %v847_v19 = vadd.f32 %v831_v57, %v747_v45  ;;  %v848_v47 = vadd.f32 %v832_v0, %v748_v22  ;;  %v849_v10 = vadd.f32 %v833_v2, %v749_v30  ;;  %v864_v22 = vpop.permute.xlu1 %863 }
  0xf0   :  { %v850_v63 = vadd.f32 %v834_v60, %v750_v54  ;;  %v851_v44 = vadd.f32 %v835_v1, %v751_v61  ;;  %v852_v27 = vadd.f32 %v836_v3, %v752_v16  ;;  %v853_v59 = vadd.f32 %v837_v5, %v753_v8 }
  0xf1   :  { %v854_v35 = vadd.f32 %v838_v6, %v754_v20  ;;  %v855_v9 = vadd.f32 %v839_v31, %v755_v12  ;;  %v856_v29 = vadd.f32 %v840_v13, %v756_v40  ;;  %v857_v55 = vadd.f32 %v841_v11, %v757_v23 }
  0xf2   :  { %v858_v25 = vadd.f32 %v842_v24, %v758_v18  ;;  %v859_v41 = vadd.f32 %v843_v28, %v759_v17  ;;  %v860_v43 = vadd.f32 %v844_v50, %v760_v48  ;;  %v861_v33 = vadd.f32 %v845_v37, %v761_v49 }
  0xf3   :  { %v869_v52 = vrot.slane %v1317_v58, %v1815_v53  ;;  %v873_v45 = vrot.slane %v1323_v62, %v1815_v53  ;;  %v877_v56 = vrot.slane %v1333_v4, %v1815_v53  ;;  %v881_v30 = vrot.slane %v1341_v7, %v1815_v53  ;;  %v1816_v7 = vld [vmem:[#allocation7_spill] sm:$0xff] }
  0xf4   :  { %v885_v54 = vrot.slane %v1352_v14, %v1815_v53  ;;  %v889_v61 = vrot.slane %v1363_v21, %v1815_v53  ;;  %v893_v16 = vrot.slane %v1374_v26, %v1815_v53  ;;  %v897_v58 = vrot.slane %v1384_v34, %v1815_v53  ;;  %v1817_v14 = vld [vmem:[#allocation8_spill] sm:$0xff]  ;;  %v1818_v21 = vld [vmem:[#allocation9_spill] sm:$0xff]  ;;  %v1819_v26 = vld [vmem:[#allocation10_spill] sm:$0xff] }
  0xf5   :  { %v901_v62 = vrot.slane %v1394_v46, %v1815_v53  ;;  %v905_v4 = vrot.slane %v1404_v51, %v1815_v53  ;;  %v909_v8 = vrot.slane %v1816_v7, %v1815_v53  ;;  %v913_v20 = vrot.slane %v1817_v14, %v1815_v53  ;;  %v1820_v34 = vld [vmem:[#allocation11_spill] sm:$0xff] }
  0xf6   :  { %v917_v12 = vrot.slane %v1818_v21, %v1815_v53  ;;  %v921_v40 = vrot.slane %v1819_v26, %v1815_v53  ;;  %vm977_vm0 = vcmask 15360   ;;  %v925_v23 = vrot.slane %v1820_v34, %v1815_v53 }
  0xf7   :  { %v929_v46 = vrot.slane %v1458_v15, %v1815_v53  ;;  %v930_v51 = vmul.f32 %v869_v52, %v864_v22  ;;  %v931_v18 = vmul.f32 %v873_v45, %v864_v22  ;;  %v932_v17 = vmul.f32 %v877_v56, %v864_v22 }
  0xf8   :  { %v933_v48 = vmul.f32 %v881_v30, %v864_v22  ;;  %v934_v49 = vmul.f32 %v885_v54, %v864_v22  ;;  %v935_v39 = vmul.f32 %v889_v61, %v864_v22  ;;  %v936_v37 = vmul.f32 %v893_v16, %v864_v22 }
  0xf9   :  { %v937_v50 = vmul.f32 %v897_v58, %v864_v22  ;;  %v938_v32 = vmul.f32 %v901_v62, %v864_v22  ;;  %v939_v38 = vmul.f32 %v905_v4, %v864_v22  ;;  %v940_v36 = vmul.f32 %v909_v8, %v864_v22 }
  0xfa   :  { %v941_v57 = vmul.f32 %v913_v20, %v864_v22  ;;  %v942_v0 = vmul.f32 %v917_v12, %v864_v22  ;;  %v943_v2 = vmul.f32 %v921_v40, %v864_v22  ;;  %v944_v60 = vmul.f32 %v925_v23, %v864_v22 }
  0xfb   :  { %v945_v1 = vmul.f32 %v929_v46, %v864_v22  ;;  %v946_v3 = vadd.f32 %v930_v51, %v846_v42  ;;  %v947_v5 = vadd.f32 %v931_v18, %v847_v19  ;;  %v948_v6 = vadd.f32 %v932_v17, %v848_v47 }
  0xfc   :  { %v949_v15 = vadd.f32 %v933_v48, %v849_v10  ;;  %v950_v31 = vadd.f32 %v934_v49, %v850_v63  ;;  %v951_v13 = vadd.f32 %v935_v39, %v851_v44  ;;  %v952_v11 = vadd.f32 %v936_v37, %v852_v27 }
  0xfd   :  { %v953_v24 = vadd.f32 %v937_v50, %v853_v59  ;;  %v954_v28 = vadd.f32 %v938_v32, %v854_v35  ;;  %v955_v53 = vadd.f32 %v939_v38, %v855_v9  ;;  %963 = vst [vmem:[%s1759_s4 + $0x8] sm:$0xff] %v947_v5  ;;  %962 = vst [vmem:[%s1759_s4] sm:$0xff] %v946_v3  ;;  %vm997_vm1 = vcmask 7168  }
  0xfe   :  { %v956_v52 = vadd.f32 %v940_v36, %v856_v29  ;;  %v957_v45 = vadd.f32 %v941_v57, %v857_v55  ;;  %v958_v42 = vadd.f32 %v942_v0, %v858_v25  ;;  %v959_v19 = vadd.f32 %v943_v2, %v859_v41  ;;  %964 = vst [vmem:[%s1759_s4 + $0x10] sm:$0xff] %v948_v6 }
  0xff   :  { %965 = vst [vmem:[%s1759_s4 + $0x18] sm:$0xff] %v949_v15  ;;  %966 = vst [vmem:[%s1759_s4 + $0x20] sm:$0xff] %v950_v31  ;;  %v960_v47 = vadd.f32 %v944_v60, %v860_v43  ;;  %v961_v10 = vadd.f32 %v945_v1, %v861_v33  ;;  %v979_v63 = vadd.f32 %v947_v5, %v946_v3 }
 0x100   :  { %967 = vst [vmem:[%s1759_s4 + $0x28] sm:$0xff] %v951_v13  ;;  %968 = vst [vmem:[%s1759_s4 + $0x30] sm:$0xff] %v952_v11  ;;  %v999_v44 = vmul.f32 %v946_v3, %v946_v3  ;;  %v1000_v27 = vmul.f32 %v947_v5, %v947_v5  ;;  %v1001_v9 = vmul.f32 %v948_v6, %v948_v6 }
 0x101   :  { %969 = vst [vmem:[%s1759_s4 + $0x38] sm:$0xff] %v953_v24  ;;  %970 = vst [vmem:[%s1759_s4 + $0x40] sm:$0xff] %v954_v28  ;;  %v980_v59 = vadd.f32 %v979_v63, %v948_v6  ;;  %v1002_v25 = vmul.f32 %v949_v15, %v949_v15  ;;  %v1003_v33 = vmul.f32 %v950_v31, %v950_v31  ;;  %v993_v37 = vsel %vm977_vm0, %v961_v10, 0.0 }
 0x102   :  { %971 = vst [vmem:[%s1759_s4 + $0x48] sm:$0xff] %v955_v53  ;;  %972 = vst [vmem:[%s1759_s4 + $0x50] sm:$0xff] %v956_v52  ;;  %v1015_v29 = vadd.f32 %v1000_v27, %v999_v44  ;;  %v1004_v30 = vmul.f32 %v951_v13, %v951_v13  ;;  %v1005_v16 = vmul.f32 %v952_v11, %v952_v11 }
 0x103   :  { %973 = vst [vmem:[%s1759_s4 + $0x58] sm:$0xff] %v957_v45  ;;  %974 = vst [vmem:[%s1759_s4 + $0x60] sm:$0xff] %v958_v42  ;;  %v981_v35 = vadd.f32 %v980_v59, %v949_v15  ;;  %v1006_v4 = vmul.f32 %v953_v24, %v953_v24  ;;  %v1007_v14 = vmul.f32 %v954_v28, %v954_v28 }
 0x104   :  { %975 = vst [vmem:[%s1759_s4 + $0x68] sm:$0xff] %v959_v19  ;;  %976 = vst [vmem:[%s1759_s4 + $0x70] sm:$0xff] %v960_v47  ;;  %v1016_v41 = vadd.f32 %v1015_v29, %v1001_v9  ;;  %v1008_v12 = vmul.f32 %v955_v53, %v955_v53  ;;  %v1009_v34 = vmul.f32 %v956_v52, %v956_v52 }
 0x105   :  { %978 = vst.msk [vmem:[%s1759_s4 + $0x78] sm:$0xff] %vm977_vm0, %v961_v10  ;;  %v982_v55 = vadd.f32 %v981_v35, %v950_v31  ;;  %v1010_v51 = vmul.f32 %v957_v45, %v957_v45  ;;  %v1011_v48 = vmul.f32 %v958_v42, %v958_v42  ;;  %v1012_v50 = vmul.f32 %v959_v19, %v959_v19 }
 0x106   :  { %v1017_v22 = vadd.f32 %v1016_v41, %v1002_v25  ;;  %v1014_v36 = vmul.f32 %v961_v10, %v961_v10  ;;  %v1013_v57 = vmul.f32 %v960_v47, %v960_v47 }
 0x107   :  { %v983_v43 = vadd.f32 %v982_v55, %v951_v13 }
 0x108   :  { %v1018_v54 = vadd.f32 %v1017_v22, %v1003_v33  ;;  %v1029_v60 = vsel %vm977_vm0, %v1014_v36, 0.0 }
 0x109   :  { %v984_v56 = vadd.f32 %v983_v43, %v952_v11 }
 0x10a   :  { %v1019_v58 = vadd.f32 %v1018_v54, %v1004_v30 }
 0x10b   :  { %v985_v61 = vadd.f32 %v984_v56, %v953_v24 }
 0x10c   :  { %v1020_v7 = vadd.f32 %v1019_v58, %v1005_v16 }
 0x10d   :  { %v986_v62 = vadd.f32 %v985_v61, %v954_v28 }
 0x10e   :  { %v1021_v20 = vadd.f32 %v1020_v7, %v1006_v4 }
 0x10f   :  { %v987_v8 = vadd.f32 %v986_v62, %v955_v53 }
 0x110   :  { %v1022_v26 = vadd.f32 %v1021_v20, %v1007_v14 }
 0x111   :  { %v988_v21 = vadd.f32 %v987_v8, %v956_v52 }
 0x112   :  { %v1023_v23 = vadd.f32 %v1022_v26, %v1008_v12 }
 0x113   :  { %v989_v40 = vadd.f32 %v988_v21, %v957_v45 }
 0x114   :  { %v1024_v18 = vadd.f32 %v1023_v23, %v1009_v34 }
 0x115   :  { %v990_v46 = vadd.f32 %v989_v40, %v958_v42 }
 0x116   :  { %v1025_v49 = vadd.f32 %v1024_v18, %v1010_v51 }
 0x117   :  { %v991_v17 = vadd.f32 %v990_v46, %v959_v19 }
 0x118   :  { %v1026_v32 = vadd.f32 %v1025_v49, %v1011_v48 }
 0x119   :  { %v992_v39 = vadd.f32 %v991_v17, %v960_v47 }
 0x11a   :  { %v1027_v0 = vadd.f32 %v1026_v32, %v1012_v50 }
 0x11b   :  { %v994_v38 = vadd.f32 %v993_v37, %v992_v39 }
 0x11c   :  { %v1028_v2 = vadd.f32 %v1027_v0, %v1013_v57 }
 0x11d   :  { %995 = vadd.xlane.f32.xlu0 %v994_v38 }
 0x11e   :  { %v1030_v1 = vadd.f32 %v1029_v60, %v1028_v2 }
 0x120   :  { %1031 = vadd.xlane.f32.xlu1 %v1030_v1 }
 0x1aa   :  { %v996_v3 = vpop.xlane.xlu0 %995 }
 0x1ab   :  { %998 = vst.msk [vmem:[%s1760_s5] sm:$0xff] %vm997_vm1, %v996_v3 }
 0x1ad   :  { %v1032_v5 = vpop.xlane.xlu1 %1031 }
 0x1ae   :  { %1033 = vst.msk [vmem:[%s1761_s6] sm:$0xff] %vm997_vm1, %v1032_v5 }

// kernel: basic_decoder_block_forward.11
= control target key start
LH: loop header
LB: loop body
LE: loop exit
PB: predicated region body
PF: predicated region fallthrough
CT: control target
= control target key end

     0   :  { %s3566_s18 = smov 0   ;;  %s4478_s0 = inlined_call_operand.vmem [shape: f32[2,8,31,31], index: 0, kind: input, shape index: {}]   ;;  %s4479_s1 = inlined_call_operand.vmem [shape: f32[67,31], index: 1, kind: input, shape index: {}]   ;;  %s4480_s2 = inlined_call_operand.vmem [shape: f32[31,128], index: 2, kind: input, shape index: {}]   ;;  %s4481_s3 = inlined_call_operand.vmem [shape: f32[8,67,128], index: 3, kind: input, shape index: {}]   ;;  %s4482_s4 = inlined_call_operand.vmem [shape: f32[2,8,67,128], index: 4, kind: input, shape index: {}]   ;;  %s4483_s5 = inlined_call_operand.vmem [shape: f32[2,8,67,128], index: 5, kind: output, shape index: {}]  }
   0x1 LB: > { %s2457_s19 = sadd.s32 4294967295, %s3530_s18   ;;  %p2461_p0 = scmp.ge.s32.totalorder %s3530_s18, 1  ;;  %s3530_s18 = sphi %s3566_s18, %s15_s18  }
   0x2   : > { %p197_p1 = scmp.lt.s32.totalorder %s3530_s18, 3 }
   0x4   : > { %p198_p2 = pnand %p2461_p0, %p197_p1 }
   0x5   : > { %v254_v0 = vld [vmem:[%s4480_s2] sm:$0xff] (!%p198_p2)  ;;  %v255_v1 = vld [vmem:[%s4480_s2 + $0x8] sm:$0xff] (!%p198_p2)  ;;  %v256_v2 = vld [vmem:[%s4480_s2 + $0x10] sm:$0xff] (!%p198_p2)  ;;  %vm275_vm0 = vcmask (!%p198_p2), 1046528   ;;  %p230_p3 = scmp.lt.s32.totalorder (!%p198_p2), %s2457_s19, 1  ;;  %vm3532_vm1 = vmmov (!%p198_p2), 1  }
   0x6   : > { %201 = sbr.rel (%p198_p2) target bundleno = 1264 (0x4f0), region = 40  ;;  %v3583_v3 = vpack.c.bf16 (!%p198_p2), %v255_v1, %v254_v0  ;;  %v257_v4 = vld [vmem:[%s4480_s2 + $0x18] sm:$0x7f] (!%p198_p2)  ;;  %vm3590_vm2 = vmpackc.low (!%p198_p2), %vm275_vm0, %vm3532_vm1  ;;  %vm262_vm3 = vcmask (!%p198_p2), 252928   ;;  %v3533_v15 = vmov (!%p198_p2), 0.0|0.0   ;;  %vm3534_vm4 = vmmov (!%p198_p2), 0  }
   0x7   : > { %v3588_v5 = vpack.c.bf16 (!%p198_p2), %v257_v4, %v256_v2  ;;  %v3535_v16 = vmov (!%p198_p2), 0.0   ;;  %v3649_v29 = vld [vmem:[%s4479_s1] sm:$0xff] (!%p198_p2)  ;;  %v3662_v30 = vld [vmem:[%s4479_s1 + $0x8] sm:$0xff] (!%p198_p2)  ;;  %v3685_v31 = vld [vmem:[%s4479_s1 + $0x10] sm:$0xff] (!%p198_p2) }
   0x8   : > { %3367 = vmatprep.subr.bf16.mxu1 (!%p198_p2), %v3583_v3  ;;  %3384 = vmatprep.subr.bf16.mxu0 (!%p198_p2), %v3583_v3  ;;  %v3706_v32 = vld [vmem:[%s4479_s1 + $0x18] sm:$0xff] (!%p198_p2)  ;;  %v3719_v33 = vld [vmem:[%s4479_s1 + $0x20] sm:$0xff] (!%p198_p2)  ;;  %v3732_v34 = vld [vmem:[%s4479_s1 + $0x28] sm:$0xff] (!%p198_p2) }
   0x9   : > { %3369 = vmatpush3.bf16.msra.mxu1 (!%p198_p2), %v3583_v3  ;;  %3386 = vmatpush3.bf16.msra.mxu0 (!%p198_p2), %v3583_v3  ;;  %v3745_v35 = vld [vmem:[%s4479_s1 + $0x30] sm:$0xff] (!%p198_p2)  ;;  %v3758_v36 = vld [vmem:[%s4479_s1 + $0x38] sm:$0xff] (!%p198_p2)  ;;  %v3771_v37 = vld [vmem:[%s4479_s1 + $0x40] sm:$0x7] (!%p198_p2) }
   0xa   : > { %3372 = vmatprep.subr.msk.bf16.mxu1 (!%p198_p2), %vm3590_vm2, %v3588_v5  ;;  %3389 = vmatprep.subr.msk.bf16.mxu0 (!%p198_p2), %vm3590_vm2, %v3588_v5  ;;  %v364_v48 = vld [vmem:[%s4481_s3] sm:$0xff] (!%p198_p2)  ;;  %v2490_v49 = vld [vmem:[%s4481_s3 + $0x48] sm:$0xff] (!%p198_p2)  ;;  %v2491_v61 = vld [vmem:[%s4481_s3 + $0x50] sm:$0xff] (!%p198_p2) }
   0xb   : > { %v365_v60 = vld [vmem:[%s4481_s3 + $0x8] sm:$0xff] (!%p198_p2)  ;;  %v3517_v6 = vld [vmem:[%s4479_s1 + $0x10] sm:$0xff] (!%p198_p2) }
   0xd   : > { %s4487_s19 = smov (!%p230_p3, %s2457_s19), 1  ;;  %3375 = vmatpush3.bf16.msk.msra.mxu1 %vm3590_vm2, %v3588_v5  ;;  %3392 = vmatpush3.bf16.msk.msra.mxu0 %vm3590_vm2, %v3588_v5 }
   0xe   : > { %s2805_s28 = sshll.u32 %s4487_s19, 8  ;;  %3376 = vmatprep.subr.bf16.mxu1 %v3533_v15  ;;  %3393 = vmatprep.subr.bf16.mxu0 %v3533_v15  ;;  %s3502_s27 = smul.u32 576, %s4487_s19 }
   0xf   : > { %s3610_s6 = scalar_lea.vmem %s4478_s0, %s2805_s28 }
  0x10   : > { %v258_v7 = vld [vmem:[%s3610_s6] sm:$0xff]  ;;  %v259_v9 = vld [vmem:[%s3610_s6 + $0x8] sm:$0xff]  ;;  %v260_v11 = vld [vmem:[%s3610_s6 + $0x10] sm:$0xff]  ;;  %s3801_s30 = scalar_lea.vmem %s4482_s4, %s3502_s27  ;;  %s3816_s12 = scalar_lea.vmem %s4483_s5, %s3502_s27 }
  0x11   : > { %v2481_v8 = vld [vmem:[%s3610_s6 + $0x20] sm:$0xff]  ;;  %2982 = vmatprep.mubr.msk.f32.mxu1 %vm262_vm3, %v258_v7  ;;  %v2482_v10 = vld [vmem:[%s3610_s6 + $0x28] sm:$0xff]  ;;  %v2483_v12 = vld [vmem:[%s3610_s6 + $0x30] sm:$0xff] }
  0x12   : > { %3031 = vmatprep.mubr.msk.f32.mxu0 %vm262_vm3, %v2481_v8  ;;  %2983 = vmatmul.mubr.msk.f32.vlgmr.msra.gmra.mrb[0].mxu1 %vm262_vm3, %v259_v9  ;;  %v261_v13 = vld [vmem:[%s3610_s6 + $0x18] sm:$0x7f]  ;;  %v2527_v38 = vld [vmem:[%s3610_s6 + $0x40] sm:$0xff]  ;;  %v2528_v40 = vld [vmem:[%s3610_s6 + $0x48] sm:$0xff] }
  0x13   : > { %3032 = vmatmul.mubr.msk.f32.vlgmr.msra.gmra.mrb[0].mxu0 %vm262_vm3, %v2482_v10  ;;  %2985 = vmatprep.mubr.msk.f32.mxu1 %vm262_vm3, %v260_v11  ;;  %v2484_v14 = vld [vmem:[%s3610_s6 + $0x38] sm:$0x7f]  ;;  %v2573_v39 = vld [vmem:[%s3610_s6 + $0x60] sm:$0xff]  ;;  %v2574_v41 = vld [vmem:[%s3610_s6 + $0x68] sm:$0xff] }
  0x14   : > { %3034 = vmatprep.mubr.msk.f32.mxu0 %vm262_vm3, %v2483_v12  ;;  %v2529_v42 = vld [vmem:[%s3610_s6 + $0x50] sm:$0xff]  ;;  %v2530_v44 = vld [vmem:[%s3610_s6 + $0x58] sm:$0x7f]  ;;  %v513_v46 = vld [vmem:[%s3801_s30] sm:$0xff] }
  0x15   : > { %v2575_v43 = vld [vmem:[%s3610_s6 + $0x70] sm:$0xff]  ;;  %v2576_v45 = vld [vmem:[%s3610_s6 + $0x78] sm:$0x7f]  ;;  %v2509_v47 = vld [vmem:[%s3801_s30 + $0x48] sm:$0xff]  ;;  %v522_v50 = vmul.f32 0.1, %v513_v46 }
  0x16   : > { %2986 = vmatmul.mubr.msk.f32.gmra.mrb[2].mxu1 %vm262_vm3, %v261_v13  ;;  %v784_v51 = vmul.f32 0.1, %v2509_v47  ;;  %v514_v54 = vld [vmem:[%s3801_s30 + $0x8] sm:$0xff]  ;;  %v2510_v55 = vld [vmem:[%s3801_s30 + $0x50] sm:$0xff]  ;;  %v2511_v8 = vld [vmem:[%s3801_s30 + $0x58] sm:$0xff] }
  0x17   : > { %3035 = vmatmul.mubr.msk.f32.gmra.mrb[2].mxu0 %vm262_vm3, %v2484_v14  ;;  %2996 = vmatprep.mubr.msk.f32.mxu1 %vm3534_vm4, %v3535_v16  ;;  %v523_v0 = vmul.f32 0.1, %v514_v54  ;;  %v785_v1 = vmul.f32 0.1, %v2510_v55  ;;  %v515_v7 = vld [vmem:[%s3801_s30 + $0x10] sm:$0xff]  ;;  %v2492_v14 = vld [vmem:[%s4481_s3 + $0x58] sm:$0xff] }
  0x18   : > { %3045 = vmatprep.mubr.msk.f32.mxu0 %vm3534_vm4, %v3535_v16  ;;  %v366_v13 = vld [vmem:[%s4481_s3 + $0x10] sm:$0xff]  ;;  %v517_v46 = vld [vmem:[%s3801_s30 + $0x20] sm:$0xff]  ;;  %v2513_v47 = vld [vmem:[%s3801_s30 + $0x68] sm:$0xff] }
  0xe5   : > { %v2984_v17 = vpop.f32.mrb[0].mxu1 }
  0xe6   : > { %v3033_v18 = vpop.f32.mrb[0].mxu0  ;;  %v345_v19 = vpop.f32.mrb[1].mxu1 }
  0xe7   : > { %v632_v20 = vpop.f32.mrb[1].mxu0  ;;  %v3377_v21 = vpack.c.bf16 %v2984_v17, %v345_v19  ;;  %v524_v19 = vmul.f32 0.1, %v515_v7 }
  0xe8   : > { %v3394_v22 = vpack.c.bf16 %v3033_v18, %v632_v20  ;;  %v786_v20 = vmul.f32 0.1, %v2511_v8 }
  0xe9   : > { %v2987_v23 = vpop.f32.mrb[2].mxu1  ;;  %3378 = vmatpush3.bf16.msra.mxu1 %v3377_v21 }
  0xea   : > { %v3036_v24 = vpop.f32.mrb[2].mxu0  ;;  %3395 = vmatpush3.bf16.msra.mxu0 %v3394_v22  ;;  %v355_v25 = vpop.f32.mrb[3].mxu1  ;;  %3379 = vmatprep.subr.bf16.mxu1 %v3533_v15 }
  0xeb   : > { %v642_v26 = vpop.f32.mrb[3].mxu0  ;;  %3396 = vmatprep.subr.bf16.mxu0 %v3533_v15  ;;  %v3380_v27 = vpack.c.bf16 %v2987_v23, %v355_v25  ;;  %v516_v23 = vld [vmem:[%s3801_s30 + $0x18] sm:$0xff] }
  0xec   : > { %v3397_v28 = vpack.c.bf16 %v3036_v24, %v642_v26  ;;  %v2512_v24 = vld [vmem:[%s3801_s30 + $0x60] sm:$0xff] }
  0xed   : > { %3382 = vmatpush3.bf16.msk.msra.mxu1 %vm3590_vm2, %v3380_v27 }
  0xee   : > { %3399 = vmatpush3.bf16.msk.msra.mxu0 %vm3590_vm2, %v3397_v28  ;;  %3401 = vmatprep.subr.bf16.mxu1 %v3583_v3 }
  0xef   : > { %3418 = vmatprep.subr.bf16.mxu0 %v3583_v3 }
  0xf0   : > { %2997 = vmatmul.mubr.msk.f32.vlgmr.msra.gmra.mrb[4].mxu1 %vm262_vm3, %v3649_v29 }
  0xf1   : > { %3046 = vmatmul.mubr.msk.f32.vlgmr.msra.gmra.mrb[4].mxu0 %vm262_vm3, %v3649_v29  ;;  %3403 = vmatpush3.bf16.msra.mxu1 %v3583_v3 }
  0xf2   : > { %3420 = vmatpush3.bf16.msra.mxu0 %v3583_v3  ;;  %2999 = vmatprep.mubr.msk.f32.mxu1 %vm3534_vm4, %v3535_v16 }
  0xf3   : > { %3048 = vmatprep.mubr.msk.f32.mxu0 %vm3534_vm4, %v3535_v16  ;;  %3406 = vmatprep.subr.msk.bf16.mxu1 %vm3590_vm2, %v3588_v5 }
  0xf4   : > { %3423 = vmatprep.subr.msk.bf16.mxu0 %vm3590_vm2, %v3588_v5  ;;  %3000 = vmatmul.mubr.msk.f32.gmra.mrb[6].mxu1 %vm262_vm3, %v3662_v30 }
  0xf5   : > { %3049 = vmatmul.mubr.msk.f32.gmra.mrb[6].mxu0 %vm262_vm3, %v3662_v30  ;;  %3002 = vmatprep.mubr.msk.f32.mxu1 %vm3534_vm4, %v3535_v16 }
  0xf6   : > { %3051 = vmatprep.mubr.msk.f32.mxu0 %vm3534_vm4, %v3535_v16  ;;  %3409 = vmatpush3.bf16.msk.msra.mxu1 %vm3590_vm2, %v3588_v5 }
  0xf7   : > { %3426 = vmatpush3.bf16.msk.msra.mxu0 %vm3590_vm2, %v3588_v5  ;;  %3410 = vmatprep.subr.bf16.mxu1 %v3533_v15 }
  0xf8   : > { %3427 = vmatprep.subr.bf16.mxu0 %v3533_v15  ;;  %3003 = vmatmul.mubr.msk.f32.gmra.mrb[8].mxu1 %vm262_vm3, %v3685_v31 }
  0xf9   : > { %3052 = vmatmul.mubr.msk.f32.gmra.mrb[8].mxu0 %vm262_vm3, %v3685_v31  ;;  %3005 = vmatprep.mubr.msk.f32.mxu1 %vm3534_vm4, %v3535_v16 }
  0xfa   : > { %3054 = vmatprep.mubr.msk.f32.mxu0 %vm3534_vm4, %v3535_v16 }
  0xfc   : > { %3006 = vmatmul.mubr.msk.f32.gmra.mrb[10].mxu1 %vm262_vm3, %v3706_v32 }
  0xfd   : > { %3055 = vmatmul.mubr.msk.f32.gmra.mrb[10].mxu0 %vm262_vm3, %v3706_v32  ;;  %3008 = vmatprep.mubr.msk.f32.mxu1 %vm3534_vm4, %v3535_v16 }
  0xfe   : > { %3057 = vmatprep.mubr.msk.f32.mxu0 %vm3534_vm4, %v3535_v16 }
 0x100   : > { %3009 = vmatmul.mubr.msk.f32.gmra.mrb[12].mxu1 %vm262_vm3, %v3719_v33 }
 0x101   : > { %3058 = vmatmul.mubr.msk.f32.gmra.mrb[12].mxu0 %vm262_vm3, %v3719_v33  ;;  %3011 = vmatprep.mubr.msk.f32.mxu1 %vm3534_vm4, %v3535_v16 }
 0x102   : > { %3060 = vmatprep.mubr.msk.f32.mxu0 %vm3534_vm4, %v3535_v16 }
 0x104   : > { %3012 = vmatmul.mubr.msk.f32.gmra.mrb[14].mxu1 %vm262_vm3, %v3732_v34 }
 0x105   : > { %3061 = vmatmul.mubr.msk.f32.gmra.mrb[14].mxu0 %vm262_vm3, %v3732_v34  ;;  %3014 = vmatprep.mubr.msk.f32.mxu1 %vm3534_vm4, %v3535_v16 }
 0x106   : > { %3063 = vmatprep.mubr.msk.f32.mxu0 %vm3534_vm4, %v3535_v16 }
 0x108   : > { %3015 = vmatmul.mubr.msk.f32.gmra.mrb[16].mxu1 %vm262_vm3, %v3745_v35 }
 0x109   : > { %3064 = vmatmul.mubr.msk.f32.gmra.mrb[16].mxu0 %vm262_vm3, %v3745_v35  ;;  %3017 = vmatprep.mubr.msk.f32.mxu1 %vm3534_vm4, %v3535_v16 }
 0x10a   : > { %3066 = vmatprep.mubr.msk.f32.mxu0 %vm3534_vm4, %v3535_v16 }
 0x10c   : > { %3018 = vmatmul.mubr.msk.f32.gmra.mrb[18].mxu1 %vm262_vm3, %v3758_v36 }
 0x10d   : > { %3067 = vmatmul.mubr.msk.f32.gmra.mrb[18].mxu0 %vm262_vm3, %v3758_v36  ;;  %3020 = vmatprep.mubr.msk.f32.mxu1 %vm3534_vm4, %v3535_v16 }
 0x10e   : > { %3069 = vmatprep.mubr.msk.f32.mxu0 %vm3534_vm4, %v3535_v16 }
 0x110   : > { %3021 = vmatmul.mubr.msk.f32.gmra.mrb[20].mxu1 %vm262_vm3, %v3771_v37 }
 0x111   : > { %3070 = vmatmul.mubr.msk.f32.gmra.mrb[20].mxu0 %vm262_vm3, %v3771_v37  ;;  %3080 = vmatprep.mubr.msk.f32.mxu1 %vm262_vm3, %v2527_v38  ;;  %v367_v38 = vld [vmem:[%s4481_s3 + $0x18] sm:$0xff] }
 0x112   : > { %3129 = vmatprep.mubr.msk.f32.mxu0 %vm262_vm3, %v2573_v39  ;;  %v2493_v39 = vld [vmem:[%s4481_s3 + $0x60] sm:$0xff] }
 0x114   : > { %3081 = vmatmul.mubr.msk.f32.vlgmr.msra.gmra.mrb[22].mxu1 %vm262_vm3, %v2528_v40 }
 0x115   : > { %3130 = vmatmul.mubr.msk.f32.vlgmr.msra.gmra.mrb[22].mxu0 %vm262_vm3, %v2574_v41  ;;  %3083 = vmatprep.mubr.msk.f32.mxu1 %vm262_vm3, %v2529_v42  ;;  %v525_v42 = vmul.f32 0.1, %v516_v23 }
 0x116   : > { %3132 = vmatprep.mubr.msk.f32.mxu0 %vm262_vm3, %v2575_v43  ;;  %v787_v43 = vmul.f32 0.1, %v2512_v24 }
 0x118   : > { %3084 = vmatmul.mubr.msk.f32.gmra.mrb[24].mxu1 %vm262_vm3, %v2530_v44 }
 0x119   : > { %3133 = vmatmul.mubr.msk.f32.gmra.mrb[24].mxu0 %vm262_vm3, %v2576_v45  ;;  %3094 = vmatprep.mubr.msk.f32.mxu1 %vm3534_vm4, %v3535_v16 }
 0x11a   : > { %3143 = vmatprep.mubr.msk.f32.mxu0 %vm3534_vm4, %v3535_v16 }
 0x1c3   : > { %v469_v52 = vpop.f32.mrb[4].mxu1 }
 0x1c4   : > { %v730_v53 = vpop.f32.mrb[4].mxu0  ;;  %v470_v56 = vadd.f32 %v469_v52, %v364_v48  ;;  %v2998_v58 = vpop.f32.mrb[5].mxu1  ;;  %v368_v52 = vld [vmem:[%s4481_s3 + $0x20] sm:$0xff] }
 0x1c5   : > { %v731_v57 = vadd.f32 %v2490_v49, %v730_v53  ;;  %v3047_v59 = vpop.f32.mrb[5].mxu0  ;;  %v2494_v53 = vld [vmem:[%s4481_s3 + $0x68] sm:$0xff] }
 0x1c6   : > { %v531_v62 = vadd.f32 %v522_v50, %v470_v56  ;;  %v526_v56 = vmul.f32 0.1, %v517_v46 }
 0x1c7   : > { %v793_v63 = vadd.f32 %v784_v51, %v731_v57  ;;  %v474_v2 = vpop.f32.mrb[6].mxu1  ;;  %v788_v57 = vmul.f32 0.1, %v2513_v47 }
 0x1c8   : > { %v735_v4 = vpop.f32.mrb[6].mxu0  ;;  %540 = vst [vmem:[%s3816_s12] sm:$0xff] %v531_v62  ;;  %v475_v9 = vadd.f32 %v474_v2, %v365_v60  ;;  %v3001_v11 = vpop.f32.mrb[7].mxu1  ;;  %v518_v60 = vld [vmem:[%s3801_s30 + $0x28] sm:$0xff] }
 0x1c9   : > { %2518 = vst [vmem:[%s3816_s12 + $0x48] sm:$0xff] %v793_v63  ;;  %v736_v10 = vadd.f32 %v2491_v61, %v735_v4  ;;  %v3050_v12 = vpop.f32.mrb[7].mxu0  ;;  %v2514_v61 = vld [vmem:[%s3801_s30 + $0x70] sm:$0xff]  ;;  %v369_v2 = vld [vmem:[%s4481_s3 + $0x28] sm:$0xff] }
 0x1ca   : > { %v532_v17 = vadd.f32 %v523_v0, %v475_v9  ;;  %v2495_v4 = vld [vmem:[%s4481_s3 + $0x70] sm:$0xff]  ;;  %v527_v9 = vmul.f32 0.1, %v518_v60 }
 0x1cb   : > { %v794_v18 = vadd.f32 %v785_v1, %v736_v10  ;;  %v479_v21 = vpop.f32.mrb[8].mxu1  ;;  %v789_v10 = vmul.f32 0.1, %v2514_v61 }
 0x1cc   : > { %v740_v22 = vpop.f32.mrb[8].mxu0  ;;  %541 = vst [vmem:[%s3816_s12 + $0x8] sm:$0xff] %v532_v17  ;;  %v480_v25 = vadd.f32 %v479_v21, %v366_v13  ;;  %v3004_v27 = vpop.f32.mrb[9].mxu1  ;;  %v519_v13 = vld [vmem:[%s3801_s30 + $0x30] sm:$0xff] }
 0x1cd   : > { %2519 = vst [vmem:[%s3816_s12 + $0x50] sm:$0xff] %v794_v18  ;;  %v741_v26 = vadd.f32 %v2492_v14, %v740_v22  ;;  %v3053_v28 = vpop.f32.mrb[9].mxu0  ;;  %v2515_v14 = vld [vmem:[%s3801_s30 + $0x78] sm:$0xff]  ;;  %v370_v21 = vld [vmem:[%s4481_s3 + $0x30] sm:$0xff] }
 0x1ce   : > { %v533_v40 = vadd.f32 %v524_v19, %v480_v25  ;;  %v2496_v22 = vld [vmem:[%s4481_s3 + $0x78] sm:$0xff]  ;;  %v528_v25 = vmul.f32 0.1, %v519_v13 }
 0x1cf   : > { %v795_v41 = vadd.f32 %v786_v20, %v741_v26  ;;  %v484_v44 = vpop.f32.mrb[10].mxu1  ;;  %v790_v26 = vmul.f32 0.1, %v2515_v14 }
 0x1d0   : > { %v745_v45 = vpop.f32.mrb[10].mxu0  ;;  %542 = vst [vmem:[%s3816_s12 + $0x10] sm:$0xff] %v533_v40  ;;  %v485_v48 = vadd.f32 %v484_v44, %v367_v38  ;;  %v3007_v50 = vpop.f32.mrb[11].mxu1  ;;  %v520_v38 = vld [vmem:[%s3801_s30 + $0x38] sm:$0xff] }
 0x1d1   : > { %2520 = vst [vmem:[%s3816_s12 + $0x58] sm:$0xff] %v795_v41  ;;  %v746_v49 = vadd.f32 %v2493_v39, %v745_v45  ;;  %v3056_v51 = vpop.f32.mrb[11].mxu0  ;;  %v2516_v39 = vld [vmem:[%s3801_s30 + $0x80] sm:$0xff]  ;;  %v371_v44 = vld [vmem:[%s4481_s3 + $0x38] sm:$0xff] }
 0x1d2   : > { %v534_v54 = vadd.f32 %v525_v42, %v485_v48  ;;  %v2497_v45 = vld [vmem:[%s4481_s3 + $0x80] sm:$0xff]  ;;  %v529_v48 = vmul.f32 0.1, %v520_v38  ;;  %v2621_v38 = vld [vmem:[%s3610_s6 + $0x90] sm:$0xff] }
 0x1d3   : > { %v796_v55 = vadd.f32 %v787_v43, %v746_v49  ;;  %v489_v58 = vpop.f32.mrb[12].mxu1  ;;  %v791_v49 = vmul.f32 0.1, %v2516_v39  ;;  %v2667_v39 = vld [vmem:[%s3610_s6 + $0xb0] sm:$0xff] }
 0x1d4   : > { %v750_v59 = vpop.f32.mrb[12].mxu0  ;;  %543 = vst [vmem:[%s3816_s12 + $0x18] sm:$0xff] %v534_v54  ;;  %v490_v62 = vadd.f32 %v489_v58, %v368_v52  ;;  %v3010_v0 = vpop.f32.mrb[13].mxu1  ;;  %v521_v52 = vld [vmem:[%s3801_s30 + $0x40] sm:$0x7] }
 0x1d5   : > { %2521 = vst [vmem:[%s3816_s12 + $0x60] sm:$0xff] %v796_v55  ;;  %v751_v63 = vadd.f32 %v2494_v53, %v750_v59  ;;  %v3059_v1 = vpop.f32.mrb[13].mxu0  ;;  %v2517_v53 = vld [vmem:[%s3801_s30 + $0x88] sm:$0x7]  ;;  %v372_v58 = vld [vmem:[%s4481_s3 + $0x40] sm:$0x7] }
 0x1d6   : > { %v535_v7 = vadd.f32 %v526_v56, %v490_v62  ;;  %v2498_v59 = vld [vmem:[%s4481_s3 + $0x88] sm:$0x7]  ;;  %v530_v62 = vmul.f32 0.1, %v521_v52 }
 0x1d7   : > { %v797_v8 = vadd.f32 %v788_v57, %v751_v63  ;;  %v494_v11 = vpop.f32.mrb[14].mxu1  ;;  %v792_v63 = vmul.f32 0.1, %v2517_v53 }
 0x1d8   : > { %v755_v12 = vpop.f32.mrb[14].mxu0  ;;  %544 = vst [vmem:[%s3816_s12 + $0x20] sm:$0xff] %v535_v7  ;;  %v495_v17 = vadd.f32 %v494_v11, %v369_v2  ;;  %v3013_v19 = vpop.f32.mrb[15].mxu1 }
 0x1d9   : > { %2522 = vst [vmem:[%s3816_s12 + $0x68] sm:$0xff] %v797_v8  ;;  %v756_v18 = vadd.f32 %v2495_v4, %v755_v12  ;;  %v3062_v20 = vpop.f32.mrb[15].mxu0 }
 0x1da   : > { %v536_v23 = vadd.f32 %v527_v9, %v495_v17 }
 0x1db   : > { %v798_v24 = vadd.f32 %v789_v10, %v756_v18  ;;  %v499_v27 = vpop.f32.mrb[16].mxu1 }
 0x1dc   : > { %v760_v28 = vpop.f32.mrb[16].mxu0  ;;  %545 = vst [vmem:[%s3816_s12 + $0x28] sm:$0xff] %v536_v23  ;;  %v500_v40 = vadd.f32 %v499_v27, %v370_v21  ;;  %v3016_v42 = vpop.f32.mrb[17].mxu1  ;;  %v2620_v27 = vld [vmem:[%s3610_s6 + $0x88] sm:$0xff] }
 0x1dd   : > { %2523 = vst [vmem:[%s3816_s12 + $0x70] sm:$0xff] %v798_v24  ;;  %v761_v41 = vadd.f32 %v2496_v22, %v760_v28  ;;  %v3065_v43 = vpop.f32.mrb[17].mxu0  ;;  %v2666_v28 = vld [vmem:[%s3610_s6 + $0xa8] sm:$0xff]  ;;  %v2555_v42 = vld [vmem:[%s3801_s30 + $0x90] sm:$0xff] }
 0x1de   : > { %v537_v46 = vadd.f32 %v528_v25, %v500_v40  ;;  %v2619_v25 = vld [vmem:[%s3610_s6 + $0x80] sm:$0xff]  ;;  %v2622_v40 = vld [vmem:[%s3610_s6 + $0x98] sm:$0x7f] }
 0x1df   : > { %v799_v47 = vadd.f32 %v790_v26, %v761_v41  ;;  %v504_v50 = vpop.f32.mrb[18].mxu1  ;;  %v2665_v26 = vld [vmem:[%s3610_s6 + $0xa0] sm:$0xff]  ;;  %v2668_v41 = vld [vmem:[%s3610_s6 + $0xb8] sm:$0x7f] }
 0x1e0   : > { %v765_v51 = vpop.f32.mrb[18].mxu0  ;;  %546 = vst [vmem:[%s3816_s12 + $0x30] sm:$0xff] %v537_v46  ;;  %v505_v54 = vadd.f32 %v504_v50, %v371_v44  ;;  %v3019_v56 = vpop.f32.mrb[19].mxu1  ;;  %v2601_v43 = vld [vmem:[%s3801_s30 + $0xd8] sm:$0xff]  ;;  %v2536_v44 = vld [vmem:[%s4481_s3 + $0x90] sm:$0xff] }
 0x1e1   : > { %2524 = vst [vmem:[%s3816_s12 + $0x78] sm:$0xff] %v799_v47  ;;  %v766_v55 = vadd.f32 %v2497_v45, %v765_v51  ;;  %v3068_v57 = vpop.f32.mrb[19].mxu0  ;;  %v2582_v45 = vld [vmem:[%s4481_s3 + $0xd8] sm:$0xff]  ;;  %v1047_v46 = vmul.f32 0.1, %v2555_v42  ;;  %v2602_v51 = vld [vmem:[%s3801_s30 + $0xe0] sm:$0xff] }
 0x1e2   : > { %v538_v60 = vadd.f32 %v529_v48, %v505_v54  ;;  %v1310_v47 = vmul.f32 0.1, %v2601_v43  ;;  %v2556_v50 = vld [vmem:[%s3801_s30 + $0x98] sm:$0xff]  ;;  %v2583_v57 = vld [vmem:[%s4481_s3 + $0xe0] sm:$0xff]  ;;  %v2559_v42 = vld [vmem:[%s3801_s30 + $0xb0] sm:$0xff] }
 0x1e3   : > { %v800_v61 = vadd.f32 %v791_v49, %v766_v55  ;;  %v509_v0 = vpop.f32.mrb[20].mxu1  ;;  %v2537_v56 = vld [vmem:[%s4481_s3 + $0x98] sm:$0xff] }
 0x1e4   : > { %v770_v1 = vpop.f32.mrb[20].mxu0  ;;  %547 = vst [vmem:[%s3816_s12 + $0x38] sm:$0xff] %v538_v60  ;;  %v510_v2 = vadd.f32 %v509_v0, %v372_v58  ;;  %v3022_v7 = vpop.f32.mrb[21].mxu1  ;;  %v1048_v60 = vmul.f32 0.1, %v2556_v50  ;;  %v2557_v0 = vld [vmem:[%s3801_s30 + $0xa0] sm:$0xff] }
 0x1e5   : > { %2525 = vst [vmem:[%s3816_s12 + $0x80] sm:$0xff] %v800_v61  ;;  %v771_v4 = vadd.f32 %v2498_v59, %v770_v1  ;;  %v3071_v8 = vpop.f32.mrb[21].mxu0  ;;  %v1311_v61 = vmul.f32 0.1, %v2602_v51  ;;  %v2603_v1 = vld [vmem:[%s3801_s30 + $0xe8] sm:$0xff]  ;;  %v2605_v43 = vld [vmem:[%s3801_s30 + $0xf8] sm:$0xff] }
 0x1e6   : > { %v539_v9 = vadd.f32 %v530_v62, %v510_v2 }
 0x1e7   : > { %v801_v10 = vadd.f32 %v792_v63, %v771_v4  ;;  %v3082_v11 = vpop.f32.mrb[22].mxu1 }
 0x1e8   : > { %v3131_v12 = vpop.f32.mrb[22].mxu0  ;;  %548 = vst [vmem:[%s3816_s12 + $0x40] sm:$0x7] %v539_v9  ;;  %v895_v13 = vpop.f32.mrb[23].mxu1  ;;  %v2538_v9 = vld [vmem:[%s4481_s3 + $0xa0] sm:$0xff] }
 0x1e9   : > { %2526 = vst [vmem:[%s3816_s12 + $0x88] sm:$0x7] %v801_v10  ;;  %v1158_v14 = vpop.f32.mrb[23].mxu0  ;;  %v3411_v17 = vpack.c.bf16 %v3082_v11, %v895_v13  ;;  %v2584_v10 = vld [vmem:[%s4481_s3 + $0xe8] sm:$0xff]  ;;  %v1049_v13 = vmul.f32 0.1, %v2557_v0 }
 0x1ea   : > { %v3428_v18 = vpack.c.bf16 %v3131_v12, %v1158_v14  ;;  %v1312_v14 = vmul.f32 0.1, %v2603_v1 }
 0x1eb   : > { %v3085_v19 = vpop.f32.mrb[24].mxu1  ;;  %3412 = vmatpush3.bf16.msra.mxu1 %v3411_v17 }
 0x1ec   : > { %v3134_v20 = vpop.f32.mrb[24].mxu0  ;;  %3429 = vmatpush3.bf16.msra.mxu0 %v3428_v18  ;;  %v905_v21 = vpop.f32.mrb[25].mxu1  ;;  %3413 = vmatprep.subr.bf16.mxu1 %v3533_v15 }
 0x1ed   : > { %v1168_v22 = vpop.f32.mrb[25].mxu0  ;;  %3430 = vmatprep.subr.bf16.mxu0 %v3533_v15  ;;  %v3414_v23 = vpack.c.bf16 %v3085_v19, %v905_v21  ;;  %v2558_v19 = vld [vmem:[%s3801_s30 + $0xa8] sm:$0xff] }
 0x1ee   : > { %v3431_v24 = vpack.c.bf16 %v3134_v20, %v1168_v22  ;;  %v2604_v20 = vld [vmem:[%s3801_s30 + $0xf0] sm:$0xff] }
 0x1ef   : > { %3416 = vmatpush3.bf16.msk.msra.mxu1 %vm3590_vm2, %v3414_v23 }
 0x1f0   : > { %3433 = vmatpush3.bf16.msk.msra.mxu0 %vm3590_vm2, %v3431_v24  ;;  %3435 = vmatprep.subr.bf16.mxu1 %v3583_v3 }
 0x1f1   : > { %3452 = vmatprep.subr.bf16.mxu0 %v3583_v3 }
 0x1f2   : > { %3095 = vmatmul.mubr.msk.f32.vlgmr.msra.gmra.mrb[26].mxu1 %vm262_vm3, %v3649_v29 }
 0x1f3   : > { %3144 = vmatmul.mubr.msk.f32.vlgmr.msra.gmra.mrb[26].mxu0 %vm262_vm3, %v3649_v29  ;;  %3437 = vmatpush3.bf16.msra.mxu1 %v3583_v3 }
 0x1f4   : > { %3454 = vmatpush3.bf16.msra.mxu0 %v3583_v3  ;;  %3097 = vmatprep.mubr.msk.f32.mxu1 %vm3534_vm4, %v3535_v16 }
 0x1f5   : > { %3146 = vmatprep.mubr.msk.f32.mxu0 %vm3534_vm4, %v3535_v16  ;;  %3440 = vmatprep.subr.msk.bf16.mxu1 %vm3590_vm2, %v3588_v5 }
 0x1f6   : > { %3457 = vmatprep.subr.msk.bf16.mxu0 %vm3590_vm2, %v3588_v5  ;;  %3098 = vmatmul.mubr.msk.f32.gmra.mrb[28].mxu1 %vm262_vm3, %v3662_v30 }
 0x1f7   : > { %3147 = vmatmul.mubr.msk.f32.gmra.mrb[28].mxu0 %vm262_vm3, %v3662_v30  ;;  %3100 = vmatprep.mubr.msk.f32.mxu1 %vm3534_vm4, %v3535_v16 }
 0x1f8   : > { %3149 = vmatprep.mubr.msk.f32.mxu0 %vm3534_vm4, %v3535_v16  ;;  %3443 = vmatpush3.bf16.msk.msra.mxu1 %vm3590_vm2, %v3588_v5 }
 0x1f9   : > { %3460 = vmatpush3.bf16.msk.msra.mxu0 %vm3590_vm2, %v3588_v5  ;;  %3444 = vmatprep.subr.bf16.mxu1 %v3533_v15 }
 0x1fa   : > { %3461 = vmatprep.subr.bf16.mxu0 %v3533_v15  ;;  %3101 = vmatmul.mubr.msk.f32.gmra.mrb[30].mxu1 %vm262_vm3, %v3685_v31 }
 0x1fb   : > { %3150 = vmatmul.mubr.msk.f32.gmra.mrb[30].mxu0 %vm262_vm3, %v3685_v31  ;;  %3103 = vmatprep.mubr.msk.f32.mxu1 %vm3534_vm4, %v3535_v16 }
 0x1fc   : > { %3152 = vmatprep.mubr.msk.f32.mxu0 %vm3534_vm4, %v3535_v16 }
 0x1fe   : > { %3104 = vmatmul.mubr.msk.f32.gmra.mrb[32].mxu1 %vm262_vm3, %v3706_v32 }
 0x1ff   : > { %3153 = vmatmul.mubr.msk.f32.gmra.mrb[32].mxu0 %vm262_vm3, %v3706_v32  ;;  %3106 = vmatprep.mubr.msk.f32.mxu1 %vm3534_vm4, %v3535_v16 }
 0x200   : > { %3155 = vmatprep.mubr.msk.f32.mxu0 %vm3534_vm4, %v3535_v16 }
 0x202   : > { %3107 = vmatmul.mubr.msk.f32.gmra.mrb[34].mxu1 %vm262_vm3, %v3719_v33 }
 0x203   : > { %3156 = vmatmul.mubr.msk.f32.gmra.mrb[34].mxu0 %vm262_vm3, %v3719_v33  ;;  %3109 = vmatprep.mubr.msk.f32.mxu1 %vm3534_vm4, %v3535_v16 }
 0x204   : > { %3158 = vmatprep.mubr.msk.f32.mxu0 %vm3534_vm4, %v3535_v16 }
 0x206   : > { %3110 = vmatmul.mubr.msk.f32.gmra.mrb[36].mxu1 %vm262_vm3, %v3732_v34 }
 0x207   : > { %3159 = vmatmul.mubr.msk.f32.gmra.mrb[36].mxu0 %vm262_vm3, %v3732_v34  ;;  %3112 = vmatprep.mubr.msk.f32.mxu1 %vm3534_vm4, %v3535_v16 }
 0x208   : > { %3161 = vmatprep.mubr.msk.f32.mxu0 %vm3534_vm4, %v3535_v16 }
 0x20a   : > { %3113 = vmatmul.mubr.msk.f32.gmra.mrb[38].mxu1 %vm262_vm3, %v3745_v35 }
 0x20b   : > { %3162 = vmatmul.mubr.msk.f32.gmra.mrb[38].mxu0 %vm262_vm3, %v3745_v35  ;;  %3115 = vmatprep.mubr.msk.f32.mxu1 %vm3534_vm4, %v3535_v16 }
 0x20c   : > { %3164 = vmatprep.mubr.msk.f32.mxu0 %vm3534_vm4, %v3535_v16 }
 0x20e   : > { %3116 = vmatmul.mubr.msk.f32.gmra.mrb[40].mxu1 %vm262_vm3, %v3758_v36 }
 0x20f   : > { %3165 = vmatmul.mubr.msk.f32.gmra.mrb[40].mxu0 %vm262_vm3, %v3758_v36  ;;  %3118 = vmatprep.mubr.msk.f32.mxu1 %vm3534_vm4, %v3535_v16 }
 0x210   : > { %3167 = vmatprep.mubr.msk.f32.mxu0 %vm3534_vm4, %v3535_v16 }
 0x212   : > { %3119 = vmatmul.mubr.msk.f32.gmra.mrb[42].mxu1 %vm262_vm3, %v3771_v37 }
 0x213   : > { %3168 = vmatmul.mubr.msk.f32.gmra.mrb[42].mxu0 %vm262_vm3, %v3771_v37  ;;  %3178 = vmatprep.mubr.msk.f32.mxu1 %vm262_vm3, %v2619_v25  ;;  %v2539_v25 = vld [vmem:[%s4481_s3 + $0xa8] sm:$0xff] }
 0x214   : > { %3227 = vmatprep.mubr.msk.f32.mxu0 %vm262_vm3, %v2665_v26  ;;  %v2585_v26 = vld [vmem:[%s4481_s3 + $0xf0] sm:$0xff] }
 0x216   : > { %3179 = vmatmul.mubr.msk.f32.vlgmr.msra.gmra.mrb[44].mxu1 %vm262_vm3, %v2620_v27 }
 0x217   : > { %3228 = vmatmul.mubr.msk.f32.vlgmr.msra.gmra.mrb[44].mxu0 %vm262_vm3, %v2666_v28  ;;  %3181 = vmatprep.mubr.msk.f32.mxu1 %vm262_vm3, %v2621_v38  ;;  %v1050_v38 = vmul.f32 0.1, %v2558_v19 }
 0x218   : > { %3230 = vmatprep.mubr.msk.f32.mxu0 %vm262_vm3, %v2667_v39  ;;  %v1313_v39 = vmul.f32 0.1, %v2604_v20 }
 0x21a   : > { %3182 = vmatmul.mubr.msk.f32.gmra.mrb[46].mxu1 %vm262_vm3, %v2622_v40 }
 0x21b   : > { %3231 = vmatmul.mubr.msk.f32.gmra.mrb[46].mxu0 %vm262_vm3, %v2668_v41  ;;  %3192 = vmatprep.mubr.msk.f32.mxu1 %vm3534_vm4, %v3535_v16 }
 0x21c   : > { %3241 = vmatprep.mubr.msk.f32.mxu0 %vm3534_vm4, %v3535_v16 }
 0x2c5   : > { %v993_v48 = vpop.f32.mrb[26].mxu1 }
 0x2c6   : > { %v1256_v49 = vpop.f32.mrb[26].mxu0  ;;  %v994_v52 = vadd.f32 %v2536_v44, %v993_v48  ;;  %v3096_v54 = vpop.f32.mrb[27].mxu1  ;;  %v2540_v48 = vld [vmem:[%s4481_s3 + $0xb0] sm:$0xff] }
 0x2c7   : > { %v1257_v53 = vadd.f32 %v2582_v45, %v1256_v49  ;;  %v3145_v55 = vpop.f32.mrb[27].mxu0  ;;  %v2586_v49 = vld [vmem:[%s4481_s3 + $0xf8] sm:$0xff] }
 0x2c8   : > { %v1056_v58 = vadd.f32 %v1047_v46, %v994_v52  ;;  %v1051_v52 = vmul.f32 0.1, %v2559_v42 }
 0x2c9   : > { %v1319_v59 = vadd.f32 %v1310_v47, %v1257_v53  ;;  %v998_v62 = vpop.f32.mrb[28].mxu1  ;;  %v1314_v53 = vmul.f32 0.1, %v2605_v43 }
 0x2ca   : > { %v1261_v63 = vpop.f32.mrb[28].mxu0  ;;  %2564 = vst [vmem:[%s3816_s12 + $0x90] sm:$0xff] %v1056_v58  ;;  %v999_v2 = vadd.f32 %v2537_v56, %v998_v62  ;;  %v3099_v7 = vpop.f32.mrb[29].mxu1  ;;  %v2560_v56 = vld [vmem:[%s3801_s30 + $0xb8] sm:$0xff] }
 0x2cb   : > { %2610 = vst [vmem:[%s3816_s12 + $0xd8] sm:$0xff] %v1319_v59  ;;  %v1262_v4 = vadd.f32 %v2583_v57, %v1261_v63  ;;  %v3148_v8 = vpop.f32.mrb[29].mxu0  ;;  %v2606_v57 = vld [vmem:[%s3801_s30 + $0x100] sm:$0xff]  ;;  %v2541_v62 = vld [vmem:[%s4481_s3 + $0xb8] sm:$0xff] }
 0x2cc   : > { %v1057_v11 = vadd.f32 %v1048_v60, %v999_v2  ;;  %v2587_v63 = vld [vmem:[%s4481_s3 + $0x100] sm:$0xff]  ;;  %v1052_v2 = vmul.f32 0.1, %v2560_v56 }
 0x2cd   : > { %v1320_v12 = vadd.f32 %v1311_v61, %v1262_v4  ;;  %v1003_v17 = vpop.f32.mrb[30].mxu1  ;;  %v1315_v4 = vmul.f32 0.1, %v2606_v57 }
 0x2ce   : > { %v1266_v18 = vpop.f32.mrb[30].mxu0  ;;  %2565 = vst [vmem:[%s3816_s12 + $0x98] sm:$0xff] %v1057_v11  ;;  %v1004_v21 = vadd.f32 %v2538_v9, %v1003_v17  ;;  %v3102_v23 = vpop.f32.mrb[31].mxu1  ;;  %v2561_v9 = vld [vmem:[%s3801_s30 + $0xc0] sm:$0xff] }
 0x2cf   : > { %2611 = vst [vmem:[%s3816_s12 + $0xe0] sm:$0xff] %v1320_v12  ;;  %v1267_v22 = vadd.f32 %v2584_v10, %v1266_v18  ;;  %v3151_v24 = vpop.f32.mrb[31].mxu0  ;;  %v2607_v10 = vld [vmem:[%s3801_s30 + $0x108] sm:$0xff]  ;;  %v2542_v17 = vld [vmem:[%s4481_s3 + $0xc0] sm:$0xff] }
 0x2d0   : > { %v1058_v27 = vadd.f32 %v1049_v13, %v1004_v21  ;;  %v2588_v18 = vld [vmem:[%s4481_s3 + $0x108] sm:$0xff]  ;;  %v1053_v21 = vmul.f32 0.1, %v2561_v9 }
 0x2d1   : > { %v1321_v28 = vadd.f32 %v1312_v14, %v1267_v22  ;;  %v1008_v40 = vpop.f32.mrb[32].mxu1  ;;  %v1316_v22 = vmul.f32 0.1, %v2607_v10 }
 0x2d2   : > { %v1271_v41 = vpop.f32.mrb[32].mxu0  ;;  %2566 = vst [vmem:[%s3816_s12 + $0xa0] sm:$0xff] %v1058_v27  ;;  %v1009_v44 = vadd.f32 %v2539_v25, %v1008_v40  ;;  %v3105_v46 = vpop.f32.mrb[33].mxu1  ;;  %v2562_v25 = vld [vmem:[%s3801_s30 + $0xc8] sm:$0xff] }
 0x2d3   : > { %2612 = vst [vmem:[%s3816_s12 + $0xe8] sm:$0xff] %v1321_v28  ;;  %v1272_v45 = vadd.f32 %v2585_v26, %v1271_v41  ;;  %v3154_v47 = vpop.f32.mrb[33].mxu0  ;;  %v2608_v26 = vld [vmem:[%s3801_s30 + $0x110] sm:$0xff]  ;;  %v2543_v40 = vld [vmem:[%s4481_s3 + $0xc8] sm:$0xff] }
 0x2d4   : > { %v1059_v50 = vadd.f32 %v1050_v38, %v1009_v44  ;;  %v2589_v41 = vld [vmem:[%s4481_s3 + $0x110] sm:$0xff]  ;;  %v1054_v44 = vmul.f32 0.1, %v2562_v25 }
 0x2d5   : > { %v1322_v51 = vadd.f32 %v1313_v39, %v1272_v45  ;;  %v1013_v54 = vpop.f32.mrb[34].mxu1  ;;  %v1317_v45 = vmul.f32 0.1, %v2608_v26  ;;  %v2648_v26 = vld [vmem:[%s3801_s30 + $0x128] sm:$0xff] }
 0x2d6   : > { %v1276_v55 = vpop.f32.mrb[34].mxu0  ;;  %2567 = vst [vmem:[%s3816_s12 + $0xa8] sm:$0xff] %v1059_v50  ;;  %v1014_v58 = vadd.f32 %v2540_v48, %v1013_v54  ;;  %v3108_v60 = vpop.f32.mrb[35].mxu1  ;;  %v2563_v48 = vld [vmem:[%s3801_s30 + $0xd0] sm:$0x7] }
 0x2d7   : > { %2613 = vst [vmem:[%s3816_s12 + $0xf0] sm:$0xff] %v1322_v51  ;;  %v1277_v59 = vadd.f32 %v2586_v49, %v1276_v55  ;;  %v3157_v61 = vpop.f32.mrb[35].mxu0  ;;  %v2609_v49 = vld [vmem:[%s3801_s30 + $0x118] sm:$0x7]  ;;  %v2544_v54 = vld [vmem:[%s4481_s3 + $0xd0] sm:$0x7] }
 0x2d8   : > { %v1060_v0 = vadd.f32 %v1051_v52, %v1014_v58  ;;  %v2590_v55 = vld [vmem:[%s4481_s3 + $0x118] sm:$0x7]  ;;  %v1055_v58 = vmul.f32 0.1, %v2563_v48 }
 0x2d9   : > { %v1323_v1 = vadd.f32 %v1314_v53, %v1277_v59  ;;  %v1018_v7 = vpop.f32.mrb[36].mxu1  ;;  %v1318_v59 = vmul.f32 0.1, %v2609_v49  ;;  %v2649_v49 = vld [vmem:[%s3801_s30 + $0x130] sm:$0xff] }
 0x2da   : > { %v1281_v8 = vpop.f32.mrb[36].mxu0  ;;  %2568 = vst [vmem:[%s3816_s12 + $0xb0] sm:$0xff] %v1060_v0  ;;  %v1019_v11 = vadd.f32 %v2541_v62, %v1018_v7  ;;  %v3111_v13 = vpop.f32.mrb[37].mxu1 }
 0x2db   : > { %2614 = vst [vmem:[%s3816_s12 + $0xf8] sm:$0xff] %v1323_v1  ;;  %v1282_v12 = vadd.f32 %v2587_v63, %v1281_v8  ;;  %v3160_v14 = vpop.f32.mrb[37].mxu0 }
 0x2dc   : > { %v1061_v19 = vadd.f32 %v1052_v2, %v1019_v11 }
 0x2dd   : > { %v1324_v20 = vadd.f32 %v1315_v4, %v1282_v12  ;;  %v1023_v23 = vpop.f32.mrb[38].mxu1 }
 0x2de   : > { %v1286_v24 = vpop.f32.mrb[38].mxu0  ;;  %2569 = vst [vmem:[%s3816_s12 + $0xb8] sm:$0xff] %v1061_v19  ;;  %v1024_v27 = vadd.f32 %v2542_v17, %v1023_v23  ;;  %v3114_v38 = vpop.f32.mrb[39].mxu1 }
 0x2df   : > { %2615 = vst [vmem:[%s3816_s12 + $0x100] sm:$0xff] %v1324_v20  ;;  %v1287_v28 = vadd.f32 %v2588_v18, %v1286_v24  ;;  %v3163_v39 = vpop.f32.mrb[39].mxu0 }
 0x2e0   : > { %v1062_v42 = vadd.f32 %v1053_v21, %v1024_v27  ;;  %v2674_v21 = vld [vmem:[%s4481_s3 + $0x168] sm:$0xff]  ;;  %v2694_v27 = vld [vmem:[%s3801_s30 + $0x170] sm:$0xff] }
 0x2e1   : > { %v1325_v43 = vadd.f32 %v1316_v22, %v1287_v28  ;;  %v1028_v46 = vpop.f32.mrb[40].mxu1 }
 0x2e2   : > { %v1291_v47 = vpop.f32.mrb[40].mxu0  ;;  %2570 = vst [vmem:[%s3816_s12 + $0xc0] sm:$0xff] %v1062_v42  ;;  %v1029_v50 = vadd.f32 %v2543_v40, %v1028_v46  ;;  %v3117_v52 = vpop.f32.mrb[41].mxu1  ;;  %v2675_v42 = vld [vmem:[%s4481_s3 + $0x170] sm:$0xff]  ;;  %v1837_v46 = vmul.f32 0.1, %v2694_v27 }
 0x2e3   : > { %2616 = vst [vmem:[%s3816_s12 + $0x108] sm:$0xff] %v1325_v43  ;;  %v1292_v51 = vadd.f32 %v2589_v41, %v1291_v47  ;;  %v3166_v53 = vpop.f32.mrb[41].mxu0  ;;  %v2629_v41 = vld [vmem:[%s4481_s3 + $0x128] sm:$0xff] }
 0x2e4   : > { %v1063_v56 = vadd.f32 %v1054_v44, %v1029_v50  ;;  %v2695_v50 = vld [vmem:[%s3801_s30 + $0x178] sm:$0xff]  ;;  %v2633_v27 = vld [vmem:[%s4481_s3 + $0x148] sm:$0xff] }
 0x2e5   : > { %v1326_v57 = vadd.f32 %v1317_v45, %v1292_v51  ;;  %v1033_v60 = vpop.f32.mrb[42].mxu1  ;;  %v1574_v45 = vmul.f32 0.1, %v2648_v26 }
 0x2e6   : > { %v1296_v61 = vpop.f32.mrb[42].mxu0  ;;  %2571 = vst [vmem:[%s3816_s12 + $0xc8] sm:$0xff] %v1063_v56  ;;  %v1034_v62 = vadd.f32 %v2544_v54, %v1033_v60  ;;  %v3120_v0 = vpop.f32.mrb[43].mxu1  ;;  %v2676_v56 = vld [vmem:[%s4481_s3 + $0x178] sm:$0xff]  ;;  %v1838_v60 = vmul.f32 0.1, %v2695_v50 }
 0x2e7   : > { %2617 = vst [vmem:[%s3816_s12 + $0x110] sm:$0xff] %v1326_v57  ;;  %v1297_v63 = vadd.f32 %v2590_v55, %v1296_v61  ;;  %v3169_v1 = vpop.f32.mrb[43].mxu0  ;;  %v2630_v55 = vld [vmem:[%s4481_s3 + $0x130] sm:$0xff]  ;;  %v2696_v0 = vld [vmem:[%s3801_s30 + $0x180] sm:$0xff] }
 0x2e8   : > { %v1064_v2 = vadd.f32 %v1055_v58, %v1034_v62  ;;  %v2634_v50 = vld [vmem:[%s4481_s3 + $0x150] sm:$0xff] }
 0x2e9   : > { %v1327_v4 = vadd.f32 %v1318_v59, %v1297_v63  ;;  %v3180_v7 = vpop.f32.mrb[44].mxu1  ;;  %v1575_v59 = vmul.f32 0.1, %v2649_v49  ;;  %v2650_v63 = vld [vmem:[%s3801_s30 + $0x138] sm:$0xff] }
 0x2ea   : > { %v3229_v8 = vpop.f32.mrb[44].mxu0  ;;  %2572 = vst [vmem:[%s3816_s12 + $0xd0] sm:$0x7] %v1064_v2  ;;  %v1421_v9 = vpop.f32.mrb[45].mxu1 }
 0x2eb   : > { %2618 = vst [vmem:[%s3816_s12 + $0x118] sm:$0x7] %v1327_v4  ;;  %v1684_v10 = vpop.f32.mrb[45].mxu0  ;;  %v3445_v11 = vpack.c.bf16 %v3180_v7, %v1421_v9  ;;  %v2677_v9 = vld [vmem:[%s4481_s3 + $0x180] sm:$0xff] }
 0x2ec   : > { %v3462_v12 = vpack.c.bf16 %v3229_v8, %v1684_v10  ;;  %v2631_v8 = vld [vmem:[%s4481_s3 + $0x138] sm:$0xff] }
 0x2ed   : > { %v3183_v13 = vpop.f32.mrb[46].mxu1  ;;  %3446 = vmatpush3.bf16.msra.mxu1 %v3445_v11 }
 0x2ee   : > { %v3232_v14 = vpop.f32.mrb[46].mxu0  ;;  %3463 = vmatpush3.bf16.msra.mxu0 %v3462_v12  ;;  %v1431_v17 = vpop.f32.mrb[47].mxu1  ;;  %3447 = vmatprep.subr.bf16.mxu1 %v3533_v15  ;;  %v1576_v12 = vmul.f32 0.1, %v2650_v63 }
 0x2ef   : > { %v1694_v18 = vpop.f32.mrb[47].mxu0  ;;  %3464 = vmatprep.subr.bf16.mxu0 %v3533_v15  ;;  %v3448_v19 = vpack.c.bf16 %v3183_v13, %v1431_v17  ;;  %v1839_v13 = vmul.f32 0.1, %v2696_v0  ;;  %v2635_v0 = vld [vmem:[%s4481_s3 + $0x158] sm:$0xff] }
 0x2f0   : > { %v3465_v20 = vpack.c.bf16 %v3232_v14, %v1694_v18  ;;  %v2651_v18 = vld [vmem:[%s3801_s30 + $0x140] sm:$0xff] }
 0x2f1   : > { %3450 = vmatpush3.bf16.msk.msra.mxu1 %vm3590_vm2, %v3448_v19  ;;  %v2697_v19 = vld [vmem:[%s3801_s30 + $0x188] sm:$0xff] }
 0x2f2   : > { %3467 = vmatpush3.bf16.msk.msra.mxu0 %vm3590_vm2, %v3465_v20  ;;  %3469 = vmatprep.subr.bf16.mxu1 %v3583_v3 }
 0x2f3   : > { %3486 = vmatprep.subr.bf16.mxu0 %v3583_v3 }
 0x2f4   : > { %3193 = vmatmul.mubr.msk.f32.vlgmr.msra.gmra.mrb[48].mxu1 %vm262_vm3, %v3649_v29 }
 0x2f5   : > { %3242 = vmatmul.mubr.msk.f32.vlgmr.msra.gmra.mrb[48].mxu0 %vm262_vm3, %v3649_v29  ;;  %3471 = vmatpush3.bf16.msra.mxu1 %v3583_v3  ;;  %v2712_v29 = vld [vmem:[%s3610_s6 + $0xc8] sm:$0xff] }
 0x2f6   : > { %3488 = vmatpush3.bf16.msra.mxu0 %v3583_v3  ;;  %3195 = vmatprep.mubr.msk.f32.mxu1 %vm3534_vm4, %v3535_v16  ;;  %v2711_v3 = vld [vmem:[%s3610_s6 + $0xc0] sm:$0xff] }
 0x2f7   : > { %3244 = vmatprep.mubr.msk.f32.mxu0 %vm3534_vm4, %v3535_v16  ;;  %3474 = vmatprep.subr.msk.bf16.mxu1 %vm3590_vm2, %v3588_v5 }
 0x2f8   : > { %3491 = vmatprep.subr.msk.bf16.mxu0 %vm3590_vm2, %v3588_v5  ;;  %3196 = vmatmul.mubr.msk.f32.gmra.mrb[50].mxu1 %vm262_vm3, %v3662_v30 }
 0x2f9   : > { %3245 = vmatmul.mubr.msk.f32.gmra.mrb[50].mxu0 %vm262_vm3, %v3662_v30  ;;  %3198 = vmatprep.mubr.msk.f32.mxu1 %vm3534_vm4, %v3535_v16  ;;  %v2758_v30 = vld [vmem:[%s3610_s6 + $0xe8] sm:$0xff] }
 0x2fa   : > { %3247 = vmatprep.mubr.msk.f32.mxu0 %vm3534_vm4, %v3535_v16  ;;  %3477 = vmatpush3.bf16.msk.msra.mxu1 %vm3590_vm2, %v3588_v5 }
 0x2fb   : > { %3494 = vmatpush3.bf16.msk.msra.mxu0 %vm3590_vm2, %v3588_v5  ;;  %3478 = vmatprep.subr.bf16.mxu1 %v3533_v15  ;;  %v2757_v5 = vld [vmem:[%s3610_s6 + $0xe0] sm:$0xff] }
 0x2fc   : > { %3495 = vmatprep.subr.bf16.mxu0 %v3533_v15  ;;  %3199 = vmatmul.mubr.msk.f32.gmra.mrb[52].mxu1 %vm262_vm3, %v3685_v31 }
 0x2fd   : > { %3248 = vmatmul.mubr.msk.f32.gmra.mrb[52].mxu0 %vm262_vm3, %v3685_v31  ;;  %3201 = vmatprep.mubr.msk.f32.mxu1 %vm3534_vm4, %v3535_v16  ;;  %v2713_v31 = vld [vmem:[%s3610_s6 + $0xd0] sm:$0xff] }
 0x2fe   : > { %3250 = vmatprep.mubr.msk.f32.mxu0 %vm3534_vm4, %v3535_v16 }
 0x300   : > { %3202 = vmatmul.mubr.msk.f32.gmra.mrb[54].mxu1 %vm262_vm3, %v3706_v32 }
 0x301   : > { %3251 = vmatmul.mubr.msk.f32.gmra.mrb[54].mxu0 %vm262_vm3, %v3706_v32  ;;  %3204 = vmatprep.mubr.msk.f32.mxu1 %vm3534_vm4, %v3535_v16  ;;  %v2759_v32 = vld [vmem:[%s3610_s6 + $0xf0] sm:$0xff] }
 0x302   : > { %3253 = vmatprep.mubr.msk.f32.mxu0 %vm3534_vm4, %v3535_v16 }
 0x304   : > { %3205 = vmatmul.mubr.msk.f32.gmra.mrb[56].mxu1 %vm262_vm3, %v3719_v33 }
 0x305   : > { %3254 = vmatmul.mubr.msk.f32.gmra.mrb[56].mxu0 %vm262_vm3, %v3719_v33  ;;  %3207 = vmatprep.mubr.msk.f32.mxu1 %vm3534_vm4, %v3535_v16  ;;  %v2714_v33 = vld [vmem:[%s3610_s6 + $0xd8] sm:$0x7f] }
 0x306   : > { %3256 = vmatprep.mubr.msk.f32.mxu0 %vm3534_vm4, %v3535_v16 }
 0x308   : > { %3208 = vmatmul.mubr.msk.f32.gmra.mrb[58].mxu1 %vm262_vm3, %v3732_v34 }
 0x309   : > { %3257 = vmatmul.mubr.msk.f32.gmra.mrb[58].mxu0 %vm262_vm3, %v3732_v34  ;;  %3210 = vmatprep.mubr.msk.f32.mxu1 %vm3534_vm4, %v3535_v16  ;;  %v2760_v34 = vld [vmem:[%s3610_s6 + $0xf8] sm:$0x7f] }
 0x30a   : > { %3259 = vmatprep.mubr.msk.f32.mxu0 %vm3534_vm4, %v3535_v16 }
 0x30c   : > { %3211 = vmatmul.mubr.msk.f32.gmra.mrb[60].mxu1 %vm262_vm3, %v3745_v35 }
 0x30d   : > { %3260 = vmatmul.mubr.msk.f32.gmra.mrb[60].mxu0 %vm262_vm3, %v3745_v35  ;;  %3213 = vmatprep.mubr.msk.f32.mxu1 %vm3534_vm4, %v3535_v16  ;;  %v2647_v35 = vld [vmem:[%s3801_s30 + $0x120] sm:$0xff] }
 0x30e   : > { %3262 = vmatprep.mubr.msk.f32.mxu0 %vm3534_vm4, %v3535_v16  ;;  %v1573_v22 = vmul.f32 0.1, %v2647_v35  ;;  %v1840_v35 = vmul.f32 0.1, %v2697_v19  ;;  %v2636_v19 = vld [vmem:[%s4481_s3 + $0x160] sm:$0x7] }
 0x310   : > { %3214 = vmatmul.mubr.msk.f32.gmra.mrb[62].mxu1 %vm262_vm3, %v3758_v36 }
 0x311   : > { %3263 = vmatmul.mubr.msk.f32.gmra.mrb[62].mxu0 %vm262_vm3, %v3758_v36  ;;  %3216 = vmatprep.mubr.msk.f32.mxu1 %vm3534_vm4, %v3535_v16  ;;  %v2693_v36 = vld [vmem:[%s3801_s30 + $0x168] sm:$0xff] }
 0x312   : > { %3265 = vmatprep.mubr.msk.f32.mxu0 %vm3534_vm4, %v3535_v16  ;;  %v1836_v23 = vmul.f32 0.1, %v2693_v36 }
 0x314   : > { %3217 = vmatmul.mubr.msk.f32.gmra.mrb[64].mxu1 %vm262_vm3, %v3771_v37 }
 0x315   : > { %3266 = vmatmul.mubr.msk.f32.gmra.mrb[64].mxu0 %vm262_vm3, %v3771_v37  ;;  %3276 = vmatprep.mubr.msk.f32.mxu1 %vm262_vm3, %v2711_v3  ;;  %v2628_v37 = vld [vmem:[%s4481_s3 + $0x120] sm:$0xff] }
 0x316   : > { %3325 = vmatprep.mubr.msk.f32.mxu0 %vm262_vm3, %v2757_v5 }
 0x318   : > { %3277 = vmatmul.mubr.msk.f32.vlgmr.msra.gmra.mrb[66].mxu1 %vm262_vm3, %v2712_v29 }
 0x319   : > { %3326 = vmatmul.mubr.msk.f32.vlgmr.msra.gmra.mrb[66].mxu0 %vm262_vm3, %v2758_v30  ;;  %3279 = vmatprep.mubr.msk.f32.mxu1 %vm262_vm3, %v2713_v31  ;;  %v2632_v30 = vld [vmem:[%s4481_s3 + $0x140] sm:$0xff]  ;;  %v2678_v31 = vld [vmem:[%s4481_s3 + $0x188] sm:$0xff] }
 0x31a   : > { %3328 = vmatprep.mubr.msk.f32.mxu0 %vm262_vm3, %v2759_v32 }
 0x31c   : > { %3280 = vmatmul.mubr.msk.f32.gmra.mrb[68].mxu1 %vm262_vm3, %v2714_v33 }
 0x31d   : > { %3329 = vmatmul.mubr.msk.f32.gmra.mrb[68].mxu0 %vm262_vm3, %v2760_v34  ;;  %3290 = vmatprep.mubr.msk.f32.mxu1 %vm3534_vm4, %v3535_v16  ;;  %v1577_v34 = vmul.f32 0.1, %v2651_v18 }
 0x31e   : > { %3339 = vmatprep.mubr.msk.f32.mxu0 %vm3534_vm4, %v3535_v16 }
 0x3c7   : > { %v1519_v24 = vpop.f32.mrb[48].mxu1 }
 0x3c8   : > { %v1782_v25 = vpop.f32.mrb[48].mxu0  ;;  %v1520_v28 = vadd.f32 %v2628_v37, %v1519_v24  ;;  %v3194_v39 = vpop.f32.mrb[49].mxu1 }
 0x3c9   : > { %v1783_v38 = vadd.f32 %v2674_v21, %v1782_v25  ;;  %v3243_v40 = vpop.f32.mrb[49].mxu0  ;;  %v2652_v21 = vld [vmem:[%s3801_s30 + $0x148] sm:$0xff] }
 0x3ca   : > { %v1582_v43 = vadd.f32 %v1573_v22, %v1520_v28  ;;  %v2698_v22 = vld [vmem:[%s3801_s30 + $0x190] sm:$0xff]  ;;  %v1578_v40 = vmul.f32 0.1, %v2652_v21 }
 0x3cb   : > { %v1845_v44 = vadd.f32 %v1836_v23, %v1783_v38  ;;  %v1524_v47 = vpop.f32.mrb[50].mxu1  ;;  %v2679_v28 = vld [vmem:[%s4481_s3 + $0x190] sm:$0xff] }
 0x3cc   : > { %v1787_v48 = vpop.f32.mrb[50].mxu0  ;;  %2656 = vst [vmem:[%s3816_s12 + $0x120] sm:$0xff] %v1582_v43  ;;  %v1525_v51 = vadd.f32 %v2629_v41, %v1524_v47  ;;  %v3197_v53 = vpop.f32.mrb[51].mxu1  ;;  %v1841_v41 = vmul.f32 0.1, %v2698_v22 }
 0x3cd   : > { %2702 = vst [vmem:[%s3816_s12 + $0x168] sm:$0xff] %v1845_v44  ;;  %v1788_v52 = vadd.f32 %v2675_v42, %v1787_v48  ;;  %v3246_v54 = vpop.f32.mrb[51].mxu0  ;;  %v2653_v44 = vld [vmem:[%s3801_s30 + $0x150] sm:$0xff] }
 0x3ce   : > { %v1583_v57 = vadd.f32 %v1574_v45, %v1525_v51  ;;  %v2699_v45 = vld [vmem:[%s3801_s30 + $0x198] sm:$0xff]  ;;  %v1579_v54 = vmul.f32 0.1, %v2653_v44 }
 0x3cf   : > { %v1846_v58 = vadd.f32 %v1837_v46, %v1788_v52  ;;  %v1529_v61 = vpop.f32.mrb[52].mxu1  ;;  %v2680_v51 = vld [vmem:[%s4481_s3 + $0x198] sm:$0xff] }
 0x3d0   : > { %v1792_v62 = vpop.f32.mrb[52].mxu0  ;;  %2657 = vst [vmem:[%s3816_s12 + $0x128] sm:$0xff] %v1583_v57  ;;  %v1530_v1 = vadd.f32 %v2630_v55, %v1529_v61  ;;  %v3200_v4 = vpop.f32.mrb[53].mxu1  ;;  %v1842_v55 = vmul.f32 0.1, %v2699_v45  ;;  %v3518_v44 = vld [vmem:[%s4479_s1 + $0x18] sm:$0xff] }
 0x3d1   : > { %2703 = vst [vmem:[%s3816_s12 + $0x170] sm:$0xff] %v1846_v58  ;;  %v1793_v2 = vadd.f32 %v2676_v56, %v1792_v62  ;;  %v3249_v7 = vpop.f32.mrb[53].mxu0  ;;  %v2654_v58 = vld [vmem:[%s3801_s30 + $0x158] sm:$0xff]  ;;  %v3519_v45 = vld [vmem:[%s4479_s1 + $0x20] sm:$0xff] }
 0x3d2   : > { %v1584_v10 = vadd.f32 %v1575_v59, %v1530_v1  ;;  %v2700_v59 = vld [vmem:[%s3801_s30 + $0x1a0] sm:$0xff]  ;;  %v1580_v7 = vmul.f32 0.1, %v2654_v58 }
 0x3d3   : > { %v1847_v11 = vadd.f32 %v1838_v60, %v1793_v2  ;;  %v1534_v14 = vpop.f32.mrb[54].mxu1  ;;  %v2681_v1 = vld [vmem:[%s4481_s3 + $0x1a0] sm:$0xff] }
 0x3d4   : > { %v1797_v17 = vpop.f32.mrb[54].mxu0  ;;  %2658 = vst [vmem:[%s3816_s12 + $0x130] sm:$0xff] %v1584_v10  ;;  %v1535_v20 = vadd.f32 %v2631_v8, %v1534_v14  ;;  %v3203_v5 = vpop.f32.mrb[55].mxu1  ;;  %v1843_v8 = vmul.f32 0.1, %v2700_v59  ;;  %v2786_v58 = vld [vmem:[%s3801_s30 + $0x200] sm:$0xff] }
 0x3d5   : > { %2704 = vst [vmem:[%s3816_s12 + $0x178] sm:$0xff] %v1847_v11  ;;  %v1798_v3 = vadd.f32 %v2677_v9, %v1797_v17  ;;  %v3252_v29 = vpop.f32.mrb[55].mxu0  ;;  %v2655_v11 = vld [vmem:[%s3801_s30 + $0x160] sm:$0x7] }
 0x3d6   : > { %v1585_v32 = vadd.f32 %v1576_v12, %v1535_v20  ;;  %v2701_v12 = vld [vmem:[%s3801_s30 + $0x1a8] sm:$0x7]  ;;  %v1581_v29 = vmul.f32 0.1, %v2655_v11 }
 0x3d7   : > { %v1848_v33 = vadd.f32 %v1839_v13, %v1798_v3  ;;  %v1539_v36 = vpop.f32.mrb[56].mxu1  ;;  %v2682_v20 = vld [vmem:[%s4481_s3 + $0x1a8] sm:$0x7] }
 0x3d8   : > { %v1802_v37 = vpop.f32.mrb[56].mxu0  ;;  %2659 = vst [vmem:[%s3816_s12 + $0x138] sm:$0xff] %v1585_v32  ;;  %v1540_v23 = vadd.f32 %v2632_v30, %v1539_v36  ;;  %v3206_v25 = vpop.f32.mrb[57].mxu1  ;;  %v1844_v30 = vmul.f32 0.1, %v2701_v12  ;;  %v2787_v11 = vld [vmem:[%s3801_s30 + $0x208] sm:$0xff] }
 0x3d9   : > { %2705 = vst [vmem:[%s3816_s12 + $0x180] sm:$0xff] %v1848_v33  ;;  %v1803_v24 = vadd.f32 %v2678_v31, %v1802_v37  ;;  %v3255_v26 = vpop.f32.mrb[57].mxu0 }
 0x3da   : > { %v1586_v38 = vadd.f32 %v1577_v34, %v1540_v23 }
 0x3db   : > { %v1849_v39 = vadd.f32 %v1840_v35, %v1803_v24  ;;  %v1544_v42 = vpop.f32.mrb[58].mxu1 }
 0x3dc   : > { %v1807_v43 = vpop.f32.mrb[58].mxu0  ;;  %2660 = vst [vmem:[%s3816_s12 + $0x140] sm:$0xff] %v1586_v38  ;;  %v1545_v46 = vadd.f32 %v2633_v27, %v1544_v42  ;;  %v3209_v48 = vpop.f32.mrb[59].mxu1 }
 0x3dd   : > { %2706 = vst [vmem:[%s3816_s12 + $0x188] sm:$0xff] %v1849_v39  ;;  %v1808_v47 = vadd.f32 %v2679_v28, %v1807_v43  ;;  %v3258_v49 = vpop.f32.mrb[59].mxu0  ;;  %v3515_v43 = vld [vmem:[%s4479_s1] sm:$0xff]  ;;  %v3522_v48 = vld [vmem:[%s4479_s1 + $0x38] sm:$0xff] }
 0x3de   : > { %v1587_v52 = vadd.f32 %v1578_v40, %v1545_v46  ;;  %v3520_v46 = vld [vmem:[%s4479_s1 + $0x28] sm:$0xff]  ;;  %v3523_v49 = vld [vmem:[%s4479_s1 + $0x40] sm:$0x7] }
 0x3df   : > { %v1850_v53 = vadd.f32 %v1841_v41, %v1808_v47  ;;  %v1549_v56 = vpop.f32.mrb[60].mxu1  ;;  %v3521_v47 = vld [vmem:[%s4479_s1 + $0x30] sm:$0xff] }
 0x3e0   : > { %v1812_v57 = vpop.f32.mrb[60].mxu0  ;;  %2661 = vst [vmem:[%s3816_s12 + $0x148] sm:$0xff] %v1587_v52  ;;  %v1550_v60 = vadd.f32 %v2634_v50, %v1549_v56  ;;  %v3212_v62 = vpop.f32.mrb[61].mxu1  ;;  %v2739_v50 = vld [vmem:[%s3801_s30 + $0x1b0] sm:$0xff] }
 0x3e1   : > { %2707 = vst [vmem:[%s3816_s12 + $0x190] sm:$0xff] %v1850_v53  ;;  %v1813_v61 = vadd.f32 %v2680_v51, %v1812_v57  ;;  %v3261_v63 = vpop.f32.mrb[61].mxu0  ;;  %v2785_v51 = vld [vmem:[%s3801_s30 + $0x1f8] sm:$0xff]  ;;  %v2720_v52 = vld [vmem:[%s4481_s3 + $0x1b0] sm:$0xff] }
 0x3e2   : > { %v1588_v2 = vadd.f32 %v1579_v54, %v1550_v60  ;;  %v2766_v53 = vld [vmem:[%s4481_s3 + $0x1f8] sm:$0xff]  ;;  %v2099_v54 = vmul.f32 0.1, %v2739_v50 }
 0x3e3   : > { %v1851_v4 = vadd.f32 %v1842_v55, %v1813_v61  ;;  %v1554_v9 = vpop.f32.mrb[62].mxu1  ;;  %v2740_v57 = vld [vmem:[%s3801_s30 + $0x1b8] sm:$0xff] }
 0x3e4   : > { %v1817_v10 = vpop.f32.mrb[62].mxu0  ;;  %2662 = vst [vmem:[%s3816_s12 + $0x150] sm:$0xff] %v1588_v2  ;;  %v1555_v13 = vadd.f32 %v2635_v0, %v1554_v9  ;;  %v3215_v17 = vpop.f32.mrb[63].mxu1  ;;  %v2721_v63 = vld [vmem:[%s4481_s3 + $0x1b8] sm:$0xff]  ;;  %v2767_v0 = vld [vmem:[%s4481_s3 + $0x200] sm:$0xff] }
 0x3e5   : > { %2708 = vst [vmem:[%s3816_s12 + $0x198] sm:$0xff] %v1851_v4  ;;  %v1818_v14 = vadd.f32 %v2681_v1, %v1817_v10  ;;  %v3264_v18 = vpop.f32.mrb[63].mxu0  ;;  %v2100_v4 = vmul.f32 0.1, %v2740_v57  ;;  %v2741_v10 = vld [vmem:[%s3801_s30 + $0x1c0] sm:$0xff]  ;;  %v2744_v50 = vld [vmem:[%s3801_s30 + $0x1d8] sm:$0xff] }
 0x3e6   : > { %v1589_v3 = vadd.f32 %v1580_v7, %v1555_v13  ;;  %v2363_v7 = vmul.f32 0.1, %v2786_v58  ;;  %v2722_v18 = vld [vmem:[%s4481_s3 + $0x1c0] sm:$0xff] }
 0x3e7   : > { %v1852_v5 = vadd.f32 %v1843_v8, %v1818_v14  ;;  %v1559_v31 = vpop.f32.mrb[64].mxu1 }
 0x3e8   : > { %v1822_v32 = vpop.f32.mrb[64].mxu0  ;;  %2663 = vst [vmem:[%s3816_s12 + $0x158] sm:$0xff] %v1589_v3  ;;  %v1560_v33 = vadd.f32 %v2636_v19, %v1559_v31  ;;  %v3218_v35 = vpop.f32.mrb[65].mxu1  ;;  %v2768_v19 = vld [vmem:[%s4481_s3 + $0x208] sm:$0xff] }
 0x3e9   : > { %2709 = vst [vmem:[%s3816_s12 + $0x1a0] sm:$0xff] %v1852_v5  ;;  %v1823_v34 = vadd.f32 %v2682_v20, %v1822_v32  ;;  %v3267_v36 = vpop.f32.mrb[65].mxu0  ;;  %v2101_v5 = vmul.f32 0.1, %v2741_v10  ;;  %v2742_v32 = vld [vmem:[%s3801_s30 + $0x1c8] sm:$0xff] }
 0x3ea   : > { %v1590_v37 = vadd.f32 %v1581_v29, %v1560_v33  ;;  %v2364_v29 = vmul.f32 0.1, %v2787_v11  ;;  %v2788_v33 = vld [vmem:[%s3801_s30 + $0x210] sm:$0xff] }
 0x3eb   : > { %v1853_v21 = vadd.f32 %v1844_v30, %v1823_v34  ;;  %v3278_v22 = vpop.f32.mrb[66].mxu1 }
 0x3ec   : > { %v3327_v23 = vpop.f32.mrb[66].mxu0  ;;  %2664 = vst [vmem:[%s3816_s12 + $0x160] sm:$0x7] %v1590_v37  ;;  %v1947_v24 = vpop.f32.mrb[67].mxu1 }
 0x3ed   : > { %2710 = vst [vmem:[%s3816_s12 + $0x1a8] sm:$0x7] %v1853_v21  ;;  %v2210_v25 = vpop.f32.mrb[67].mxu0  ;;  %v3479_v26 = vpack.c.bf16 %v3278_v22, %v1947_v24  ;;  %v2723_v21 = vld [vmem:[%s4481_s3 + $0x1c8] sm:$0xff]  ;;  %v2769_v22 = vld [vmem:[%s4481_s3 + $0x210] sm:$0xff] }
 0x3ee   : > { %v3496_v27 = vpack.c.bf16 %v3327_v23, %v2210_v25  ;;  %v2102_v25 = vmul.f32 0.1, %v2742_v32 }
 0x3ef   : > { %v3281_v28 = vpop.f32.mrb[68].mxu1  ;;  %3480 = vmatpush3.bf16.msra.mxu1 %v3479_v26  ;;  %v2365_v26 = vmul.f32 0.1, %v2788_v33 }
 0x3f0   : > { %v3330_v38 = vpop.f32.mrb[68].mxu0  ;;  %3497 = vmatpush3.bf16.msra.mxu0 %v3496_v27  ;;  %v1957_v39 = vpop.f32.mrb[69].mxu1  ;;  %3481 = vmatprep.subr.bf16.mxu1 %v3533_v15 }
 0x3f1   : > { %v2220_v40 = vpop.f32.mrb[69].mxu0  ;;  %3498 = vmatprep.subr.bf16.mxu0 %v3533_v15  ;;  %v3482_v41 = vpack.c.bf16 %v3281_v28, %v1957_v39  ;;  %v3516_v15 = vld [vmem:[%s4479_s1 + $0x8] sm:$0xff]  ;;  %v2789_v39 = vld [vmem:[%s3801_s30 + $0x218] sm:$0xff] }
 0x3f2   : > { %v3499_v42 = vpack.c.bf16 %v3330_v38, %v2220_v40  ;;  %v2743_v38 = vld [vmem:[%s3801_s30 + $0x1d0] sm:$0xff] }
 0x3f3   : > { %3484 = vmatpush3.bf16.msk.msra.mxu1 %vm3590_vm2, %v3482_v41 }
 0x3f4   : > { %3501 = vmatpush3.bf16.msk.msra.mxu0 %vm3590_vm2, %v3499_v42 }
 0x3f6   : > { %3291 = vmatmul.mubr.msk.f32.vlgmr.msra.gmra.mrb[70].mxu1 %vm262_vm3, %v3515_v43 }
 0x3f7   : > { %3340 = vmatmul.mubr.msk.f32.vlgmr.msra.gmra.mrb[70].mxu0 %vm262_vm3, %v3515_v43  ;;  %3293 = vmatprep.mubr.msk.f32.mxu1 %vm3534_vm4, %v3535_v16 }
 0x3f8   : > { %3342 = vmatprep.mubr.msk.f32.mxu0 %vm3534_vm4, %v3535_v16 }
 0x3fa   : > { %3294 = vmatmul.mubr.msk.f32.gmra.mrb[72].mxu1 %vm262_vm3, %v3516_v15 }
 0x3fb   : > { %3343 = vmatmul.mubr.msk.f32.gmra.mrb[72].mxu0 %vm262_vm3, %v3516_v15  ;;  %3296 = vmatprep.mubr.msk.f32.mxu1 %vm3534_vm4, %v3535_v16  ;;  %v2724_v15 = vld [vmem:[%s4481_s3 + $0x1d0] sm:$0xff] }
 0x3fc   : > { %3345 = vmatprep.mubr.msk.f32.mxu0 %vm3534_vm4, %v3535_v16 }
 0x3fe   : > { %3297 = vmatmul.mubr.msk.f32.gmra.mrb[74].mxu1 %vm262_vm3, %v3517_v6 }
 0x3ff   : > { %3346 = vmatmul.mubr.msk.f32.gmra.mrb[74].mxu0 %vm262_vm3, %v3517_v6  ;;  %3299 = vmatprep.mubr.msk.f32.mxu1 %vm3534_vm4, %v3535_v16  ;;  %v2770_v6 = vld [vmem:[%s4481_s3 + $0x218] sm:$0xff] }
 0x400   : > { %3348 = vmatprep.mubr.msk.f32.mxu0 %vm3534_vm4, %v3535_v16 }
 0x402   : > { %3300 = vmatmul.mubr.msk.f32.gmra.mrb[76].mxu1 %vm262_vm3, %v3518_v44 }
 0x403   : > { %3349 = vmatmul.mubr.msk.f32.gmra.mrb[76].mxu0 %vm262_vm3, %v3518_v44  ;;  %3302 = vmatprep.mubr.msk.f32.mxu1 %vm3534_vm4, %v3535_v16 }
 0x404   : > { %3351 = vmatprep.mubr.msk.f32.mxu0 %vm3534_vm4, %v3535_v16 }
 0x406   : > { %3303 = vmatmul.mubr.msk.f32.gmra.mrb[78].mxu1 %vm262_vm3, %v3519_v45 }
 0x407   : > { %3352 = vmatmul.mubr.msk.f32.gmra.mrb[78].mxu0 %vm262_vm3, %v3519_v45  ;;  %3305 = vmatprep.mubr.msk.f32.mxu1 %vm3534_vm4, %v3535_v16 }
 0x408   : > { %3354 = vmatprep.mubr.msk.f32.mxu0 %vm3534_vm4, %v3535_v16 }
 0x40a   : > { %3306 = vmatmul.mubr.msk.f32.gmra.mrb[80].mxu1 %vm262_vm3, %v3520_v46 }
 0x40b   : > { %3355 = vmatmul.mubr.msk.f32.gmra.mrb[80].mxu0 %vm262_vm3, %v3520_v46  ;;  %3308 = vmatprep.mubr.msk.f32.mxu1 %vm3534_vm4, %v3535_v16  ;;  %v2103_v46 = vmul.f32 0.1, %v2743_v38 }
 0x40c   : > { %3357 = vmatprep.mubr.msk.f32.mxu0 %vm3534_vm4, %v3535_v16 }
 0x40e   : > { %3309 = vmatmul.mubr.msk.f32.gmra.mrb[82].mxu1 %vm262_vm3, %v3521_v47 }
 0x40f   : > { %3358 = vmatmul.mubr.msk.f32.gmra.mrb[82].mxu0 %vm262_vm3, %v3521_v47  ;;  %3311 = vmatprep.mubr.msk.f32.mxu1 %vm3534_vm4, %v3535_v16  ;;  %v2366_v47 = vmul.f32 0.1, %v2789_v39 }
 0x410   : > { %3360 = vmatprep.mubr.msk.f32.mxu0 %vm3534_vm4, %v3535_v16 }
 0x412   : > { %3312 = vmatmul.mubr.msk.f32.gmra.mrb[84].mxu1 %vm262_vm3, %v3522_v48 }
 0x413   : > { %3361 = vmatmul.mubr.msk.f32.gmra.mrb[84].mxu0 %vm262_vm3, %v3522_v48  ;;  %3314 = vmatprep.mubr.msk.f32.mxu1 %vm3534_vm4, %v3535_v16 }
 0x414   : > { %3363 = vmatprep.mubr.msk.f32.mxu0 %vm3534_vm4, %v3535_v16  ;;  %v2362_v16 = vmul.f32 0.1, %v2785_v51  ;;  %v2790_v51 = vld [vmem:[%s3801_s30 + $0x220] sm:$0xff] }
 0x416   : > { %3315 = vmatmul.mubr.msk.f32.gmra.mrb[86].mxu1 %vm262_vm3, %v3523_v49 }
 0x417   : > { %3364 = vmatmul.mubr.msk.f32.gmra.mrb[86].mxu0 %vm262_vm3, %v3523_v49 }
 0x4c9   : > { %v2045_v55 = vpop.f32.mrb[70].mxu1 }
 0x4ca   : > { %v2308_v56 = vpop.f32.mrb[70].mxu0  ;;  %v2046_v59 = vadd.f32 %v2720_v52, %v2045_v55  ;;  %v3292_v61 = vpop.f32.mrb[71].mxu1  ;;  %v2725_v55 = vld [vmem:[%s4481_s3 + $0x1d8] sm:$0xff] }
 0x4cb   : > { %v2309_v60 = vadd.f32 %v2766_v53, %v2308_v56  ;;  %v3341_v62 = vpop.f32.mrb[71].mxu0  ;;  %v2771_v56 = vld [vmem:[%s4481_s3 + $0x220] sm:$0xff] }
 0x4cc   : > { %v2108_v1 = vadd.f32 %v2099_v54, %v2046_v59  ;;  %v2104_v59 = vmul.f32 0.1, %v2744_v50 }
 0x4cd   : > { %v2371_v2 = vadd.f32 %v2362_v16, %v2309_v60  ;;  %v2050_v8 = vpop.f32.mrb[72].mxu1  ;;  %v2367_v60 = vmul.f32 0.1, %v2790_v51 }
 0x4ce   : > { %v2313_v9 = vpop.f32.mrb[72].mxu0  ;;  %2748 = vst [vmem:[%s3816_s12 + $0x1b0] sm:$0xff] %v2108_v1  ;;  %v2051_v12 = vadd.f32 %v2721_v63, %v2050_v8  ;;  %v3295_v14 = vpop.f32.mrb[73].mxu1  ;;  %v2745_v63 = vld [vmem:[%s3801_s30 + $0x1e0] sm:$0xff] }
 0x4cf   : > { %2794 = vst [vmem:[%s3816_s12 + $0x1f8] sm:$0xff] %v2371_v2  ;;  %v2314_v13 = vadd.f32 %v2767_v0, %v2313_v9  ;;  %v3344_v17 = vpop.f32.mrb[73].mxu0  ;;  %v2791_v0 = vld [vmem:[%s3801_s30 + $0x228] sm:$0xff]  ;;  %v2726_v8 = vld [vmem:[%s4481_s3 + $0x1e0] sm:$0xff] }
 0x4d0   : > { %v2109_v20 = vadd.f32 %v2100_v4, %v2051_v12  ;;  %v2772_v9 = vld [vmem:[%s4481_s3 + $0x228] sm:$0xff]  ;;  %v2105_v12 = vmul.f32 0.1, %v2745_v63 }
 0x4d1   : > { %v2372_v3 = vadd.f32 %v2363_v7, %v2314_v13  ;;  %v2055_v30 = vpop.f32.mrb[74].mxu1  ;;  %v2368_v13 = vmul.f32 0.1, %v2791_v0 }
 0x4d2   : > { %v2318_v31 = vpop.f32.mrb[74].mxu0  ;;  %2749 = vst [vmem:[%s3816_s12 + $0x1b8] sm:$0xff] %v2109_v20  ;;  %v2056_v34 = vadd.f32 %v2722_v18, %v2055_v30  ;;  %v3298_v36 = vpop.f32.mrb[75].mxu1  ;;  %v2746_v18 = vld [vmem:[%s3801_s30 + $0x1e8] sm:$0xff] }
 0x4d3   : > { %2795 = vst [vmem:[%s3816_s12 + $0x200] sm:$0xff] %v2372_v3  ;;  %v2319_v35 = vadd.f32 %v2768_v19, %v2318_v31  ;;  %v3347_v37 = vpop.f32.mrb[75].mxu0  ;;  %v2792_v19 = vld [vmem:[%s3801_s30 + $0x230] sm:$0xff]  ;;  %v2727_v30 = vld [vmem:[%s4481_s3 + $0x1e8] sm:$0xff] }
 0x4d4   : > { %v2110_v23 = vadd.f32 %v2101_v5, %v2056_v34  ;;  %v2773_v31 = vld [vmem:[%s4481_s3 + $0x230] sm:$0xff]  ;;  %v2106_v34 = vmul.f32 0.1, %v2746_v18 }
 0x4d5   : > { %v2373_v24 = vadd.f32 %v2364_v29, %v2319_v35  ;;  %v2060_v27 = vpop.f32.mrb[76].mxu1  ;;  %v2369_v35 = vmul.f32 0.1, %v2792_v19 }
 0x4d6   : > { %v2323_v28 = vpop.f32.mrb[76].mxu0  ;;  %2750 = vst [vmem:[%s3816_s12 + $0x1c0] sm:$0xff] %v2110_v23  ;;  %v2061_v40 = vadd.f32 %v2723_v21, %v2060_v27  ;;  %v3301_v42 = vpop.f32.mrb[77].mxu1  ;;  %v2747_v21 = vld [vmem:[%s3801_s30 + $0x1f0] sm:$0x7] }
 0x4d7   : > { %2796 = vst [vmem:[%s3816_s12 + $0x208] sm:$0xff] %v2373_v24  ;;  %v2324_v41 = vadd.f32 %v2769_v22, %v2323_v28  ;;  %v3350_v43 = vpop.f32.mrb[77].mxu0  ;;  %v2793_v22 = vld [vmem:[%s3801_s30 + $0x238] sm:$0x7]  ;;  %v2728_v27 = vld [vmem:[%s4481_s3 + $0x1f0] sm:$0x7] }
 0x4d8   : > { %v2111_v44 = vadd.f32 %v2102_v25, %v2061_v40  ;;  %v2774_v28 = vld [vmem:[%s4481_s3 + $0x238] sm:$0x7]  ;;  %v2107_v40 = vmul.f32 0.1, %v2747_v21 }
 0x4d9   : > { %v2374_v45 = vadd.f32 %v2365_v26, %v2324_v41  ;;  %v2065_v48 = vpop.f32.mrb[78].mxu1  ;;  %v2370_v41 = vmul.f32 0.1, %v2793_v22 }
 0x4da   : > { %v2328_v49 = vpop.f32.mrb[78].mxu0  ;;  %2751 = vst [vmem:[%s3816_s12 + $0x1c8] sm:$0xff] %v2111_v44  ;;  %v2066_v52 = vadd.f32 %v2724_v15, %v2065_v48  ;;  %v3304_v54 = vpop.f32.mrb[79].mxu1 }
 0x4db   : > { %2797 = vst [vmem:[%s3816_s12 + $0x210] sm:$0xff] %v2374_v45  ;;  %v2329_v53 = vadd.f32 %v2770_v6, %v2328_v49  ;;  %v3353_v16 = vpop.f32.mrb[79].mxu0 }
 0x4dc   : > { %v2112_v57 = vadd.f32 %v2103_v46, %v2066_v52 }
 0x4dd   : > { %v2375_v58 = vadd.f32 %v2366_v47, %v2329_v53  ;;  %v2070_v61 = vpop.f32.mrb[80].mxu1 }
 0x4de   : > { %v2333_v62 = vpop.f32.mrb[80].mxu0  ;;  %2752 = vst [vmem:[%s3816_s12 + $0x1d0] sm:$0xff] %v2112_v57  ;;  %v2071_v1 = vadd.f32 %v2725_v55, %v2070_v61  ;;  %v3307_v4 = vpop.f32.mrb[81].mxu1 }
 0x4df   : > { %2798 = vst [vmem:[%s3816_s12 + $0x218] sm:$0xff] %v2375_v58  ;;  %v2334_v2 = vadd.f32 %v2771_v56, %v2333_v62  ;;  %v3356_v7 = vpop.f32.mrb[81].mxu0 }
 0x4e0   : > { %v2113_v10 = vadd.f32 %v2104_v59, %v2071_v1 }
 0x4e1   : > { %v2376_v11 = vadd.f32 %v2367_v60, %v2334_v2  ;;  %v2075_v14 = vpop.f32.mrb[82].mxu1 }
 0x4e2   : > { %v2338_v17 = vpop.f32.mrb[82].mxu0  ;;  %2753 = vst [vmem:[%s3816_s12 + $0x1d8] sm:$0xff] %v2113_v10  ;;  %v2076_v20 = vadd.f32 %v2726_v8, %v2075_v14  ;;  %v3310_v5 = vpop.f32.mrb[83].mxu1 }
 0x4e3   : > { %2799 = vst [vmem:[%s3816_s12 + $0x220] sm:$0xff] %v2376_v11  ;;  %v2339_v3 = vadd.f32 %v2772_v9, %v2338_v17  ;;  %v3359_v29 = vpop.f32.mrb[83].mxu0 }
 0x4e4   : > { %v2114_v32 = vadd.f32 %v2105_v12, %v2076_v20 }
 0x4e5   : > { %v2377_v33 = vadd.f32 %v2368_v13, %v2339_v3  ;;  %v2080_v36 = vpop.f32.mrb[84].mxu1 }
 0x4e6   : > { %v2343_v37 = vpop.f32.mrb[84].mxu0  ;;  %2754 = vst [vmem:[%s3816_s12 + $0x1e0] sm:$0xff] %v2114_v32  ;;  %v2081_v23 = vadd.f32 %v2727_v30, %v2080_v36  ;;  %v3313_v25 = vpop.f32.mrb[85].mxu1 }
 0x4e7   : > { %2800 = vst [vmem:[%s3816_s12 + $0x228] sm:$0xff] %v2377_v33  ;;  %v2344_v24 = vadd.f32 %v2773_v31, %v2343_v37  ;;  %v3362_v26 = vpop.f32.mrb[85].mxu0 }
 0x4e8   : > { %v2115_v38 = vadd.f32 %v2106_v34, %v2081_v23 }
 0x4e9   : > { %v2378_v39 = vadd.f32 %v2369_v35, %v2344_v24  ;;  %v2085_v42 = vpop.f32.mrb[86].mxu1 }
 0x4ea   : > { %v2348_v43 = vpop.f32.mrb[86].mxu0  ;;  %2755 = vst [vmem:[%s3816_s12 + $0x1e8] sm:$0xff] %v2115_v38  ;;  %v2086_v15 = vadd.f32 %v2728_v27, %v2085_v42  ;;  %v3316_v44 = vpop.f32.mrb[87].mxu1 }
 0x4eb   : > { %2801 = vst [vmem:[%s3816_s12 + $0x230] sm:$0xff] %v2378_v39  ;;  %v2349_v6 = vadd.f32 %v2774_v28, %v2348_v43  ;;  %v3365_v45 = vpop.f32.mrb[87].mxu0 }
 0x4ec   : > { %v2116_v46 = vadd.f32 %v2107_v40, %v2086_v15 }
 0x4ed   : > { %v2379_v47 = vadd.f32 %v2370_v41, %v2349_v6 }
 0x4ee   : > { %2756 = vst [vmem:[%s3816_s12 + $0x1f0] sm:$0x7] %v2116_v46 }
 0x4ef   : > { %2802 = vst [vmem:[%s3816_s12 + $0x238] sm:$0x7] %v2379_v47 }
 0x4f0 PF: > { %s15_s18 = sadd.s32 1, %s3530_s18  }
 0x4f1   : > { %p12_p4 = scmp.ge.s32.totalorder %s15_s18, 4  }
 0x4f3   :  { %14 = sbr.rel (!%p12_p4) target bundleno = 1 (0x1), region = 101 }

</bundles_post_ra>
